<compile_context>
chip_gen: v6e
topology: v6e:2x2x1
jax: 0.10.0
libtpu: 0.0.40
codegen_flags: <defaults>
</compile_context>

<pallas_src>
import functools
import math

import jax
import jax.numpy as jnp
from jax.experimental import pallas as pl
from jax.experimental.pallas import tpu as pltpu

EMBED_DIM = 32
NUM_HEADS = 4
LAYERS = 2
HEAD_DIM = EMBED_DIM // NUM_HEADS
LN_EPS = 1e-5
FFN_DIM = 4 * EMBED_DIM
NEG_INF = -1e30  # finite "−inf": identical softmax result, robust to all-masked rows


def _layer_norm(v, g, b):
    m = jnp.mean(v, axis=-1, keepdims=True)
    var = jnp.mean((v - m) ** 2, axis=-1, keepdims=True)
    return (v - m) * jax.lax.rsqrt(var + LN_EPS) * g + b


def _mult_fused_kernel(posq_ref, posk_ref, xq_ref, xk_ref,
                       wmat_ref, w2_ref, wvec_ref, lnf_ref,
                       y_ref, *, bb, tq, tk):
    D, H, Hd = EMBED_DIM, NUM_HEADS, HEAD_DIM
    nq = bb * tq
    nk = bb * tk
    scale = math.sqrt(D)
    scaling = Hd ** -0.5

    # ---- embed scaling + positional embedding; fold batch into rows --------
    x = (scale * xq_ref[...] + posq_ref[...]).reshape(nq, D)       # (bb*Tq, D)
    xk = (scale * xk_ref[...] + posk_ref[...]).reshape(nk, D)      # (bb*Tk, D)

    # ---- buffered_future_mask: static, built once, shared by both layers ---
    offset = 1 + abs(tk - tq)
    row_i = jax.lax.broadcasted_iota(jnp.int32, (tq, tk), 0)
    col_i = jax.lax.broadcasted_iota(jnp.int32, (tq, tk), 1)
    mask = jnp.where(col_i - row_i >= offset, NEG_INF, 0.0).astype(jnp.float32)

    for l in range(LAYERS):                       # static unroll over layers
        # parameter rows: one per sublane, all at lane offset 0 (plain loads)
        ln0_g = wvec_ref[l, 0:1, 0:D]
        ln0_b = wvec_ref[l, 1:2, 0:D]
        bqkv = wvec_ref[l, 2:3, 0:3 * D]          # [bq | bk | bv]
        bo = wvec_ref[l, 3:4, 0:D]
        ln1_g = wvec_ref[l, 4:5, 0:D]
        ln1_b = wvec_ref[l, 5:6, 0:D]
        b1 = wvec_ref[l, 6:7, :]                  # (1, 4D)
        b2 = wvec_ref[l, 7:8, 0:D]

        # ---- pre-LN cross attention: single fused Q|K|V projection --------
        # LN0 is shared by query and key/value inputs -> row-stack, LN once,
        # one matmul against wmat[:, 0:3D].  Adding the packed bias row to
        # every output row is safe: q rows never read the k/v columns etc.
        ln_in = _layer_norm(jnp.concatenate([x, xk], axis=0), ln0_g, ln0_b)
        qkv = jnp.dot(ln_in, wmat_ref[l, :, 0:3 * D],
                      preferred_element_type=jnp.float32) + bqkv   # (nq+nk, 3D)

        q3 = (qkv[0:nq, 0:D] * scaling).reshape(bb, tq, D)
        k3 = qkv[nq:nq + nk, D:2 * D].reshape(bb, tk, D)
        v3 = qkv[nq:nq + nk, 2 * D:3 * D].reshape(bb, tk, D)

        wo = wmat_ref[l, :, 3 * D:4 * D]          # (D, D)
        attn = jnp.zeros((nq, D), jnp.float32)
        for h in range(H):                        # static unroll over heads
            sl = slice(h * Hd, (h + 1) * Hd)
            # QK^T batched over the folded batch (no materialized transpose)
            s = jnp.einsum('bqd,bkd->bqk', q3[:, :, sl], k3[:, :, sl],
                           preferred_element_type=jnp.float32) + mask
            # one softmax chain per head (batched across bb); recip -> EUP
            m = jnp.max(s, axis=-1, keepdims=True)
            p = jnp.exp(s - m)
            denom = jnp.sum(p, axis=-1, keepdims=True)
            p = p * pl.reciprocal(denom, approx=True)
            head = jnp.einsum('bqk,bkd->bqd', p, v3[:, :, sl],
                              preferred_element_type=jnp.float32)
            # accumulate through the Wo row-slice (no head concat)
            attn = attn + jnp.dot(head.reshape(nq, Hd), wo[sl, :],
                                  preferred_element_type=jnp.float32)
        x = x + attn + bo                         # residual (res_dropout identity)

        # ---- pre-LN feed-forward -------------------------------------------
        hmid = _layer_norm(x, ln1_g, ln1_b)
        hmid = jnp.maximum(jnp.dot(hmid, wmat_ref[l, :, 4 * D:8 * D],
                                   preferred_element_type=jnp.float32) + b1, 0.0)
        hmid = jnp.dot(hmid, w2_ref[l], preferred_element_type=jnp.float32) + b2
        x = x + hmid

    # ---- final LayerNorm ----------------------------------------------------
    y = _layer_norm(x, lnf_ref[0:1, :], lnf_ref[1:2, :])
    y_ref[...] = y.reshape(bb, tq, D)


def sinusoidal_pos_emb(seq_len, dim):
    # fairseq SinusoidalPositionalEmbedding; positions = padding_idx+1 .. padding_idx+T
    # TODO(synk): make_positions padding handling omitted — assumes no padded tokens.
    half = dim // 2
    freq = jnp.exp(jnp.arange(half, dtype=jnp.float32) * -(math.log(10000.0) / (half - 1)))
    pos = jnp.arange(1, seq_len + 1, dtype=jnp.float32)
    ang = pos[:, None] * freq[None, :]
    return jnp.concatenate([jnp.sin(ang), jnp.cos(ang)], axis=1)   # (T, D), D even


def init_params(key):
    D = EMBED_DIM

    def dense(k, shape):
        return 0.05 * jax.random.normal(k, shape, dtype=jnp.float32)

    layer_keys = jax.random.split(key, LAYERS + 1)
    layers = []
    for lk in layer_keys[:-1]:
        ks = jax.random.split(lk, 9)
        in_proj = dense(ks[0], (3 * D, D))               # torch in_proj_weight (3D, D)
        layers.append(dict(
            ln0_g=jnp.ones((1, D), jnp.float32), ln0_b=jnp.zeros((1, D), jnp.float32),
            wq=in_proj[:D].T,        bq=dense(ks[1], (1, D)),
            wk=in_proj[D:2 * D].T,   bk=dense(ks[2], (1, D)),
            wv=in_proj[2 * D:].T,    bv=dense(ks[3], (1, D)),
            wo=dense(ks[4], (D, D)).T,        bo=dense(ks[5], (1, D)),
            ln1_g=jnp.ones((1, D), jnp.float32), ln1_b=jnp.zeros((1, D), jnp.float32),
            w1=dense(ks[6], (4 * D, D)).T,    b1=dense(ks[7], (1, 4 * D)),
            w2=dense(ks[8], (D, 4 * D)).T,    b2=jnp.zeros((1, D), jnp.float32)))
    return dict(layers=layers,
                ln_g=jnp.ones((1, D), jnp.float32),
                ln_b=jnp.zeros((1, D), jnp.float32))


def pack_params(params):
    """Pack per-layer parameters into 3 stacked slabs + a final-LN slab.

    wmat : (L, D, 8D)  = [Wq | Wk | Wv | Wo | W1]  (QKV at lanes 0:3D, W1 at 4D:8D)
    w2   : (L, 4D, D)
    wvec : (L, 8, 4D)  one parameter vector per sublane row (lane offset 0):
           [ln0_g, ln0_b, bq|bk|bv, bo, ln1_g, ln1_b, b1, b2]
    lnf  : (8, D)      rows 0/1 = final-LN gamma/beta
    """
    D = EMBED_DIM
    layers = params["layers"]
    wmat = jnp.stack([jnp.concatenate(
        [lp["wq"], lp["wk"], lp["wv"], lp["wo"], lp["w1"]], axis=1)
        for lp in layers])                                       # (L, D, 8D)
    w2 = jnp.stack([lp["w2"] for lp in layers])                  # (L, 4D, D)

    def row(v):
        v = v.reshape(1, -1)
        return jnp.pad(v, ((0, 0), (0, 4 * D - v.shape[1])))

    wvec = jnp.stack([jnp.concatenate([
        row(lp["ln0_g"]), row(lp["ln0_b"]),
        row(jnp.concatenate([lp["bq"], lp["bk"], lp["bv"]], axis=1)),
        row(lp["bo"]),
        row(lp["ln1_g"]), row(lp["ln1_b"]),
        row(lp["b1"]), row(lp["b2"]),
    ], axis=0) for lp in layers])                                # (L, 8, 4D)

    lnf = jnp.concatenate([params["ln_g"], params["ln_b"],
                           jnp.zeros((6, D), jnp.float32)], axis=0)   # (8, D)
    return wmat, w2, wvec, lnf


def _num_grid_blocks(batch):
    """1 grid step on 1-TC chips (v5e/v6e); 2 on v7x (one per TensorCore)."""
    try:
        kind = jax.devices()[0].device_kind.lower()
    except Exception:
        kind = ""
    cores = 2 if "v7" in kind else 1
    g = max(1, min(cores, batch))
    while batch % g != 0:
        g -= 1
    return g


def mult_forward(sequence_q, sequence_k, params):
    # sequence_q: (B, Tq, D), sequence_k: (B, Tk, D) — matches the PyTorch call
    B, Tq, D = sequence_q.shape
    Tk = sequence_k.shape[1]
    assert D == EMBED_DIM

    posq = sinusoidal_pos_emb(Tq, D)
    posk = sinusoidal_pos_emb(Tk, D)
    wmat, w2, wvec, lnf = pack_params(params)

    G = _num_grid_blocks(B)          # grid steps (== TensorCores to use)
    Bb = B // G                      # batch elements folded per grid step

    kernel = functools.partial(_mult_fused_kernel, bb=Bb, tq=Tq, tk=Tk)

    flops_per_b = LAYERS * (
        2 * (Tq + Tk) * D * 3 * D          # fused QKV projection
        + 2 * Tq * Tk * D                  # QK^T (all heads)
        + 2 * Tq * Tk * D                  # PV (all heads)
        + 2 * Tq * D * D                   # output projection
        + 2 * 2 * Tq * D * FFN_DIM)        # FFN matmuls
    cost = pl.CostEstimate(
        flops=int(B * flops_per_b),
        transcendentals=int(B * LAYERS * NUM_HEADS * Tq * Tk),
        bytes_accessed=int(4 * (sequence_q.size + sequence_k.size + wmat.size
                                + w2.size + wvec.size + lnf.size + B * Tq * D)))

    return pl.pallas_call(
        kernel,
        out_shape=jax.ShapeDtypeStruct((B, Tq, D), jnp.float32),
        grid=(G,),
        in_specs=[
            pl.BlockSpec((Tq, D), lambda g: (0, 0)),              # posq (resident)
            pl.BlockSpec((Tk, D), lambda g: (0, 0)),              # posk (resident)
            pl.BlockSpec((Bb, Tq, D), lambda g: (g, 0, 0)),       # sequence_q block
            pl.BlockSpec((Bb, Tk, D), lambda g: (g, 0, 0)),       # sequence_k block
            pl.BlockSpec(wmat.shape, lambda g: (0, 0, 0)),        # packed matrices
            pl.BlockSpec(w2.shape, lambda g: (0, 0, 0)),          # packed W2
            pl.BlockSpec(wvec.shape, lambda g: (0, 0, 0)),        # packed biases / LN
            pl.BlockSpec(lnf.shape, lambda g: (0, 0)),            # final LN
        ],
        out_specs=pl.BlockSpec((Bb, Tq, D), lambda g: (g, 0, 0)),
        compiler_params=pltpu.CompilerParams(
            dimension_semantics=("parallel",)),
        cost_estimate=cost,
    )(posq, posk, sequence_q, sequence_k, wmat, w2, wvec, lnf)


if __name__ == "__main__":
    key = jax.random.PRNGKey(0)
    kq, kk, kp = jax.random.split(key, 3)
    B, Tq, Tk, D = 2, 8, 12, EMBED_DIM
    sequence_q = jax.random.normal(kq, (B, Tq, D), dtype=jnp.float32)
    sequence_k = jax.random.normal(kk, (B, Tk, D), dtype=jnp.float32)
    params = init_params(kp)

    out = mult_forward(sequence_q, sequence_k, params)
    out = jax.block_until_ready(out)
    assert out.shape == (B, Tq, D), out.shape
    assert bool(jnp.all(jnp.isfinite(out)))
    print("KERNEL_OK")
</pallas_src>

<mosaic_0001>
module attributes {stable_mosaic.version = 11 : i64} {
  func.func @_mult_fused_kernel(%arg0: i32, %arg1: memref<8x32xf32, #tpu.memory_space<vmem>>, %arg2: memref<12x32xf32, #tpu.memory_space<vmem>>, %arg3: memref<2x8x32xf32, #tpu.memory_space<vmem>>, %arg4: memref<2x12x32xf32, #tpu.memory_space<vmem>>, %arg5: memref<2x32x256xf32, #tpu.memory_space<vmem>>, %arg6: memref<2x128x32xf32, #tpu.memory_space<vmem>>, %arg7: memref<2x8x128xf32, #tpu.memory_space<vmem>>, %arg8: memref<8x32xf32, #tpu.memory_space<vmem>>, %arg9: memref<2x8x32xf32, #tpu.memory_space<vmem>>) attributes {dimension_semantics = [#tpu.dimension_semantics<parallel>], iteration_bounds = array<i64: 1>, scalar_prefetch = 0 : i64, scratch_operands = 0 : i64, tpu.core_type = #tpu.core_type<tc>, window_params = [{pipeline_mode = #tpu.pipeline_mode<synchronous>, transform_indices = @transform_0, window_bounds = array<i64: 8, 32>}, {pipeline_mode = #tpu.pipeline_mode<synchronous>, transform_indices = @transform_1, window_bounds = array<i64: 12, 32>}, {transform_indices = @transform_2, window_bounds = array<i64: 2, 8, 32>}, {transform_indices = @transform_3, window_bounds = array<i64: 2, 12, 32>}, {pipeline_mode = #tpu.pipeline_mode<synchronous>, transform_indices = @transform_4, window_bounds = array<i64: 2, 32, 256>}, {pipeline_mode = #tpu.pipeline_mode<synchronous>, transform_indices = @transform_5, window_bounds = array<i64: 2, 128, 32>}, {pipeline_mode = #tpu.pipeline_mode<synchronous>, transform_indices = @transform_6, window_bounds = array<i64: 2, 8, 128>}, {pipeline_mode = #tpu.pipeline_mode<synchronous>, transform_indices = @transform_7, window_bounds = array<i64: 8, 32>}, {transform_indices = @transform_8, window_bounds = array<i64: 2, 8, 32>}]} {
    %c0 = arith.constant 0 : index
    %c0_0 = arith.constant 0 : index
    %c0_1 = arith.constant 0 : index
    %0 = vector.load %arg3[%c0, %c0_0, %c0_1] : memref<2x8x32xf32, #tpu.memory_space<vmem>>, vector<2x8x32xf32>
    %cst = arith.constant 5.65685415 : f32
    %1 = vector.broadcast %cst : f32 to vector<2x8x32xf32>
    %2 = arith.mulf %1, %0 : vector<2x8x32xf32>
    %c0_2 = arith.constant 0 : index
    %c0_3 = arith.constant 0 : index
    %3 = vector.load %arg1[%c0_2, %c0_3] : memref<8x32xf32, #tpu.memory_space<vmem>>, vector<8x32xf32>
    %4 = vector.shape_cast %3 : vector<8x32xf32> to vector<1x8x32xf32>
    %5 = vector.broadcast %4 : vector<1x8x32xf32> to vector<2x8x32xf32>
    %6 = arith.addf %2, %5 : vector<2x8x32xf32>
    %7 = vector.shape_cast %6 : vector<2x8x32xf32> to vector<16x32xf32>
    %c0_4 = arith.constant 0 : index
    %c0_5 = arith.constant 0 : index
    %c0_6 = arith.constant 0 : index
    %8 = vector.load %arg4[%c0_4, %c0_5, %c0_6] : memref<2x12x32xf32, #tpu.memory_space<vmem>>, vector<2x12x32xf32>
    %cst_7 = arith.constant 5.65685415 : f32
    %9 = vector.broadcast %cst_7 : f32 to vector<2x12x32xf32>
    %10 = arith.mulf %9, %8 : vector<2x12x32xf32>
    %c0_8 = arith.constant 0 : index
    %c0_9 = arith.constant 0 : index
    %11 = vector.load %arg2[%c0_8, %c0_9] : memref<12x32xf32, #tpu.memory_space<vmem>>, vector<12x32xf32>
    %12 = vector.shape_cast %11 : vector<12x32xf32> to vector<1x12x32xf32>
    %13 = vector.broadcast %12 : vector<1x12x32xf32> to vector<2x12x32xf32>
    %14 = arith.addf %10, %13 : vector<2x12x32xf32>
    %15 = vector.shape_cast %14 : vector<2x12x32xf32> to vector<24x32xf32>
    %16 = tpu.iota {dimensions = array<i32: 0>} : vector<8x12xi32>
    %17 = tpu.iota {dimensions = array<i32: 1>} : vector<8x12xi32>
    %18 = arith.subi %17, %16 : vector<8x12xi32>
    %c5_i32 = arith.constant 5 : i32
    %19 = vector.broadcast %c5_i32 : i32 to vector<8x12xi32>
    %20 = arith.cmpi sge, %18, %19 : vector<8x12xi32>
    %cst_10 = arith.constant -1.000000e+30 : f32
    %cst_11 = arith.constant 0.000000e+00 : f32
    %21 = vector.broadcast %cst_10 : f32 to vector<8x12xf32>
    %22 = vector.broadcast %cst_11 : f32 to vector<8x12xf32>
    %23 = arith.select %20, %21, %22 : vector<8x12xi1>, vector<8x12xf32>
    %c0_12 = arith.constant 0 : index
    %c0_13 = arith.constant 0 : index
    %c0_14 = arith.constant 0 : index
    %24 = vector.load %arg7[%c0_12, %c0_13, %c0_14] : memref<2x8x128xf32, #tpu.memory_space<vmem>>, vector<1x1x32xf32>
    %25 = vector.shape_cast %24 : vector<1x1x32xf32> to vector<1x32xf32>
    %c0_15 = arith.constant 0 : index
    %c1 = arith.constant 1 : index
    %c0_16 = arith.constant 0 : index
    %26 = vector.load %arg7[%c0_15, %c1, %c0_16] : memref<2x8x128xf32, #tpu.memory_space<vmem>>, vector<1x1x32xf32>
    %27 = vector.shape_cast %26 : vector<1x1x32xf32> to vector<1x32xf32>
    %c0_17 = arith.constant 0 : index
    %c2 = arith.constant 2 : index
    %c0_18 = arith.constant 0 : index
    %28 = vector.load %arg7[%c0_17, %c2, %c0_18] : memref<2x8x128xf32, #tpu.memory_space<vmem>>, vector<1x1x96xf32>
    %29 = vector.shape_cast %28 : vector<1x1x96xf32> to vector<1x96xf32>
    %c0_19 = arith.constant 0 : index
    %c3 = arith.constant 3 : index
    %c0_20 = arith.constant 0 : index
    %30 = vector.load %arg7[%c0_19, %c3, %c0_20] : memref<2x8x128xf32, #tpu.memory_space<vmem>>, vector<1x1x32xf32>
    %31 = vector.shape_cast %30 : vector<1x1x32xf32> to vector<1x32xf32>
    %c0_21 = arith.constant 0 : index
    %c4 = arith.constant 4 : index
    %c0_22 = arith.constant 0 : index
    %32 = vector.load %arg7[%c0_21, %c4, %c0_22] : memref<2x8x128xf32, #tpu.memory_space<vmem>>, vector<1x1x32xf32>
    %33 = vector.shape_cast %32 : vector<1x1x32xf32> to vector<1x32xf32>
    %c0_23 = arith.constant 0 : index
    %c5 = arith.constant 5 : index
    %c0_24 = arith.constant 0 : index
    %34 = vector.load %arg7[%c0_23, %c5, %c0_24] : memref<2x8x128xf32, #tpu.memory_space<vmem>>, vector<1x1x32xf32>
    %35 = vector.shape_cast %34 : vector<1x1x32xf32> to vector<1x32xf32>
    %c0_25 = arith.constant 0 : index
    %c6 = arith.constant 6 : index
    %c0_26 = arith.constant 0 : index
    %36 = vector.load %arg7[%c0_25, %c6, %c0_26] : memref<2x8x128xf32, #tpu.memory_space<vmem>>, vector<1x1x128xf32>
    %37 = vector.shape_cast %36 : vector<1x1x128xf32> to vector<1x128xf32>
    %c0_27 = arith.constant 0 : index
    %c7 = arith.constant 7 : index
    %c0_28 = arith.constant 0 : index
    %38 = vector.load %arg7[%c0_27, %c7, %c0_28] : memref<2x8x128xf32, #tpu.memory_space<vmem>>, vector<1x1x32xf32>
    %39 = vector.shape_cast %38 : vector<1x1x32xf32> to vector<1x32xf32>
    %40 = tpu.concatenate %7, %15 in 0 : vector<16x32xf32>, vector<24x32xf32> -> vector<40x32xf32>
    %cst_29 = arith.constant dense<0.000000e+00> : vector<40xf32>
    %41 = vector.multi_reduction <add>, %40, %cst_29 [1] : vector<40x32xf32> to vector<40xf32>
    %42 = vector.shape_cast %41 : vector<40xf32> to vector<40x1xf32>
    %cst_30 = arith.constant 3.200000e+01 : f32
    %43 = vector.broadcast %cst_30 : f32 to vector<40x1xf32>
    %44 = arith.divf %42, %43 : vector<40x1xf32>
    %45 = vector.broadcast %44 : vector<40x1xf32> to vector<40x32xf32>
    %46 = arith.subf %40, %45 : vector<40x32xf32>
    %47 = arith.mulf %46, %46 : vector<40x32xf32>
    %cst_31 = arith.constant dense<0.000000e+00> : vector<40xf32>
    %48 = vector.multi_reduction <add>, %47, %cst_31 [1] : vector<40x32xf32> to vector<40xf32>
    %49 = vector.shape_cast %48 : vector<40xf32> to vector<40x1xf32>
    %cst_32 = arith.constant 3.200000e+01 : f32
    %50 = vector.broadcast %cst_32 : f32 to vector<40x1xf32>
    %51 = arith.divf %49, %50 : vector<40x1xf32>
    %52 = vector.broadcast %44 : vector<40x1xf32> to vector<40x32xf32>
    %53 = arith.subf %40, %52 : vector<40x32xf32>
    %cst_33 = arith.constant 9.99999974E-6 : f32
    %54 = vector.broadcast %cst_33 : f32 to vector<40x1xf32>
    %55 = arith.addf %51, %54 : vector<40x1xf32>
    %56 = math.rsqrt %55 : vector<40x1xf32>
    %57 = vector.broadcast %56 : vector<40x1xf32> to vector<40x32xf32>
    %58 = arith.mulf %53, %57 : vector<40x32xf32>
    %59 = vector.broadcast %25 : vector<1x32xf32> to vector<40x32xf32>
    %60 = arith.mulf %58, %59 : vector<40x32xf32>
    %61 = vector.broadcast %27 : vector<1x32xf32> to vector<40x32xf32>
    %62 = arith.addf %60, %61 : vector<40x32xf32>
    %c0_34 = arith.constant 0 : index
    %c0_35 = arith.constant 0 : index
    %c0_36 = arith.constant 0 : index
    %63 = vector.load %arg5[%c0_34, %c0_35, %c0_36] : memref<2x32x256xf32, #tpu.memory_space<vmem>>, vector<1x32x96xf32>
    %64 = vector.shape_cast %63 : vector<1x32x96xf32> to vector<32x96xf32>
    %cst_37 = arith.constant dense<0.000000e+00> : vector<40x96xf32>
    %65 = tpu.matmul %62, %64, %cst_37 {dimension_numbers = #tpu.dot_dimension_numbers<[1], [0], [0], [1], [0, 0, 1, 1], [], []>} : vector<40x32xf32>, vector<32x96xf32>, vector<40x96xf32> -> vector<40x96xf32>
    %66 = vector.broadcast %29 : vector<1x96xf32> to vector<40x96xf32>
    %67 = arith.addf %65, %66 : vector<40x96xf32>
    %68 = vector.extract_strided_slice %67 {offsets = [0, 0], sizes = [16, 32], strides = [1, 1]} : vector<40x96xf32> to vector<16x32xf32>
    %cst_38 = arith.constant 0.353553385 : f32
    %69 = vector.broadcast %cst_38 : f32 to vector<16x32xf32>
    %70 = arith.mulf %68, %69 : vector<16x32xf32>
    %71 = vector.shape_cast %70 : vector<16x32xf32> to vector<2x8x32xf32>
    %72 = vector.extract_strided_slice %67 {offsets = [16, 32], sizes = [24, 32], strides = [1, 1]} : vector<40x96xf32> to vector<24x32xf32>
    %73 = vector.shape_cast %72 : vector<24x32xf32> to vector<2x12x32xf32>
    %74 = vector.extract_strided_slice %67 {offsets = [16, 64], sizes = [24, 32], strides = [1, 1]} : vector<40x96xf32> to vector<24x32xf32>
    %75 = vector.shape_cast %74 : vector<24x32xf32> to vector<2x12x32xf32>
    %c0_39 = arith.constant 0 : index
    %c0_40 = arith.constant 0 : index
    %c96 = arith.constant 96 : index
    %76 = vector.load %arg5[%c0_39, %c0_40, %c96] : memref<2x32x256xf32, #tpu.memory_space<vmem>>, vector<1x32x32xf32>
    %77 = vector.shape_cast %76 : vector<1x32x32xf32> to vector<32x32xf32>
    %cst_41 = arith.constant 0.000000e+00 : f32
    %78 = vector.broadcast %cst_41 : f32 to vector<16x32xf32>
    %79 = vector.extract_strided_slice %71 {offsets = [0, 0, 0], sizes = [2, 8, 8], strides = [1, 1, 1]} : vector<2x8x32xf32> to vector<2x8x8xf32>
    %80 = vector.extract_strided_slice %73 {offsets = [0, 0, 0], sizes = [2, 12, 8], strides = [1, 1, 1]} : vector<2x12x32xf32> to vector<2x12x8xf32>
    "tpu.trace_start"() <{level = 10 : i32, message = "bqd,bkd->bqk"}> : () -> ()
    %cst_42 = arith.constant dense<0.000000e+00> : vector<2x8x12xf32>
    %81 = tpu.matmul %79, %80, %cst_42 {dimension_numbers = #tpu.dot_dimension_numbers<[2], [2], [1], [1], [0, 0, 0, 1, 1, 1], [0], [0]>} : vector<2x8x8xf32>, vector<2x12x8xf32>, vector<2x8x12xf32> -> vector<2x8x12xf32>
    "tpu.trace_stop"() : () -> ()
    %82 = vector.shape_cast %23 : vector<8x12xf32> to vector<1x8x12xf32>
    %83 = vector.broadcast %82 : vector<1x8x12xf32> to vector<2x8x12xf32>
    %84 = arith.addf %81, %83 : vector<2x8x12xf32>
    %cst_43 = arith.constant dense<0xFF800000> : vector<2x8xf32>
    %85 = vector.multi_reduction <maximumf>, %84, %cst_43 [2] : vector<2x8x12xf32> to vector<2x8xf32>
    %86 = vector.shape_cast %85 : vector<2x8xf32> to vector<2x8x1xf32>
    %87 = vector.broadcast %86 : vector<2x8x1xf32> to vector<2x8x12xf32>
    %88 = arith.subf %84, %87 : vector<2x8x12xf32>
    %89 = math.exp %88 : vector<2x8x12xf32>
    %cst_44 = arith.constant dense<0.000000e+00> : vector<2x8xf32>
    %90 = vector.multi_reduction <add>, %89, %cst_44 [2] : vector<2x8x12xf32> to vector<2x8xf32>
    %91 = vector.shape_cast %90 : vector<2x8xf32> to vector<2x8x1xf32>
    %92 = tpu.reciprocal %91 {approx = true} : vector<2x8x1xf32> -> vector<2x8x1xf32>
    %93 = vector.broadcast %92 : vector<2x8x1xf32> to vector<2x8x12xf32>
    %94 = arith.mulf %89, %93 : vector<2x8x12xf32>
    %95 = vector.extract_strided_slice %75 {offsets = [0, 0, 0], sizes = [2, 12, 8], strides = [1, 1, 1]} : vector<2x12x32xf32> to vector<2x12x8xf32>
    "tpu.trace_start"() <{level = 10 : i32, message = "bqk,bkd->bqd"}> : () -> ()
    %cst_45 = arith.constant dense<0.000000e+00> : vector<2x8x8xf32>
    %96 = tpu.matmul %94, %95, %cst_45 {dimension_numbers = #tpu.dot_dimension_numbers<[2], [1], [1], [2], [0, 0, 0, 1, 1, 2], [0], [0]>} : vector<2x8x12xf32>, vector<2x12x8xf32>, vector<2x8x8xf32> -> vector<2x8x8xf32>
    "tpu.trace_stop"() : () -> ()
    %97 = vector.shape_cast %96 : vector<2x8x8xf32> to vector<16x8xf32>
    %98 = vector.extract_strided_slice %77 {offsets = [0, 0], sizes = [8, 32], strides = [1, 1]} : vector<32x32xf32> to vector<8x32xf32>
    %cst_46 = arith.constant dense<0.000000e+00> : vector<16x32xf32>
    %99 = tpu.matmul %97, %98, %cst_46 {dimension_numbers = #tpu.dot_dimension_numbers<[1], [0], [0], [1], [0, 0, 1, 1], [], []>} : vector<16x8xf32>, vector<8x32xf32>, vector<16x32xf32> -> vector<16x32xf32>
    %100 = arith.addf %78, %99 : vector<16x32xf32>
    %101 = vector.extract_strided_slice %71 {offsets = [0, 0, 8], sizes = [2, 8, 8], strides = [1, 1, 1]} : vector<2x8x32xf32> to vector<2x8x8xf32>
    %102 = vector.extract_strided_slice %73 {offsets = [0, 0, 8], sizes = [2, 12, 8], strides = [1, 1, 1]} : vector<2x12x32xf32> to vector<2x12x8xf32>
    "tpu.trace_start"() <{level = 10 : i32, message = "bqd,bkd->bqk"}> : () -> ()
    %cst_47 = arith.constant dense<0.000000e+00> : vector<2x8x12xf32>
    %103 = tpu.matmul %101, %102, %cst_47 {dimension_numbers = #tpu.dot_dimension_numbers<[2], [2], [1], [1], [0, 0, 0, 1, 1, 1], [0], [0]>} : vector<2x8x8xf32>, vector<2x12x8xf32>, vector<2x8x12xf32> -> vector<2x8x12xf32>
    "tpu.trace_stop"() : () -> ()
    %104 = vector.shape_cast %23 : vector<8x12xf32> to vector<1x8x12xf32>
    %105 = vector.broadcast %104 : vector<1x8x12xf32> to vector<2x8x12xf32>
    %106 = arith.addf %103, %105 : vector<2x8x12xf32>
    %cst_48 = arith.constant dense<0xFF800000> : vector<2x8xf32>
    %107 = vector.multi_reduction <maximumf>, %106, %cst_48 [2] : vector<2x8x12xf32> to vector<2x8xf32>
    %108 = vector.shape_cast %107 : vector<2x8xf32> to vector<2x8x1xf32>
    %109 = vector.broadcast %108 : vector<2x8x1xf32> to vector<2x8x12xf32>
    %110 = arith.subf %106, %109 : vector<2x8x12xf32>
    %111 = math.exp %110 : vector<2x8x12xf32>
    %cst_49 = arith.constant dense<0.000000e+00> : vector<2x8xf32>
    %112 = vector.multi_reduction <add>, %111, %cst_49 [2] : vector<2x8x12xf32> to vector<2x8xf32>
    %113 = vector.shape_cast %112 : vector<2x8xf32> to vector<2x8x1xf32>
    %114 = tpu.reciprocal %113 {approx = true} : vector<2x8x1xf32> -> vector<2x8x1xf32>
    %115 = vector.broadcast %114 : vector<2x8x1xf32> to vector<2x8x12xf32>
    %116 = arith.mulf %111, %115 : vector<2x8x12xf32>
    %117 = vector.extract_strided_slice %75 {offsets = [0, 0, 8], sizes = [2, 12, 8], strides = [1, 1, 1]} : vector<2x12x32xf32> to vector<2x12x8xf32>
    "tpu.trace_start"() <{level = 10 : i32, message = "bqk,bkd->bqd"}> : () -> ()
    %cst_50 = arith.constant dense<0.000000e+00> : vector<2x8x8xf32>
    %118 = tpu.matmul %116, %117, %cst_50 {dimension_numbers = #tpu.dot_dimension_numbers<[2], [1], [1], [2], [0, 0, 0, 1, 1, 2], [0], [0]>} : vector<2x8x12xf32>, vector<2x12x8xf32>, vector<2x8x8xf32> -> vector<2x8x8xf32>
    "tpu.trace_stop"() : () -> ()
    %119 = vector.shape_cast %118 : vector<2x8x8xf32> to vector<16x8xf32>
    %120 = vector.extract_strided_slice %77 {offsets = [8, 0], sizes = [8, 32], strides = [1, 1]} : vector<32x32xf32> to vector<8x32xf32>
    %cst_51 = arith.constant dense<0.000000e+00> : vector<16x32xf32>
    %121 = tpu.matmul %119, %120, %cst_51 {dimension_numbers = #tpu.dot_dimension_numbers<[1], [0], [0], [1], [0, 0, 1, 1], [], []>} : vector<16x8xf32>, vector<8x32xf32>, vector<16x32xf32> -> vector<16x32xf32>
    %122 = arith.addf %100, %121 : vector<16x32xf32>
    %123 = vector.extract_strided_slice %71 {offsets = [0, 0, 16], sizes = [2, 8, 8], strides = [1, 1, 1]} : vector<2x8x32xf32> to vector<2x8x8xf32>
    %124 = vector.extract_strided_slice %73 {offsets = [0, 0, 16], sizes = [2, 12, 8], strides = [1, 1, 1]} : vector<2x12x32xf32> to vector<2x12x8xf32>
    "tpu.trace_start"() <{level = 10 : i32, message = "bqd,bkd->bqk"}> : () -> ()
    %cst_52 = arith.constant dense<0.000000e+00> : vector<2x8x12xf32>
    %125 = tpu.matmul %123, %124, %cst_52 {dimension_numbers = #tpu.dot_dimension_numbers<[2], [2], [1], [1], [0, 0, 0, 1, 1, 1], [0], [0]>} : vector<2x8x8xf32>, vector<2x12x8xf32>, vector<2x8x12xf32> -> vector<2x8x12xf32>
    "tpu.trace_stop"() : () -> ()
    %126 = vector.shape_cast %23 : vector<8x12xf32> to vector<1x8x12xf32>
    %127 = vector.broadcast %126 : vector<1x8x12xf32> to vector<2x8x12xf32>
    %128 = arith.addf %125, %127 : vector<2x8x12xf32>
    %cst_53 = arith.constant dense<0xFF800000> : vector<2x8xf32>
    %129 = vector.multi_reduction <maximumf>, %128, %cst_53 [2] : vector<2x8x12xf32> to vector<2x8xf32>
    %130 = vector.shape_cast %129 : vector<2x8xf32> to vector<2x8x1xf32>
    %131 = vector.broadcast %130 : vector<2x8x1xf32> to vector<2x8x12xf32>
    %132 = arith.subf %128, %131 : vector<2x8x12xf32>
    %133 = math.exp %132 : vector<2x8x12xf32>
    %cst_54 = arith.constant dense<0.000000e+00> : vector<2x8xf32>
    %134 = vector.multi_reduction <add>, %133, %cst_54 [2] : vector<2x8x12xf32> to vector<2x8xf32>
    %135 = vector.shape_cast %134 : vector<2x8xf32> to vector<2x8x1xf32>
    %136 = tpu.reciprocal %135 {approx = true} : vector<2x8x1xf32> -> vector<2x8x1xf32>
    %137 = vector.broadcast %136 : vector<2x8x1xf32> to vector<2x8x12xf32>
    %138 = arith.mulf %133, %137 : vector<2x8x12xf32>
    %139 = vector.extract_strided_slice %75 {offsets = [0, 0, 16], sizes = [2, 12, 8], strides = [1, 1, 1]} : vector<2x12x32xf32> to vector<2x12x8xf32>
    "tpu.trace_start"() <{level = 10 : i32, message = "bqk,bkd->bqd"}> : () -> ()
    %cst_55 = arith.constant dense<0.000000e+00> : vector<2x8x8xf32>
    %140 = tpu.matmul %138, %139, %cst_55 {dimension_numbers = #tpu.dot_dimension_numbers<[2], [1], [1], [2], [0, 0, 0, 1, 1, 2], [0], [0]>} : vector<2x8x12xf32>, vector<2x12x8xf32>, vector<2x8x8xf32> -> vector<2x8x8xf32>
    "tpu.trace_stop"() : () -> ()
    %141 = vector.shape_cast %140 : vector<2x8x8xf32> to vector<16x8xf32>
    %142 = vector.extract_strided_slice %77 {offsets = [16, 0], sizes = [8, 32], strides = [1, 1]} : vector<32x32xf32> to vector<8x32xf32>
    %cst_56 = arith.constant dense<0.000000e+00> : vector<16x32xf32>
    %143 = tpu.matmul %141, %142, %cst_56 {dimension_numbers = #tpu.dot_dimension_numbers<[1], [0], [0], [1], [0, 0, 1, 1], [], []>} : vector<16x8xf32>, vector<8x32xf32>, vector<16x32xf32> -> vector<16x32xf32>
    %144 = arith.addf %122, %143 : vector<16x32xf32>
    %145 = vector.extract_strided_slice %71 {offsets = [0, 0, 24], sizes = [2, 8, 8], strides = [1, 1, 1]} : vector<2x8x32xf32> to vector<2x8x8xf32>
    %146 = vector.extract_strided_slice %73 {offsets = [0, 0, 24], sizes = [2, 12, 8], strides = [1, 1, 1]} : vector<2x12x32xf32> to vector<2x12x8xf32>
    "tpu.trace_start"() <{level = 10 : i32, message = "bqd,bkd->bqk"}> : () -> ()
    %cst_57 = arith.constant dense<0.000000e+00> : vector<2x8x12xf32>
    %147 = tpu.matmul %145, %146, %cst_57 {dimension_numbers = #tpu.dot_dimension_numbers<[2], [2], [1], [1], [0, 0, 0, 1, 1, 1], [0], [0]>} : vector<2x8x8xf32>, vector<2x12x8xf32>, vector<2x8x12xf32> -> vector<2x8x12xf32>
    "tpu.trace_stop"() : () -> ()
    %148 = vector.shape_cast %23 : vector<8x12xf32> to vector<1x8x12xf32>
    %149 = vector.broadcast %148 : vector<1x8x12xf32> to vector<2x8x12xf32>
    %150 = arith.addf %147, %149 : vector<2x8x12xf32>
    %cst_58 = arith.constant dense<0xFF800000> : vector<2x8xf32>
    %151 = vector.multi_reduction <maximumf>, %150, %cst_58 [2] : vector<2x8x12xf32> to vector<2x8xf32>
    %152 = vector.shape_cast %151 : vector<2x8xf32> to vector<2x8x1xf32>
    %153 = vector.broadcast %152 : vector<2x8x1xf32> to vector<2x8x12xf32>
    %154 = arith.subf %150, %153 : vector<2x8x12xf32>
    %155 = math.exp %154 : vector<2x8x12xf32>
    %cst_59 = arith.constant dense<0.000000e+00> : vector<2x8xf32>
    %156 = vector.multi_reduction <add>, %155, %cst_59 [2] : vector<2x8x12xf32> to vector<2x8xf32>
    %157 = vector.shape_cast %156 : vector<2x8xf32> to vector<2x8x1xf32>
    %158 = tpu.reciprocal %157 {approx = true} : vector<2x8x1xf32> -> vector<2x8x1xf32>
    %159 = vector.broadcast %158 : vector<2x8x1xf32> to vector<2x8x12xf32>
    %160 = arith.mulf %155, %159 : vector<2x8x12xf32>
    %161 = vector.extract_strided_slice %75 {offsets = [0, 0, 24], sizes = [2, 12, 8], strides = [1, 1, 1]} : vector<2x12x32xf32> to vector<2x12x8xf32>
    "tpu.trace_start"() <{level = 10 : i32, message = "bqk,bkd->bqd"}> : () -> ()
    %cst_60 = arith.constant dense<0.000000e+00> : vector<2x8x8xf32>
    %162 = tpu.matmul %160, %161, %cst_60 {dimension_numbers = #tpu.dot_dimension_numbers<[2], [1], [1], [2], [0, 0, 0, 1, 1, 2], [0], [0]>} : vector<2x8x12xf32>, vector<2x12x8xf32>, vector<2x8x8xf32> -> vector<2x8x8xf32>
    "tpu.trace_stop"() : () -> ()
    %163 = vector.shape_cast %162 : vector<2x8x8xf32> to vector<16x8xf32>
    %164 = vector.extract_strided_slice %77 {offsets = [24, 0], sizes = [8, 32], strides = [1, 1]} : vector<32x32xf32> to vector<8x32xf32>
    %cst_61 = arith.constant dense<0.000000e+00> : vector<16x32xf32>
    %165 = tpu.matmul %163, %164, %cst_61 {dimension_numbers = #tpu.dot_dimension_numbers<[1], [0], [0], [1], [0, 0, 1, 1], [], []>} : vector<16x8xf32>, vector<8x32xf32>, vector<16x32xf32> -> vector<16x32xf32>
    %166 = arith.addf %144, %165 : vector<16x32xf32>
    %167 = arith.addf %7, %166 : vector<16x32xf32>
    %168 = vector.broadcast %31 : vector<1x32xf32> to vector<16x32xf32>
    %169 = arith.addf %167, %168 : vector<16x32xf32>
    %cst_62 = arith.constant dense<0.000000e+00> : vector<16xf32>
    %170 = vector.multi_reduction <add>, %169, %cst_62 [1] : vector<16x32xf32> to vector<16xf32>
    %171 = vector.shape_cast %170 : vector<16xf32> to vector<16x1xf32>
    %cst_63 = arith.constant 3.200000e+01 : f32
    %172 = vector.broadcast %cst_63 : f32 to vector<16x1xf32>
    %173 = arith.divf %171, %172 : vector<16x1xf32>
    %174 = vector.broadcast %173 : vector<16x1xf32> to vector<16x32xf32>
    %175 = arith.subf %169, %174 : vector<16x32xf32>
    %176 = arith.mulf %175, %175 : vector<16x32xf32>
    %cst_64 = arith.constant dense<0.000000e+00> : vector<16xf32>
    %177 = vector.multi_reduction <add>, %176, %cst_64 [1] : vector<16x32xf32> to vector<16xf32>
    %178 = vector.shape_cast %177 : vector<16xf32> to vector<16x1xf32>
    %cst_65 = arith.constant 3.200000e+01 : f32
    %179 = vector.broadcast %cst_65 : f32 to vector<16x1xf32>
    %180 = arith.divf %178, %179 : vector<16x1xf32>
    %181 = vector.broadcast %173 : vector<16x1xf32> to vector<16x32xf32>
    %182 = arith.subf %169, %181 : vector<16x32xf32>
    %cst_66 = arith.constant 9.99999974E-6 : f32
    %183 = vector.broadcast %cst_66 : f32 to vector<16x1xf32>
    %184 = arith.addf %180, %183 : vector<16x1xf32>
    %185 = math.rsqrt %184 : vector<16x1xf32>
    %186 = vector.broadcast %185 : vector<16x1xf32> to vector<16x32xf32>
    %187 = arith.mulf %182, %186 : vector<16x32xf32>
    %188 = vector.broadcast %33 : vector<1x32xf32> to vector<16x32xf32>
    %189 = arith.mulf %187, %188 : vector<16x32xf32>
    %190 = vector.broadcast %35 : vector<1x32xf32> to vector<16x32xf32>
    %191 = arith.addf %189, %190 : vector<16x32xf32>
    %c0_67 = arith.constant 0 : index
    %c0_68 = arith.constant 0 : index
    %c128 = arith.constant 128 : index
    %192 = vector.load %arg5[%c0_67, %c0_68, %c128] : memref<2x32x256xf32, #tpu.memory_space<vmem>>, vector<1x32x128xf32>
    %193 = vector.shape_cast %192 : vector<1x32x128xf32> to vector<32x128xf32>
    %cst_69 = arith.constant dense<0.000000e+00> : vector<16x128xf32>
    %194 = tpu.matmul %191, %193, %cst_69 {dimension_numbers = #tpu.dot_dimension_numbers<[1], [0], [0], [1], [0, 0, 1, 1], [], []>} : vector<16x32xf32>, vector<32x128xf32>, vector<16x128xf32> -> vector<16x128xf32>
    %195 = vector.broadcast %37 : vector<1x128xf32> to vector<16x128xf32>
    %196 = arith.addf %194, %195 : vector<16x128xf32>
    %cst_70 = arith.constant 0.000000e+00 : f32
    %197 = vector.broadcast %cst_70 : f32 to vector<16x128xf32>
    %198 = arith.maximumf %196, %197 : vector<16x128xf32>
    %c0_71 = arith.constant 0 : index
    %c0_72 = arith.constant 0 : index
    %c0_73 = arith.constant 0 : index
    %199 = vector.load %arg6[%c0_71, %c0_72, %c0_73] : memref<2x128x32xf32, #tpu.memory_space<vmem>>, vector<1x128x32xf32>
    %200 = vector.shape_cast %199 : vector<1x128x32xf32> to vector<128x32xf32>
    %cst_74 = arith.constant dense<0.000000e+00> : vector<16x32xf32>
    %201 = tpu.matmul %198, %200, %cst_74 {dimension_numbers = #tpu.dot_dimension_numbers<[1], [0], [0], [1], [0, 0, 1, 1], [], []>} : vector<16x128xf32>, vector<128x32xf32>, vector<16x32xf32> -> vector<16x32xf32>
    %202 = vector.broadcast %39 : vector<1x32xf32> to vector<16x32xf32>
    %203 = arith.addf %201, %202 : vector<16x32xf32>
    %204 = arith.addf %169, %203 : vector<16x32xf32>
    %c1_75 = arith.constant 1 : index
    %c0_76 = arith.constant 0 : index
    %c0_77 = arith.constant 0 : index
    %205 = vector.load %arg7[%c1_75, %c0_76, %c0_77] : memref<2x8x128xf32, #tpu.memory_space<vmem>>, vector<1x1x32xf32>
    %206 = vector.shape_cast %205 : vector<1x1x32xf32> to vector<1x32xf32>
    %c1_78 = arith.constant 1 : index
    %c1_79 = arith.constant 1 : index
    %c0_80 = arith.constant 0 : index
    %207 = vector.load %arg7[%c1_78, %c1_79, %c0_80] : memref<2x8x128xf32, #tpu.memory_space<vmem>>, vector<1x1x32xf32>
    %208 = vector.shape_cast %207 : vector<1x1x32xf32> to vector<1x32xf32>
    %c1_81 = arith.constant 1 : index
    %c2_82 = arith.constant 2 : index
    %c0_83 = arith.constant 0 : index
    %209 = vector.load %arg7[%c1_81, %c2_82, %c0_83] : memref<2x8x128xf32, #tpu.memory_space<vmem>>, vector<1x1x96xf32>
    %210 = vector.shape_cast %209 : vector<1x1x96xf32> to vector<1x96xf32>
    %c1_84 = arith.constant 1 : index
    %c3_85 = arith.constant 3 : index
    %c0_86 = arith.constant 0 : index
    %211 = vector.load %arg7[%c1_84, %c3_85, %c0_86] : memref<2x8x128xf32, #tpu.memory_space<vmem>>, vector<1x1x32xf32>
    %212 = vector.shape_cast %211 : vector<1x1x32xf32> to vector<1x32xf32>
    %c1_87 = arith.constant 1 : index
    %c4_88 = arith.constant 4 : index
    %c0_89 = arith.constant 0 : index
    %213 = vector.load %arg7[%c1_87, %c4_88, %c0_89] : memref<2x8x128xf32, #tpu.memory_space<vmem>>, vector<1x1x32xf32>
    %214 = vector.shape_cast %213 : vector<1x1x32xf32> to vector<1x32xf32>
    %c1_90 = arith.constant 1 : index
    %c5_91 = arith.constant 5 : index
    %c0_92 = arith.constant 0 : index
    %215 = vector.load %arg7[%c1_90, %c5_91, %c0_92] : memref<2x8x128xf32, #tpu.memory_space<vmem>>, vector<1x1x32xf32>
    %216 = vector.shape_cast %215 : vector<1x1x32xf32> to vector<1x32xf32>
    %c1_93 = arith.constant 1 : index
    %c6_94 = arith.constant 6 : index
    %c0_95 = arith.constant 0 : index
    %217 = vector.load %arg7[%c1_93, %c6_94, %c0_95] : memref<2x8x128xf32, #tpu.memory_space<vmem>>, vector<1x1x128xf32>
    %218 = vector.shape_cast %217 : vector<1x1x128xf32> to vector<1x128xf32>
    %c1_96 = arith.constant 1 : index
    %c7_97 = arith.constant 7 : index
    %c0_98 = arith.constant 0 : index
    %219 = vector.load %arg7[%c1_96, %c7_97, %c0_98] : memref<2x8x128xf32, #tpu.memory_space<vmem>>, vector<1x1x32xf32>
    %220 = vector.shape_cast %219 : vector<1x1x32xf32> to vector<1x32xf32>
    %221 = tpu.concatenate %204, %15 in 0 : vector<16x32xf32>, vector<24x32xf32> -> vector<40x32xf32>
    %cst_99 = arith.constant dense<0.000000e+00> : vector<40xf32>
    %222 = vector.multi_reduction <add>, %221, %cst_99 [1] : vector<40x32xf32> to vector<40xf32>
    %223 = vector.shape_cast %222 : vector<40xf32> to vector<40x1xf32>
    %cst_100 = arith.constant 3.200000e+01 : f32
    %224 = vector.broadcast %cst_100 : f32 to vector<40x1xf32>
    %225 = arith.divf %223, %224 : vector<40x1xf32>
    %226 = vector.broadcast %225 : vector<40x1xf32> to vector<40x32xf32>
    %227 = arith.subf %221, %226 : vector<40x32xf32>
    %228 = arith.mulf %227, %227 : vector<40x32xf32>
    %cst_101 = arith.constant dense<0.000000e+00> : vector<40xf32>
    %229 = vector.multi_reduction <add>, %228, %cst_101 [1] : vector<40x32xf32> to vector<40xf32>
    %230 = vector.shape_cast %229 : vector<40xf32> to vector<40x1xf32>
    %cst_102 = arith.constant 3.200000e+01 : f32
    %231 = vector.broadcast %cst_102 : f32 to vector<40x1xf32>
    %232 = arith.divf %230, %231 : vector<40x1xf32>
    %233 = vector.broadcast %225 : vector<40x1xf32> to vector<40x32xf32>
    %234 = arith.subf %221, %233 : vector<40x32xf32>
    %cst_103 = arith.constant 9.99999974E-6 : f32
    %235 = vector.broadcast %cst_103 : f32 to vector<40x1xf32>
    %236 = arith.addf %232, %235 : vector<40x1xf32>
    %237 = math.rsqrt %236 : vector<40x1xf32>
    %238 = vector.broadcast %237 : vector<40x1xf32> to vector<40x32xf32>
    %239 = arith.mulf %234, %238 : vector<40x32xf32>
    %240 = vector.broadcast %206 : vector<1x32xf32> to vector<40x32xf32>
    %241 = arith.mulf %239, %240 : vector<40x32xf32>
    %242 = vector.broadcast %208 : vector<1x32xf32> to vector<40x32xf32>
    %243 = arith.addf %241, %242 : vector<40x32xf32>
    %c1_104 = arith.constant 1 : index
    %c0_105 = arith.constant 0 : index
    %c0_106 = arith.constant 0 : index
    %244 = vector.load %arg5[%c1_104, %c0_105, %c0_106] : memref<2x32x256xf32, #tpu.memory_space<vmem>>, vector<1x32x96xf32>
    %245 = vector.shape_cast %244 : vector<1x32x96xf32> to vector<32x96xf32>
    %cst_107 = arith.constant dense<0.000000e+00> : vector<40x96xf32>
    %246 = tpu.matmul %243, %245, %cst_107 {dimension_numbers = #tpu.dot_dimension_numbers<[1], [0], [0], [1], [0, 0, 1, 1], [], []>} : vector<40x32xf32>, vector<32x96xf32>, vector<40x96xf32> -> vector<40x96xf32>
    %247 = vector.broadcast %210 : vector<1x96xf32> to vector<40x96xf32>
    %248 = arith.addf %246, %247 : vector<40x96xf32>
    %249 = vector.extract_strided_slice %248 {offsets = [0, 0], sizes = [16, 32], strides = [1, 1]} : vector<40x96xf32> to vector<16x32xf32>
    %cst_108 = arith.constant 0.353553385 : f32
    %250 = vector.broadcast %cst_108 : f32 to vector<16x32xf32>
    %251 = arith.mulf %249, %250 : vector<16x32xf32>
    %252 = vector.shape_cast %251 : vector<16x32xf32> to vector<2x8x32xf32>
    %253 = vector.extract_strided_slice %248 {offsets = [16, 32], sizes = [24, 32], strides = [1, 1]} : vector<40x96xf32> to vector<24x32xf32>
    %254 = vector.shape_cast %253 : vector<24x32xf32> to vector<2x12x32xf32>
    %255 = vector.extract_strided_slice %248 {offsets = [16, 64], sizes = [24, 32], strides = [1, 1]} : vector<40x96xf32> to vector<24x32xf32>
    %256 = vector.shape_cast %255 : vector<24x32xf32> to vector<2x12x32xf32>
    %c1_109 = arith.constant 1 : index
    %c0_110 = arith.constant 0 : index
    %c96_111 = arith.constant 96 : index
    %257 = vector.load %arg5[%c1_109, %c0_110, %c96_111] : memref<2x32x256xf32, #tpu.memory_space<vmem>>, vector<1x32x32xf32>
    %258 = vector.shape_cast %257 : vector<1x32x32xf32> to vector<32x32xf32>
    %cst_112 = arith.constant 0.000000e+00 : f32
    %259 = vector.broadcast %cst_112 : f32 to vector<16x32xf32>
    %260 = vector.extract_strided_slice %252 {offsets = [0, 0, 0], sizes = [2, 8, 8], strides = [1, 1, 1]} : vector<2x8x32xf32> to vector<2x8x8xf32>
    %261 = vector.extract_strided_slice %254 {offsets = [0, 0, 0], sizes = [2, 12, 8], strides = [1, 1, 1]} : vector<2x12x32xf32> to vector<2x12x8xf32>
    "tpu.trace_start"() <{level = 10 : i32, message = "bqd,bkd->bqk"}> : () -> ()
    %cst_113 = arith.constant dense<0.000000e+00> : vector<2x8x12xf32>
    %262 = tpu.matmul %260, %261, %cst_113 {dimension_numbers = #tpu.dot_dimension_numbers<[2], [2], [1], [1], [0, 0, 0, 1, 1, 1], [0], [0]>} : vector<2x8x8xf32>, vector<2x12x8xf32>, vector<2x8x12xf32> -> vector<2x8x12xf32>
    "tpu.trace_stop"() : () -> ()
    %263 = vector.shape_cast %23 : vector<8x12xf32> to vector<1x8x12xf32>
    %264 = vector.broadcast %263 : vector<1x8x12xf32> to vector<2x8x12xf32>
    %265 = arith.addf %262, %264 : vector<2x8x12xf32>
    %cst_114 = arith.constant dense<0xFF800000> : vector<2x8xf32>
    %266 = vector.multi_reduction <maximumf>, %265, %cst_114 [2] : vector<2x8x12xf32> to vector<2x8xf32>
    %267 = vector.shape_cast %266 : vector<2x8xf32> to vector<2x8x1xf32>
    %268 = vector.broadcast %267 : vector<2x8x1xf32> to vector<2x8x12xf32>
    %269 = arith.subf %265, %268 : vector<2x8x12xf32>
    %270 = math.exp %269 : vector<2x8x12xf32>
    %cst_115 = arith.constant dense<0.000000e+00> : vector<2x8xf32>
    %271 = vector.multi_reduction <add>, %270, %cst_115 [2] : vector<2x8x12xf32> to vector<2x8xf32>
    %272 = vector.shape_cast %271 : vector<2x8xf32> to vector<2x8x1xf32>
    %273 = tpu.reciprocal %272 {approx = true} : vector<2x8x1xf32> -> vector<2x8x1xf32>
    %274 = vector.broadcast %273 : vector<2x8x1xf32> to vector<2x8x12xf32>
    %275 = arith.mulf %270, %274 : vector<2x8x12xf32>
    %276 = vector.extract_strided_slice %256 {offsets = [0, 0, 0], sizes = [2, 12, 8], strides = [1, 1, 1]} : vector<2x12x32xf32> to vector<2x12x8xf32>
    "tpu.trace_start"() <{level = 10 : i32, message = "bqk,bkd->bqd"}> : () -> ()
    %cst_116 = arith.constant dense<0.000000e+00> : vector<2x8x8xf32>
    %277 = tpu.matmul %275, %276, %cst_116 {dimension_numbers = #tpu.dot_dimension_numbers<[2], [1], [1], [2], [0, 0, 0, 1, 1, 2], [0], [0]>} : vector<2x8x12xf32>, vector<2x12x8xf32>, vector<2x8x8xf32> -> vector<2x8x8xf32>
    "tpu.trace_stop"() : () -> ()
    %278 = vector.shape_cast %277 : vector<2x8x8xf32> to vector<16x8xf32>
    %279 = vector.extract_strided_slice %258 {offsets = [0, 0], sizes = [8, 32], strides = [1, 1]} : vector<32x32xf32> to vector<8x32xf32>
    %cst_117 = arith.constant dense<0.000000e+00> : vector<16x32xf32>
    %280 = tpu.matmul %278, %279, %cst_117 {dimension_numbers = #tpu.dot_dimension_numbers<[1], [0], [0], [1], [0, 0, 1, 1], [], []>} : vector<16x8xf32>, vector<8x32xf32>, vector<16x32xf32> -> vector<16x32xf32>
    %281 = arith.addf %259, %280 : vector<16x32xf32>
    %282 = vector.extract_strided_slice %252 {offsets = [0, 0, 8], sizes = [2, 8, 8], strides = [1, 1, 1]} : vector<2x8x32xf32> to vector<2x8x8xf32>
    %283 = vector.extract_strided_slice %254 {offsets = [0, 0, 8], sizes = [2, 12, 8], strides = [1, 1, 1]} : vector<2x12x32xf32> to vector<2x12x8xf32>
    "tpu.trace_start"() <{level = 10 : i32, message = "bqd,bkd->bqk"}> : () -> ()
    %cst_118 = arith.constant dense<0.000000e+00> : vector<2x8x12xf32>
    %284 = tpu.matmul %282, %283, %cst_118 {dimension_numbers = #tpu.dot_dimension_numbers<[2], [2], [1], [1], [0, 0, 0, 1, 1, 1], [0], [0]>} : vector<2x8x8xf32>, vector<2x12x8xf32>, vector<2x8x12xf32> -> vector<2x8x12xf32>
    "tpu.trace_stop"() : () -> ()
    %285 = vector.shape_cast %23 : vector<8x12xf32> to vector<1x8x12xf32>
    %286 = vector.broadcast %285 : vector<1x8x12xf32> to vector<2x8x12xf32>
    %287 = arith.addf %284, %286 : vector<2x8x12xf32>
    %cst_119 = arith.constant dense<0xFF800000> : vector<2x8xf32>
    %288 = vector.multi_reduction <maximumf>, %287, %cst_119 [2] : vector<2x8x12xf32> to vector<2x8xf32>
    %289 = vector.shape_cast %288 : vector<2x8xf32> to vector<2x8x1xf32>
    %290 = vector.broadcast %289 : vector<2x8x1xf32> to vector<2x8x12xf32>
    %291 = arith.subf %287, %290 : vector<2x8x12xf32>
    %292 = math.exp %291 : vector<2x8x12xf32>
    %cst_120 = arith.constant dense<0.000000e+00> : vector<2x8xf32>
    %293 = vector.multi_reduction <add>, %292, %cst_120 [2] : vector<2x8x12xf32> to vector<2x8xf32>
    %294 = vector.shape_cast %293 : vector<2x8xf32> to vector<2x8x1xf32>
    %295 = tpu.reciprocal %294 {approx = true} : vector<2x8x1xf32> -> vector<2x8x1xf32>
    %296 = vector.broadcast %295 : vector<2x8x1xf32> to vector<2x8x12xf32>
    %297 = arith.mulf %292, %296 : vector<2x8x12xf32>
    %298 = vector.extract_strided_slice %256 {offsets = [0, 0, 8], sizes = [2, 12, 8], strides = [1, 1, 1]} : vector<2x12x32xf32> to vector<2x12x8xf32>
    "tpu.trace_start"() <{level = 10 : i32, message = "bqk,bkd->bqd"}> : () -> ()
    %cst_121 = arith.constant dense<0.000000e+00> : vector<2x8x8xf32>
    %299 = tpu.matmul %297, %298, %cst_121 {dimension_numbers = #tpu.dot_dimension_numbers<[2], [1], [1], [2], [0, 0, 0, 1, 1, 2], [0], [0]>} : vector<2x8x12xf32>, vector<2x12x8xf32>, vector<2x8x8xf32> -> vector<2x8x8xf32>
    "tpu.trace_stop"() : () -> ()
    %300 = vector.shape_cast %299 : vector<2x8x8xf32> to vector<16x8xf32>
    %301 = vector.extract_strided_slice %258 {offsets = [8, 0], sizes = [8, 32], strides = [1, 1]} : vector<32x32xf32> to vector<8x32xf32>
    %cst_122 = arith.constant dense<0.000000e+00> : vector<16x32xf32>
    %302 = tpu.matmul %300, %301, %cst_122 {dimension_numbers = #tpu.dot_dimension_numbers<[1], [0], [0], [1], [0, 0, 1, 1], [], []>} : vector<16x8xf32>, vector<8x32xf32>, vector<16x32xf32> -> vector<16x32xf32>
    %303 = arith.addf %281, %302 : vector<16x32xf32>
    %304 = vector.extract_strided_slice %252 {offsets = [0, 0, 16], sizes = [2, 8, 8], strides = [1, 1, 1]} : vector<2x8x32xf32> to vector<2x8x8xf32>
    %305 = vector.extract_strided_slice %254 {offsets = [0, 0, 16], sizes = [2, 12, 8], strides = [1, 1, 1]} : vector<2x12x32xf32> to vector<2x12x8xf32>
    "tpu.trace_start"() <{level = 10 : i32, message = "bqd,bkd->bqk"}> : () -> ()
    %cst_123 = arith.constant dense<0.000000e+00> : vector<2x8x12xf32>
    %306 = tpu.matmul %304, %305, %cst_123 {dimension_numbers = #tpu.dot_dimension_numbers<[2], [2], [1], [1], [0, 0, 0, 1, 1, 1], [0], [0]>} : vector<2x8x8xf32>, vector<2x12x8xf32>, vector<2x8x12xf32> -> vector<2x8x12xf32>
    "tpu.trace_stop"() : () -> ()
    %307 = vector.shape_cast %23 : vector<8x12xf32> to vector<1x8x12xf32>
    %308 = vector.broadcast %307 : vector<1x8x12xf32> to vector<2x8x12xf32>
    %309 = arith.addf %306, %308 : vector<2x8x12xf32>
    %cst_124 = arith.constant dense<0xFF800000> : vector<2x8xf32>
    %310 = vector.multi_reduction <maximumf>, %309, %cst_124 [2] : vector<2x8x12xf32> to vector<2x8xf32>
    %311 = vector.shape_cast %310 : vector<2x8xf32> to vector<2x8x1xf32>
    %312 = vector.broadcast %311 : vector<2x8x1xf32> to vector<2x8x12xf32>
    %313 = arith.subf %309, %312 : vector<2x8x12xf32>
    %314 = math.exp %313 : vector<2x8x12xf32>
    %cst_125 = arith.constant dense<0.000000e+00> : vector<2x8xf32>
    %315 = vector.multi_reduction <add>, %314, %cst_125 [2] : vector<2x8x12xf32> to vector<2x8xf32>
    %316 = vector.shape_cast %315 : vector<2x8xf32> to vector<2x8x1xf32>
    %317 = tpu.reciprocal %316 {approx = true} : vector<2x8x1xf32> -> vector<2x8x1xf32>
    %318 = vector.broadcast %317 : vector<2x8x1xf32> to vector<2x8x12xf32>
    %319 = arith.mulf %314, %318 : vector<2x8x12xf32>
    %320 = vector.extract_strided_slice %256 {offsets = [0, 0, 16], sizes = [2, 12, 8], strides = [1, 1, 1]} : vector<2x12x32xf32> to vector<2x12x8xf32>
    "tpu.trace_start"() <{level = 10 : i32, message = "bqk,bkd->bqd"}> : () -> ()
    %cst_126 = arith.constant dense<0.000000e+00> : vector<2x8x8xf32>
    %321 = tpu.matmul %319, %320, %cst_126 {dimension_numbers = #tpu.dot_dimension_numbers<[2], [1], [1], [2], [0, 0, 0, 1, 1, 2], [0], [0]>} : vector<2x8x12xf32>, vector<2x12x8xf32>, vector<2x8x8xf32> -> vector<2x8x8xf32>
    "tpu.trace_stop"() : () -> ()
    %322 = vector.shape_cast %321 : vector<2x8x8xf32> to vector<16x8xf32>
    %323 = vector.extract_strided_slice %258 {offsets = [16, 0], sizes = [8, 32], strides = [1, 1]} : vector<32x32xf32> to vector<8x32xf32>
    %cst_127 = arith.constant dense<0.000000e+00> : vector<16x32xf32>
    %324 = tpu.matmul %322, %323, %cst_127 {dimension_numbers = #tpu.dot_dimension_numbers<[1], [0], [0], [1], [0, 0, 1, 1], [], []>} : vector<16x8xf32>, vector<8x32xf32>, vector<16x32xf32> -> vector<16x32xf32>
    %325 = arith.addf %303, %324 : vector<16x32xf32>
    %326 = vector.extract_strided_slice %252 {offsets = [0, 0, 24], sizes = [2, 8, 8], strides = [1, 1, 1]} : vector<2x8x32xf32> to vector<2x8x8xf32>
    %327 = vector.extract_strided_slice %254 {offsets = [0, 0, 24], sizes = [2, 12, 8], strides = [1, 1, 1]} : vector<2x12x32xf32> to vector<2x12x8xf32>
    "tpu.trace_start"() <{level = 10 : i32, message = "bqd,bkd->bqk"}> : () -> ()
    %cst_128 = arith.constant dense<0.000000e+00> : vector<2x8x12xf32>
    %328 = tpu.matmul %326, %327, %cst_128 {dimension_numbers = #tpu.dot_dimension_numbers<[2], [2], [1], [1], [0, 0, 0, 1, 1, 1], [0], [0]>} : vector<2x8x8xf32>, vector<2x12x8xf32>, vector<2x8x12xf32> -> vector<2x8x12xf32>
    "tpu.trace_stop"() : () -> ()
    %329 = vector.shape_cast %23 : vector<8x12xf32> to vector<1x8x12xf32>
    %330 = vector.broadcast %329 : vector<1x8x12xf32> to vector<2x8x12xf32>
    %331 = arith.addf %328, %330 : vector<2x8x12xf32>
    %cst_129 = arith.constant dense<0xFF800000> : vector<2x8xf32>
    %332 = vector.multi_reduction <maximumf>, %331, %cst_129 [2] : vector<2x8x12xf32> to vector<2x8xf32>
    %333 = vector.shape_cast %332 : vector<2x8xf32> to vector<2x8x1xf32>
    %334 = vector.broadcast %333 : vector<2x8x1xf32> to vector<2x8x12xf32>
    %335 = arith.subf %331, %334 : vector<2x8x12xf32>
    %336 = math.exp %335 : vector<2x8x12xf32>
    %cst_130 = arith.constant dense<0.000000e+00> : vector<2x8xf32>
    %337 = vector.multi_reduction <add>, %336, %cst_130 [2] : vector<2x8x12xf32> to vector<2x8xf32>
    %338 = vector.shape_cast %337 : vector<2x8xf32> to vector<2x8x1xf32>
    %339 = tpu.reciprocal %338 {approx = true} : vector<2x8x1xf32> -> vector<2x8x1xf32>
    %340 = vector.broadcast %339 : vector<2x8x1xf32> to vector<2x8x12xf32>
    %341 = arith.mulf %336, %340 : vector<2x8x12xf32>
    %342 = vector.extract_strided_slice %256 {offsets = [0, 0, 24], sizes = [2, 12, 8], strides = [1, 1, 1]} : vector<2x12x32xf32> to vector<2x12x8xf32>
    "tpu.trace_start"() <{level = 10 : i32, message = "bqk,bkd->bqd"}> : () -> ()
    %cst_131 = arith.constant dense<0.000000e+00> : vector<2x8x8xf32>
    %343 = tpu.matmul %341, %342, %cst_131 {dimension_numbers = #tpu.dot_dimension_numbers<[2], [1], [1], [2], [0, 0, 0, 1, 1, 2], [0], [0]>} : vector<2x8x12xf32>, vector<2x12x8xf32>, vector<2x8x8xf32> -> vector<2x8x8xf32>
    "tpu.trace_stop"() : () -> ()
    %344 = vector.shape_cast %343 : vector<2x8x8xf32> to vector<16x8xf32>
    %345 = vector.extract_strided_slice %258 {offsets = [24, 0], sizes = [8, 32], strides = [1, 1]} : vector<32x32xf32> to vector<8x32xf32>
    %cst_132 = arith.constant dense<0.000000e+00> : vector<16x32xf32>
    %346 = tpu.matmul %344, %345, %cst_132 {dimension_numbers = #tpu.dot_dimension_numbers<[1], [0], [0], [1], [0, 0, 1, 1], [], []>} : vector<16x8xf32>, vector<8x32xf32>, vector<16x32xf32> -> vector<16x32xf32>
    %347 = arith.addf %325, %346 : vector<16x32xf32>
    %348 = arith.addf %204, %347 : vector<16x32xf32>
    %349 = vector.broadcast %212 : vector<1x32xf32> to vector<16x32xf32>
    %350 = arith.addf %348, %349 : vector<16x32xf32>
    %cst_133 = arith.constant dense<0.000000e+00> : vector<16xf32>
    %351 = vector.multi_reduction <add>, %350, %cst_133 [1] : vector<16x32xf32> to vector<16xf32>
    %352 = vector.shape_cast %351 : vector<16xf32> to vector<16x1xf32>
    %cst_134 = arith.constant 3.200000e+01 : f32
    %353 = vector.broadcast %cst_134 : f32 to vector<16x1xf32>
    %354 = arith.divf %352, %353 : vector<16x1xf32>
    %355 = vector.broadcast %354 : vector<16x1xf32> to vector<16x32xf32>
    %356 = arith.subf %350, %355 : vector<16x32xf32>
    %357 = arith.mulf %356, %356 : vector<16x32xf32>
    %cst_135 = arith.constant dense<0.000000e+00> : vector<16xf32>
    %358 = vector.multi_reduction <add>, %357, %cst_135 [1] : vector<16x32xf32> to vector<16xf32>
    %359 = vector.shape_cast %358 : vector<16xf32> to vector<16x1xf32>
    %cst_136 = arith.constant 3.200000e+01 : f32
    %360 = vector.broadcast %cst_136 : f32 to vector<16x1xf32>
    %361 = arith.divf %359, %360 : vector<16x1xf32>
    %362 = vector.broadcast %354 : vector<16x1xf32> to vector<16x32xf32>
    %363 = arith.subf %350, %362 : vector<16x32xf32>
    %cst_137 = arith.constant 9.99999974E-6 : f32
    %364 = vector.broadcast %cst_137 : f32 to vector<16x1xf32>
    %365 = arith.addf %361, %364 : vector<16x1xf32>
    %366 = math.rsqrt %365 : vector<16x1xf32>
    %367 = vector.broadcast %366 : vector<16x1xf32> to vector<16x32xf32>
    %368 = arith.mulf %363, %367 : vector<16x32xf32>
    %369 = vector.broadcast %214 : vector<1x32xf32> to vector<16x32xf32>
    %370 = arith.mulf %368, %369 : vector<16x32xf32>
    %371 = vector.broadcast %216 : vector<1x32xf32> to vector<16x32xf32>
    %372 = arith.addf %370, %371 : vector<16x32xf32>
    %c1_138 = arith.constant 1 : index
    %c0_139 = arith.constant 0 : index
    %c128_140 = arith.constant 128 : index
    %373 = vector.load %arg5[%c1_138, %c0_139, %c128_140] : memref<2x32x256xf32, #tpu.memory_space<vmem>>, vector<1x32x128xf32>
    %374 = vector.shape_cast %373 : vector<1x32x128xf32> to vector<32x128xf32>
    %cst_141 = arith.constant dense<0.000000e+00> : vector<16x128xf32>
    %375 = tpu.matmul %372, %374, %cst_141 {dimension_numbers = #tpu.dot_dimension_numbers<[1], [0], [0], [1], [0, 0, 1, 1], [], []>} : vector<16x32xf32>, vector<32x128xf32>, vector<16x128xf32> -> vector<16x128xf32>
    %376 = vector.broadcast %218 : vector<1x128xf32> to vector<16x128xf32>
    %377 = arith.addf %375, %376 : vector<16x128xf32>
    %cst_142 = arith.constant 0.000000e+00 : f32
    %378 = vector.broadcast %cst_142 : f32 to vector<16x128xf32>
    %379 = arith.maximumf %377, %378 : vector<16x128xf32>
    %c1_143 = arith.constant 1 : index
    %c0_144 = arith.constant 0 : index
    %c0_145 = arith.constant 0 : index
    %380 = vector.load %arg6[%c1_143, %c0_144, %c0_145] : memref<2x128x32xf32, #tpu.memory_space<vmem>>, vector<1x128x32xf32>
    %381 = vector.shape_cast %380 : vector<1x128x32xf32> to vector<128x32xf32>
    %cst_146 = arith.constant dense<0.000000e+00> : vector<16x32xf32>
    %382 = tpu.matmul %379, %381, %cst_146 {dimension_numbers = #tpu.dot_dimension_numbers<[1], [0], [0], [1], [0, 0, 1, 1], [], []>} : vector<16x128xf32>, vector<128x32xf32>, vector<16x32xf32> -> vector<16x32xf32>
    %383 = vector.broadcast %220 : vector<1x32xf32> to vector<16x32xf32>
    %384 = arith.addf %382, %383 : vector<16x32xf32>
    %385 = arith.addf %350, %384 : vector<16x32xf32>
    %c0_147 = arith.constant 0 : index
    %c0_148 = arith.constant 0 : index
    %386 = vector.load %arg8[%c0_147, %c0_148] : memref<8x32xf32, #tpu.memory_space<vmem>>, vector<1x32xf32>
    %c1_149 = arith.constant 1 : index
    %c0_150 = arith.constant 0 : index
    %387 = vector.load %arg8[%c1_149, %c0_150] : memref<8x32xf32, #tpu.memory_space<vmem>>, vector<1x32xf32>
    %cst_151 = arith.constant dense<0.000000e+00> : vector<16xf32>
    %388 = vector.multi_reduction <add>, %385, %cst_151 [1] : vector<16x32xf32> to vector<16xf32>
    %389 = vector.shape_cast %388 : vector<16xf32> to vector<16x1xf32>
    %cst_152 = arith.constant 3.200000e+01 : f32
    %390 = vector.broadcast %cst_152 : f32 to vector<16x1xf32>
    %391 = arith.divf %389, %390 : vector<16x1xf32>
    %392 = vector.broadcast %391 : vector<16x1xf32> to vector<16x32xf32>
    %393 = arith.subf %385, %392 : vector<16x32xf32>
    %394 = arith.mulf %393, %393 : vector<16x32xf32>
    %cst_153 = arith.constant dense<0.000000e+00> : vector<16xf32>
    %395 = vector.multi_reduction <add>, %394, %cst_153 [1] : vector<16x32xf32> to vector<16xf32>
    %396 = vector.shape_cast %395 : vector<16xf32> to vector<16x1xf32>
    %cst_154 = arith.constant 3.200000e+01 : f32
    %397 = vector.broadcast %cst_154 : f32 to vector<16x1xf32>
    %398 = arith.divf %396, %397 : vector<16x1xf32>
    %399 = vector.broadcast %391 : vector<16x1xf32> to vector<16x32xf32>
    %400 = arith.subf %385, %399 : vector<16x32xf32>
    %cst_155 = arith.constant 9.99999974E-6 : f32
    %401 = vector.broadcast %cst_155 : f32 to vector<16x1xf32>
    %402 = arith.addf %398, %401 : vector<16x1xf32>
    %403 = math.rsqrt %402 : vector<16x1xf32>
    %404 = vector.broadcast %403 : vector<16x1xf32> to vector<16x32xf32>
    %405 = arith.mulf %400, %404 : vector<16x32xf32>
    %406 = vector.broadcast %386 : vector<1x32xf32> to vector<16x32xf32>
    %407 = arith.mulf %405, %406 : vector<16x32xf32>
    %408 = vector.broadcast %387 : vector<1x32xf32> to vector<16x32xf32>
    %409 = arith.addf %407, %408 : vector<16x32xf32>
    %410 = vector.shape_cast %409 : vector<16x32xf32> to vector<2x8x32xf32>
    %c0_156 = arith.constant 0 : index
    %c0_157 = arith.constant 0 : index
    %c0_158 = arith.constant 0 : index
    %411 = vector.load %arg9[%c0_156, %c0_157, %c0_158] : memref<2x8x32xf32, #tpu.memory_space<vmem>>, vector<2x8x32xf32>
    tpu.vector_store %arg9[%c0_156, %c0_157, %c0_158], %410 {strides = array<i32>} : memref<2x8x32xf32, #tpu.memory_space<vmem>>, vector<2x8x32xf32>,
    return
  }
  func.func @transform_0(%arg0: i32) -> (i32, i32) {
    %c0_i32 = arith.constant 0 : i32
    %c0_i32_0 = arith.constant 0 : i32
    %c0_i32_1 = arith.constant 0 : i32
    return %c0_i32, %c0_i32_0 : i32, i32
  }
  func.func @transform_1(%arg0: i32) -> (i32, i32) {
    %c0_i32 = arith.constant 0 : i32
    %c0_i32_0 = arith.constant 0 : i32
    %c0_i32_1 = arith.constant 0 : i32
    return %c0_i32, %c0_i32_0 : i32, i32
  }
  func.func @transform_2(%arg0: i32) -> (i32, i32, i32) {
    %c0_i32 = arith.constant 0 : i32
    %c0_i32_0 = arith.constant 0 : i32
    %c0_i32_1 = arith.constant 0 : i32
    return %arg0, %c0_i32, %c0_i32_0 : i32, i32, i32
  }
  func.func @transform_3(%arg0: i32) -> (i32, i32, i32) {
    %c0_i32 = arith.constant 0 : i32
    %c0_i32_0 = arith.constant 0 : i32
    %c0_i32_1 = arith.constant 0 : i32
    return %arg0, %c0_i32, %c0_i32_0 : i32, i32, i32
  }
  func.func @transform_4(%arg0: i32) -> (i32, i32, i32) {
    %c0_i32 = arith.constant 0 : i32
    %c0_i32_0 = arith.constant 0 : i32
    %c0_i32_1 = arith.constant 0 : i32
    %c0_i32_2 = arith.constant 0 : i32
    return %c0_i32, %c0_i32_0, %c0_i32_1 : i32, i32, i32
  }
  func.func @transform_5(%arg0: i32) -> (i32, i32, i32) {
    %c0_i32 = arith.constant 0 : i32
    %c0_i32_0 = arith.constant 0 : i32
    %c0_i32_1 = arith.constant 0 : i32
    %c0_i32_2 = arith.constant 0 : i32
    return %c0_i32, %c0_i32_0, %c0_i32_1 : i32, i32, i32
  }
  func.func @transform_6(%arg0: i32) -> (i32, i32, i32) {
    %c0_i32 = arith.constant 0 : i32
    %c0_i32_0 = arith.constant 0 : i32
    %c0_i32_1 = arith.constant 0 : i32
    %c0_i32_2 = arith.constant 0 : i32
    return %c0_i32, %c0_i32_0, %c0_i32_1 : i32, i32, i32
  }
  func.func @transform_7(%arg0: i32) -> (i32, i32) {
    %c0_i32 = arith.constant 0 : i32
    %c0_i32_0 = arith.constant 0 : i32
    %c0_i32_1 = arith.constant 0 : i32
    return %c0_i32, %c0_i32_0 : i32, i32
  }
  func.func @transform_8(%arg0: i32) -> (i32, i32, i32) {
    %c0_i32 = arith.constant 0 : i32
    %c0_i32_0 = arith.constant 0 : i32
    %c0_i32_1 = arith.constant 0 : i32
    return %arg0, %c0_i32, %c0_i32_0 : i32, i32, i32
  }
}

</mosaic_0001>

<bundles_post_ra>
// kernel: tpu_custom_call.1
= control target key start
LH: loop header
LB: loop body
LE: loop exit
PB: predicated region body
PF: predicated region fallthrough
CT: control target
= control target key end

     0   :  { %vm78_vm0 = vcmask 261120   ;;  %s6353_s0 = inlined_call_operand.vmem [shape: f32[8,32], index: 0, kind: input, shape index: {}]   ;;  %s6354_s1 = inlined_call_operand.vmem [shape: f32[12,32], index: 1, kind: input, shape index: {}]   ;;  %s6355_s2 = inlined_call_operand.vmem [shape: f32[2,8,32], index: 2, kind: input, shape index: {}]   ;;  %s6356_s3 = inlined_call_operand.vmem [shape: f32[2,12,32], index: 3, kind: input, shape index: {}]   ;;  %s6357_s4 = inlined_call_operand.vmem [shape: f32[2,32,256], index: 4, kind: input, shape index: {}]   ;;  %s6358_s5 = inlined_call_operand.vmem [shape: f32[2,128,32], index: 5, kind: input, shape index: {}]   ;;  %s6359_s6 = inlined_call_operand.vmem [shape: f32[2,8,128], index: 6, kind: input, shape index: {}]   ;;  %s6360_s7 = inlined_call_operand.vmem [shape: f32[8,32], index: 7, kind: input, shape index: {}]   ;;  %s6361_s8 = inlined_call_operand.hbm [shape: f32[2,8,32], index: 8, kind: output, shape index: {}]  }
   0x1   :  { %v30_v0 = vld [vmem:[%s6355_s2] sm:$0xff]  ;;  %v31_v6 = vld [vmem:[%s6355_s2 + $0x8] sm:$0xff]  ;;  %v39_v9 = vld [vmem:[%s6356_s3 + $0x10] sm:$0xff] }
   0x2   :  { %v34_v1 = vld [vmem:[%s6353_s0] sm:$0xff]  ;;  %v32_v3 = vmul.f32 5.656854, %v30_v0  ;;  %v33_v7 = vmul.f32 5.656854, %v31_v6 }
   0x3   :  { %v37_v2 = vld [vmem:[%s6356_s3] sm:$0xff]  ;;  %v38_v8 = vld [vmem:[%s6356_s3 + $0x8] sm:$0xf]  ;;  %v43_v13 = vmul.f32 5.656854, %v39_v9 }
   0x4   :  { %v41_v4 = vmul.f32 5.656854, %v37_v2  ;;  %v45_v5 = vld [vmem:[%s6354_s1] sm:$0xff]  ;;  %v5425_v10 = vadd.f32 %v34_v1, %v32_v3  ;;  %v42_v12 = vmul.f32 5.656854, %v38_v8  ;;  %v5430_v15 = vadd.f32 %v34_v1, %v33_v7 }
   0x5   :  { %v46_v14 = vld [vmem:[%s6354_s1 + $0x8] sm:$0xf]  ;;  %v40_v16 = vld [vmem:[%s6356_s3 + $0x18] sm:$0xf] }
   0x6   :  { %v47_v11 = vadd.f32 %v45_v5, %v41_v4 }
   0x7   :  { %13 = vsyncpa [#allocation3], 0  ;;  %v79_v17 = vsel %vm78_vm0, %v5425_v10, 0.0  ;;  %v48_v19 = vadd.f32 %v46_v14, %v42_v12  ;;  %v49_v20 = vadd.f32 %v45_v5, %v43_v13  ;;  %v44_v21 = vmul.f32 5.656854, %v40_v16  ;;  %v5472_v56 = vld [vmem:[%s6357_s4 + $0x30] sm:$0xff] }
   0x8   :  { %v55_v18 = vcombine.high %v47_v11, %v47_v11  ;;  %80 = vadd.xlane.f32.xlu0 %v79_v17  ;;  %v82_v23 = vsel %vm78_vm0, %v5430_v15, 0.0  ;;  %v5342_v57 = vmov 0.0   ;;  %v5478_v58 = vld [vmem:[%s6357_s4 + $0x20] sm:$0xff]  ;;  %vm5343_vm1 = vmmov 0   ;;  %v5488_v59 = vld [vmem:[%s6357_s4 + $0x10] sm:$0xff]  ;;  %s5344_s11 = smov 96  }
   0x9   :  { %v73_v24 = vcombine.low %v48_v19, %v49_v20  ;;  %v56_v25 = vcombine.high %v49_v20, %v49_v20  ;;  %v50_v26 = vadd.f32 %v46_v14, %v44_v21  ;;  %4803 = vmatprep.subr.mxu0 %v5342_v57  ;;  %4811 = vmatprep.mubr.msk.f32.mxu0 %vm5343_vm1, %v5342_v57  ;;  %v5497_v60 = vld [vmem:[%s6357_s4] sm:$0xff]  ;;  %vm293_vm2 = vcmask 64512   ;;  %s5345_s12 = smov 64   ;;  %s5346_s13 = smov 88  }
   0xa   :  { %v72_v22 = vcombine.low %v47_v11, %v55_v18  ;;  %4804 = vmatpush3.msra.mxu0 %v5472_v56  ;;  %4826 = vmatprep.subr.mxu1 %v5342_v57  ;;  %v4453_v14 = vld [vmem:[%s6359_s6] ss:$0 sm:$0xff]  ;;  %v4454_v17 = vld [vmem:[%s6359_s6 + $0x1] ss:$0 sm:$0xff]  ;;  %vm453_vm4 = vcmask 97280   ;;  %s5347_s14 = smov 120  }
   0xb   :  { %v74_v28 = vcombine.low %v56_v25, %v50_v26  ;;  %v88_v29 = vsel %vm78_vm0, %v73_v24, 0.0  ;;  %4805 = vmatprep.subr.mxu0 %v5342_v57  ;;  %4830 = vmatprep.mubr.msk.f32.mxu1 %vm5343_vm1, %v5342_v57  ;;  %vm484_vm5 = vcmask 1043456   ;;  %s5348_s15 = smov 56   ;;  %s5349_s16 = smov 32  }
   0xc   :  { %v85_v27 = vsel %vm78_vm0, %v72_v22, 0.0  ;;  %83 = vadd.xlane.f32.xlu0 %v82_v23  ;;  %4806 = vmatpush3.msra.mxu0 %v5478_v58  ;;  %s5350_s0 = smov 80   ;;  %s5351_s17 = smov 112  }
   0xd   :  { %86 = vadd.xlane.f32.xlu1 %v85_v27  ;;  %v91_v30 = vsel %vm78_vm0, %v74_v28, 0.0  ;;  %4807 = vmatprep.subr.mxu0 %v5342_v57  ;;  %s5352_s18 = smov 48   ;;  %s5353_s19 = smov 72  }
   0xe   :  { %4808 = vmatpush3.msra.mxu0 %v5488_v59  ;;  %s5354_s2 = smov 104   ;;  %s5355_s20 = smov 40  }
   0xf   :  { %4809 = vmatprep.subr.mxu0 %v5342_v57  ;;  %s5356_s25 = smov [#allocation2]  }
  0x10   :  { %92 = vadd.xlane.f32.xlu0 %v91_v30  ;;  %4810 = vmatpush3.msra.mxu0 %v5497_v60  ;;  %s4442_s26 = sshll.u32 %s5356_s25, 4  ;;  %s4443_s26 = int_to_ptr.vmem [resolvable:$true] %s4442_s26 }
  0x11   :  { %89 = vadd.xlane.f32.xlu1 %v88_v29  ;;  %4854 = vmatprep.subr.mxu0 %v5342_v57  ;;  %p5325_p1 = scmp.lt.s32.totalorder %s4443_s26, %s4443_s26 }
  0x91   :  { %v81_v31 = vpop.xlane.xlu0 %80 }
  0x92   :  { %v95_v32 = vmul.f32 0.03125, %v81_v31 }
  0x94   :  { %v5443_v33 = vsub.f32 %v5425_v10, %v95_v32 }
  0x95   :  { %v84_v35 = vpop.xlane.xlu0 %83 }
  0x96   :  { %v87_v34 = vpop.xlane.xlu1 %86  ;;  %v96_v37 = vmul.f32 0.03125, %v84_v35  ;;  %v105_v38 = vmul.f32 %v5443_v33, %v5443_v33 }
  0x97   :  { %v97_v36 = vmul.f32 0.03125, %v87_v34 }
  0x98   :  { %v5450_v40 = vsub.f32 %v5430_v15, %v96_v37  ;;  %v110_v41 = vsel %vm78_vm0, %v105_v38, 0.0 }
  0x99   :  { %v5447_v39 = vsub.f32 %v72_v22, %v97_v36  ;;  %111 = vadd.xlane.f32.xlu1 %v110_v41  ;;  %v93_v43 = vpop.xlane.xlu0 %92  ;;  %v4455_v36 = vld [vmem:[%s6359_s6 + $0x2] ss:$0 sm:$0xff] }
  0x9a   :  { %v90_v42 = vpop.xlane.xlu1 %89  ;;  %v99_v45 = vmul.f32 0.03125, %v93_v43  ;;  %v106_v47 = vmul.f32 %v5450_v40, %v5450_v40 }
  0x9b   :  { %v98_v44 = vmul.f32 0.03125, %v90_v42  ;;  %v107_v46 = vmul.f32 %v5447_v39, %v5447_v39 }
  0x9c   :  { %v5459_v49 = vsub.f32 %v74_v28, %v99_v45  ;;  %v113_v51 = vsel %vm78_vm0, %v106_v47, 0.0 }
  0x9d   :  { %v5457_v48 = vsub.f32 %v73_v24, %v98_v44  ;;  %v116_v50 = vsel %vm78_vm0, %v107_v46, 0.0  ;;  %114 = vadd.xlane.f32.xlu0 %v113_v51 }
  0x9e   :  { %117 = vadd.xlane.f32.xlu1 %v116_v50  ;;  %v109_v53 = vmul.f32 %v5459_v49, %v5459_v49 }
  0x9f   :  { %v108_v52 = vmul.f32 %v5457_v48, %v5457_v48 }
  0xa0   :  { %v122_v55 = vsel %vm78_vm0, %v109_v53, 0.0 }
  0xa1   :  { %v119_v54 = vsel %vm78_vm0, %v108_v52, 0.0 }
  0xa2   :  { %120 = vadd.xlane.f32.xlu0 %v119_v54  ;;  %123 = vadd.xlane.f32.xlu1 %v122_v55 }
 0x122   :  { %v112_v61 = vpop.xlane.xlu1 %111 }
 0x123   :  { %v125_v62 = vmul.f32 0.03125, %v112_v61 }
 0x125   :  { %v130_v63 = vadd.f32 1e-05, %v125_v62 }
 0x126   :  { %v115_v1 = vpop.xlane.xlu0 %114 }
 0x127   :  { %v118_v0 = vpop.xlane.xlu1 %117  ;;  %5230 = vrsqrt.f32 %v130_v63  ;;  %v126_v3 = vmul.f32 0.03125, %v115_v1 }
 0x128   :  { %v127_v2 = vmul.f32 0.03125, %v118_v0 }
 0x129   :  { %v131_v5 = vadd.f32 1e-05, %v126_v3 }
 0x12a   :  { %v132_v4 = vadd.f32 1e-05, %v127_v2 }
 0x12b   :  { %v124_v6 = vpop.xlane.xlu1 %123  ;;  %v121_v7 = vpop.xlane.xlu0 %120 }
 0x12c   :  { %5232 = vrsqrt.f32 %v132_v4  ;;  %v129_v8 = vmul.f32 0.03125, %v124_v6  ;;  %v128_v9 = vmul.f32 0.03125, %v121_v7  ;;  %v57_v4 = vlaneseq }
 0x12d   :  { %5234 = vrsqrt.f32 %v131_v5 }
 0x12e   :  { %v133_v11 = vadd.f32 1e-05, %v128_v9  ;;  %v134_v12 = vadd.f32 1e-05, %v129_v8  ;;  %v58_v5 = vshrl.u32 %v57_v4, 7  ;;  %v60_v6 = vand.u32 127, %v57_v4 }
 0x130   :  { %5236 = vrsqrt.f32 %v133_v11  ;;  %v61_v7 = vsub.s32 %v60_v6, %v58_v5 }
 0x131   :  { %5238 = vrsqrt.f32 %v134_v12 }
 0x132   :  { %vm62_vm3 = vcmp.ge.s32.totalorder %v61_v7, 5 }
 0x133   :  { %v5580_v8 = vsel %vm62_vm3, -1e+30, %v5342_v57 }
 0x134   :  { %v5231_v13 = vpop.eup %5230 }
 0x135   :  { %v140_v16 = vmul.f32 %v5231_v13, %v5443_v33 }
 0x137   :  { %v149_v18 = vmul.f32 %v4453_v14, %v140_v16 }
 0x139   :  { %v5233_v19 = vpop.eup %5232  ;;  %v158_v21 = vadd.f32 %v4454_v17, %v149_v18 }
 0x13a   :  { %v5235_v20 = vpop.eup %5234  ;;  %v5512_v23 = vmul.f32 %v5233_v19, %v5447_v39 }
 0x13b   :  { %v141_v22 = vmul.f32 %v5235_v20, %v5450_v40  ;;  %4812 = vmatmul.mubr.msk.f32.vlgmr.msra.gmra.mxu0 %vm78_vm0, %v158_v21 }
 0x13c   :  { %4814 = vmatprep.mubr.msk.f32.mxu0 %vm5343_vm1, %v5342_v57  ;;  %v151_v27 = vmul.f32 %v4453_v14, %v5512_v23 }
 0x13d   :  { %v150_v24 = vmul.f32 %v4453_v14, %v141_v22  ;;  %v5237_v25 = vpop.eup %5236 }
 0x13e   :  { %v5519_v28 = vmul.f32 %v5237_v25, %v5457_v48  ;;  %v5239_v29 = vpop.eup %5238  ;;  %v160_v30 = vadd.f32 %v4454_v17, %v151_v27 }
 0x13f   :  { %v159_v26 = vadd.f32 %v4454_v17, %v150_v24  ;;  %v5526_v32 = vmul.f32 %v5239_v29, %v5459_v49 }
 0x140   :  { %v152_v31 = vmul.f32 %v4453_v14, %v5519_v28 }
 0x141   :  { %4815 = vmatmul.mubr.msk.f32.gmra.mxu0 %vm78_vm0, %v159_v26  ;;  %v153_v34 = vmul.f32 %v4453_v14, %v5526_v32 }
 0x142   :  { %4817 = vmatprep.mubr.msk.f32.mxu0 %vm5343_vm1, %v5342_v57  ;;  %v161_v33 = vadd.f32 %v4454_v17, %v152_v31 }
 0x143   :  { %v162_v35 = vadd.f32 %v4454_v17, %v153_v34 }
 0x145   :  { %4818 = vmatmul.mubr.msk.f32.gmra.mxu0 %vm78_vm0, %v160_v30 }
 0x146   :  { %4820 = vmatprep.mubr.msk.f32.mxu0 %vm5343_vm1, %v5342_v57 }
 0x149   :  { %4821 = vmatmul.mubr.msk.f32.gmra.mxu0 %vm78_vm0, %v161_v33 }
 0x14a   :  { %4823 = vmatprep.mubr.msk.f32.mxu0 %vm5343_vm1, %v5342_v57 }
 0x14d   :  { %4824 = vmatmul.mubr.msk.f32.gmra.mxu0 %vm78_vm0, %v162_v35 }
 0x14e   :  { %4858 = vmatprep.mubr.msk.f32.mxu0 %vm5343_vm1, %v5342_v57 }
 0x1fb   :  { %v252_v37 = vpop.f32.mrf.mxu0 }
 0x1fc   :  { %v253_v38 = vadd.f32 %v4455_v36, %v252_v37 }
 0x1fd   :  { %v4813_v39 = vpop.f32.mrf.mxu0 }
 0x1fe   :  { %v5562_v0 = vmul.f32 0.35355338, %v253_v38 }
 0x201   :  { %v257_v40 = vpop.f32.mrf.mxu0 }
 0x202   :  { %v258_v41 = vadd.f32 %v4455_v36, %v257_v40 }
 0x203   :  { %v4816_v42 = vpop.f32.mrf.mxu0 }
 0x204   :  { %v5572_v3 = vmul.f32 0.35355338, %v258_v41 }
 0x205   :  { %v262_v43 = vpop.f32.mrf.mxu0 }
 0x206   :  { %v263_v44 = vadd.f32 %v4455_v36, %v262_v43 }
 0x207   :  { %v4819_v45 = vpop.f32.mrf.mxu0 }
 0x208   :  { %v281_v46 = vcombine.high %v263_v44, %v263_v44 }
 0x209   :  { %v267_v47 = vpop.f32.mrf.mxu0 }
 0x20a   :  { %v5541_v48 = vcombine.low %v263_v44, %v281_v46  ;;  %v5543_v49 = vadd.f32 %v4455_v36, %v267_v47 }
 0x20b   :  { %v4822_v50 = vpop.f32.mrf.mxu0 }
 0x20c   :  { %289 = vrot.lane.b32.xlu1 %v5541_v48, %s5344_s11  ;;  %291 = vrot.lane.b32.xlu0 %v5543_v49, %s5344_s11  ;;  %v282_v55 = vcombine.high %v5543_v49, %v5543_v49 }
 0x20d   :  { %v272_v51 = vpop.f32.mrf.mxu0 }
 0x20e   :  { %v273_v52 = vadd.f32 %v4455_v36, %v272_v51 }
 0x20f   :  { %v4825_v53 = vpop.f32.mrf.mxu0 }
 0x210   :  { %v5549_v54 = vcombine.high %v273_v52, %v273_v52  ;;  %v5555_v61 = vcombine.low %v282_v55, %v273_v52 }
 0x212   :  { %374 = vrot.lane.b32.xlu1 %v5549_v54, %s5344_s11 }
 0x216   :  { %372 = vrot.lane.b32.xlu1 %v5555_v61, %s5344_s11 }
 0x27e   :  { %v292_v62 = vpop.permute.xlu0 %291  ;;  %v290_v63 = vpop.permute.xlu1 %289 }
 0x27f   :  { %4827 = vmatpush3.xpose.msk.msra.mxu1 %vm293_vm2, %v292_v62 }
 0x280   :  { %4828 = vmatprep.subr.mxu1 %v5342_v57 }
 0x283   :  { %4829 = vmatpush3.xpose.msk.msra.mxu1 %vm293_vm2, %v290_v63 }
 0x284   :  { %v375_v1 = vpop.permute.xlu1 %374  ;;  %4833 = vmatprep.subr.mxu1 %v5342_v57 }
 0x286   :  { %4831 = vmatmul.mubr.msk.f32.vlgmr.msra.gmra.mxu1 %vm293_vm2, %v5562_v0 }
 0x287   :  { %4834 = vmatpush3.xpose.msk.msra.mxu1 %vm293_vm2, %v375_v1  ;;  %4837 = vmatprep.mubr.msk.f32.mxu1 %vm5343_vm1, %v5342_v57 }
 0x288   :  { %4835 = vmatprep.subr.mxu1 %v5342_v57  ;;  %v373_v2 = vpop.permute.xlu1 %372 }
 0x28b   :  { %4836 = vmatpush3.xpose.msk.msra.mxu1 %vm293_vm2, %v373_v2 }
 0x28c   :  { %4840 = vmatprep.subr.mxu1 %v5342_v57 }
 0x28e   :  { %4838 = vmatmul.mubr.msk.f32.vlgmr.msra.gmra.mxu1 %vm293_vm2, %v5572_v3 }
 0x28f   :  { %4844 = vmatprep.mubr.msk.f32.mxu1 %vm5343_vm1, %v5342_v57 }
 0x346   :  { %v367_v9 = vpop.f32.mrf.mxu1 }
 0x347   :  { %v368_v11 = vadd.f32 %v367_v9, %v5580_v8 }
 0x348   :  { %v4832_v12 = vpop.f32.mrf.mxu1 }
 0x349   :  { %v454_v13 = vsel %vm453_vm4, %v368_v11, -inf }
 0x34a   :  { %455 = vmax.xlane.f32.xlu0 %v454_v13 }
 0x34e   :  { %v449_v14 = vpop.f32.mrf.mxu1 }
 0x34f   :  { %v450_v16 = vadd.f32 %v449_v14, %v5580_v8 }
 0x350   :  { %v4839_v17 = vpop.f32.mrf.mxu1 }
 0x351   :  { %v457_v18 = vsel %vm453_vm4, %v450_v16, -inf }
 0x352   :  { %458 = vmax.xlane.f32.xlu1 %v457_v18 }
 0x360   :  { %478 = vrot.lane.b32.xlu0 %v5543_v49, %s5345_s12 }
 0x363   :  { %476 = vrot.lane.b32.xlu1 %v5541_v48, %s5345_s12 }
 0x364   :  { %557 = vrot.lane.b32.xlu0 %v5555_v61, %s5345_s12 }
 0x367   :  { %559 = vrot.lane.b32.xlu1 %v5549_v54, %s5345_s12 }
 0x36b   :  { %641 = vrot.lane.b32.xlu1 %v5543_v49, %s5346_s13 }
 0x36f   :  { %639 = vrot.lane.b32.xlu1 %v5541_v48, %s5346_s13 }
 0x373   :  { %637 = vrot.lane.b32.xlu1 %v5562_v0, %s5347_s14 }
 0x377   :  { %719 = vrot.lane.b32.xlu1 %v5572_v3, %s5347_s14 }
 0x3d3   :  { %v456_v19 = vpop.xlane.xlu0 %455 }
 0x3d4   :  { %v460_v20 = vsub.f32 %v368_v11, %v456_v19 }
 0x3d6   :  { %v462_v21 = vmul.f32 1.442695, %v460_v20 }
 0x3d7   :  { %v479_v22 = vpop.permute.xlu0 %478 }
 0x3d8   :  { %5240 = vpow2.f32 %v462_v21  ;;  %4841 = vmatpush3.msk.msra.mxu1 %vm484_vm5, %v479_v22 }
 0x3d9   :  { %4842 = vmatprep.subr.mxu1 %v5342_v57 }
 0x3db   :  { %v459_v24 = vpop.xlane.xlu1 %458  ;;  %v558_v38 = vpop.permute.xlu0 %557 }
 0x3dc   :  { %v461_v25 = vsub.f32 %v450_v16, %v459_v24 }
 0x3de   :  { %v464_v26 = vmul.f32 1.442695, %v461_v25 }
 0x3df   :  { %v477_v27 = vpop.permute.xlu1 %476 }
 0x3e0   :  { %5242 = vpow2.f32 %v464_v26  ;;  %4843 = vmatpush3.msra.mxu1 %v477_v27 }
 0x3e1   :  { %4847 = vmatprep.subr.mxu1 %v5342_v57 }
 0x3e3   :  { %v560_v29 = vpop.permute.xlu1 %559 }
 0x3e5   :  { %v5241_v30 = vpop.eup %5240 }
 0x3e6   :  { %v466_v31 = vsel %vm453_vm4, %v5241_v30, 0.0 }
 0x3e7   :  { %467 = vadd.xlane.f32.xlu0 %v466_v31  ;;  %v642_v33 = vpop.permute.xlu1 %641 }
 0x3e8   :  { %4855 = vmatpush3.xpose.msk.msra.mxu0 %vm293_vm2, %v642_v33 }
 0x3e9   :  { %4856 = vmatprep.subr.mxu0 %v5342_v57 }
 0x3eb   :  { %v640_v34 = vpop.permute.xlu1 %639 }
 0x3ec   :  { %4857 = vmatpush3.xpose.msk.msra.mxu0 %vm293_vm2, %v640_v34 }
 0x3ed   :  { %v5243_v35 = vpop.eup %5242  ;;  %4868 = vmatprep.subr.mxu0 %v5342_v57 }
 0x3ee   :  { %v469_v36 = vsel %vm453_vm4, %v5243_v35, 0.0 }
 0x3ef   :  { %470 = vadd.xlane.f32.xlu0 %v469_v36  ;;  %v638_v37 = vpop.permute.xlu1 %637 }
 0x3f0   :  { %4859 = vmatmul.mubr.msk.f32.vlgmr.msra.gmra.mxu0 %vm293_vm2, %v638_v37 }
 0x3f1   :  { %4872 = vmatprep.mubr.msk.f32.mxu0 %vm5343_vm1, %v5342_v57 }
 0x3f3   :  { %v720_v47 = vpop.permute.xlu1 %719 }
 0x405   :  { %723 = vrot.lane.b32.xlu0 %v5549_v54, %s5346_s13 }
 0x409   :  { %721 = vrot.lane.b32.xlu0 %v5555_v61, %s5346_s13 }
 0x470   :  { %v468_v39 = vpop.xlane.xlu0 %467 }
 0x471   :  { %5244 = vrcp.f32 %v468_v39 }
 0x478   :  { %v471_v40 = vpop.xlane.xlu0 %470 }
 0x479   :  { %5246 = vrcp.f32 %v471_v40 }
 0x47c   :  { %v724_v44 = vpop.permute.xlu0 %723 }
 0x47e   :  { %v5245_v41 = vpop.eup %5244 }
 0x47f   :  { %v474_v42 = vmul.f32 %v5245_v41, %v5241_v30 }
 0x480   :  { %v722_v46 = vpop.permute.xlu0 %721 }
 0x481   :  { %4845 = vmatmul.mubr.msk.f32.vlgmr.msra.gmra.mxu1 %vm453_vm4, %v474_v42 }
 0x482   :  { %4848 = vmatpush3.msk.msra.mxu1 %vm484_vm5, %v560_v29  ;;  %4851 = vmatprep.mubr.msk.f32.mxu1 %vm5343_vm1, %v5342_v57 }
 0x483   :  { %4849 = vmatprep.subr.mxu1 %v5342_v57 }
 0x484   :  { %4850 = vmatpush3.msra.mxu1 %v558_v38 }
 0x485   :  { %4861 = vmatprep.subr.mxu1 %v5342_v57 }
 0x486   :  { %v5247_v43 = vpop.eup %5246 }
 0x487   :  { %v475_v45 = vmul.f32 %v5247_v43, %v5243_v35 }
 0x489   :  { %4852 = vmatmul.mubr.msk.f32.vlgmr.msra.gmra.mxu1 %vm453_vm4, %v475_v45 }
 0x48a   :  { %4862 = vmatpush3.xpose.msk.msra.mxu1 %vm293_vm2, %v724_v44  ;;  %4865 = vmatprep.mubr.msk.f32.mxu1 %vm5343_vm1, %v5342_v57 }
 0x48b   :  { %4863 = vmatprep.subr.mxu1 %v5342_v57 }
 0x48e   :  { %4864 = vmatpush3.xpose.msk.msra.mxu1 %vm293_vm2, %v722_v46 }
 0x491   :  { %4866 = vmatmul.mubr.msk.f32.vlgmr.msra.gmra.mxu1 %vm293_vm2, %v720_v47 }
 0x4b0   :  { %v715_v50 = vpop.f32.mrf.mxu0 }
 0x4b1   :  { %v716_v51 = vadd.f32 %v715_v50, %v5580_v8 }
 0x4b2   :  { %v4860_v52 = vpop.f32.mrf.mxu0 }
 0x4b3   :  { %v801_v53 = vsel %vm453_vm4, %v716_v51, -inf }
 0x4b4   :  { %802 = vmax.xlane.f32.xlu0 %v801_v53 }
 0x53d   :  { %v803_v55 = vpop.xlane.xlu0 %802 }
 0x53e   :  { %v807_v62 = vsub.f32 %v716_v51, %v803_v55 }
 0x540   :  { %v809_v63 = vmul.f32 1.442695, %v807_v62 }
 0x541   :  { %v5633_v1 = vpop.f32.mrf.mxu1 }
 0x542   :  { %5248 = vpow2.f32 %v809_v63 }
 0x543   :  { %v4846_v2 = vpop.f32.mrf.mxu1 }
 0x549   :  { %v5635_v4 = vpop.f32.mrf.mxu1 }
 0x54b   :  { %v4853_v5 = vpop.f32.mrf.mxu1 }
 0x54f   :  { %v5249_v6 = vpop.eup %5248 }
 0x550   :  { %v813_v7 = vsel %vm453_vm4, %v5249_v6, 0.0 }
 0x551   :  { %v797_v9 = vpop.f32.mrf.mxu1  ;;  %814 = vadd.xlane.f32.xlu0 %v813_v7 }
 0x552   :  { %v798_v11 = vadd.f32 %v797_v9, %v5580_v8 }
 0x553   :  { %v4867_v12 = vpop.f32.mrf.mxu1 }
 0x554   :  { %v804_v13 = vsel %vm453_vm4, %v798_v11, -inf }
 0x555   :  { %805 = vmax.xlane.f32.xlu1 %v804_v13 }
 0x566   :  { %823 = vrot.lane.b32.xlu1 %v5541_v48, %s5348_s15 }
 0x56a   :  { %905 = vrot.lane.b32.xlu1 %v5549_v54, %s5348_s15 }
 0x56e   :  { %903 = vrot.lane.b32.xlu1 %v5555_v61, %s5348_s15 }
 0x572   :  { %1069 = vrot.lane.b32.xlu1 %v5497_v60, %s5349_s16 }
 0x576   :  { %1239 = vrot.lane.b32.xlu1 %v5549_v54, %s5350_s0 }
 0x57a   :  { %1237 = vrot.lane.b32.xlu1 %v5555_v61, %s5350_s0 }
 0x57e   :  { %1235 = vrot.lane.b32.xlu1 %v5572_v3, %s5351_s17 }
 0x5da   :  { %v815_v60 = vpop.xlane.xlu0 %814 }
 0x5de   :  { %v806_v14 = vpop.xlane.xlu1 %805 }
 0x5df   :  { %v808_v16 = vsub.f32 %v798_v11, %v806_v14 }
 0x5e1   :  { %v811_v17 = vmul.f32 1.442695, %v808_v16 }
 0x5e2   :  { %v824_v20 = vpop.permute.xlu1 %823 }
 0x5e3   :  { %5250 = vpow2.f32 %v811_v17 }
 0x5e4   :  { %5252 = vrcp.f32 %v815_v60 }
 0x5e6   :  { %v906_v21 = vpop.permute.xlu1 %905 }
 0x5ea   :  { %v904_v25 = vpop.permute.xlu1 %903 }
 0x5ee   :  { %v1070_v29 = vpop.permute.xlu1 %1069 }
 0x5f0   :  { %v5251_v18 = vpop.eup %5250 }
 0x5f1   :  { %v816_v19 = vsel %vm453_vm4, %v5251_v18, 0.0  ;;  %v5253_v24 = vpop.eup %5252 }
 0x5f2   :  { %817 = vadd.xlane.f32.xlu0 %v816_v19  ;;  %v1240_v33 = vpop.permute.xlu1 %1239 }
 0x5f6   :  { %v1238_v34 = vpop.permute.xlu1 %1237 }
 0x5fa   :  { %v1236_v35 = vpop.permute.xlu1 %1235 }
 0x608   :  { %825 = vrot.lane.b32.xlu0 %v5543_v49, %s5348_s15 }
 0x60c   :  { %984 = vrot.lane.b32.xlu0 %v5488_v59, %s5349_s16  ;;  %v821_v59 = vmul.f32 %v5253_v24, %v5249_v6 }
 0x610   :  { %1157 = vrot.lane.b32.xlu0 %v5543_v49, %s5350_s0 }
 0x614   :  { %1155 = vrot.lane.b32.xlu0 %v5541_v48, %s5350_s0 }
 0x618   :  { %1153 = vrot.lane.b32.xlu0 %v5562_v0, %s5351_s17 }
 0x67b   :  { %v818_v22 = vpop.xlane.xlu0 %817 }
 0x67c   :  { %5254 = vrcp.f32 %v818_v22 }
 0x67f   :  { %v826_v26 = vpop.permute.xlu0 %825 }
 0x680   :  { %4869 = vmatpush3.msk.msra.mxu0 %vm484_vm5, %v826_v26 }
 0x681   :  { %4870 = vmatprep.subr.mxu0 %v5342_v57 }
 0x682   :  { %4871 = vmatpush3.msra.mxu0 %v824_v20 }
 0x683   :  { %4873 = vmatmul.mubr.msk.f32.vlgmr.msra.gmra.mxu0 %vm453_vm4, %v821_v59  ;;  %4875 = vmatprep.subr.mxu0 %v5342_v57  ;;  %v985_v27 = vpop.permute.xlu0 %984 }
 0x684   :  { %4876 = vmatpush3.msk.msra.mxu0 %vm484_vm5, %v906_v21  ;;  %4879 = vmatprep.mubr.msk.f32.mxu0 %vm5343_vm1, %v5342_v57 }
 0x685   :  { %4877 = vmatprep.subr.mxu0 %v5342_v57  ;;  %4882 = vmatprep.subr.mxu1 %v985_v27 }
 0x686   :  { %4878 = vmatpush3.msra.mxu0 %v904_v25  ;;  %4883 = vmatpush3.msra.mxu1 %v985_v27 }
 0x687   :  { %4887 = vmatprep.subr.mxu0 %v1070_v29  ;;  %4892 = vmatprep.subr.mxu1 %v5342_v57  ;;  %v1158_v38 = vpop.permute.xlu0 %1157 }
 0x689   :  { %v5255_v30 = vpop.eup %5254 }
 0x68a   :  { %v822_v31 = vmul.f32 %v5255_v30, %v5251_v18 }
 0x68b   :  { %v1156_v40 = vpop.permute.xlu0 %1155 }
 0x68c   :  { %4880 = vmatmul.mubr.msk.f32.vlgmr.msra.gmra.mxu0 %vm453_vm4, %v822_v31 }
 0x68d   :  { %4889 = vmatprep.mubr.msk.f32.mxu0 %vm293_vm2, %v5633_v1  ;;  %4888 = vmatpush3.msra.mxu0 %v1070_v29 }
 0x68e   :  { %4899 = vmatprep.subr.mxu0 %v5342_v57 }
 0x68f   :  { %v1154_v43 = vpop.permute.xlu0 %1153 }
 0x690   :  { %4890 = vmatmul.mubr.msk.f32.vlgmr.msra.gmra.mxu0 %vm293_vm2, %v5635_v4 }
 0x691   :  { %4900 = vmatpush3.xpose.msk.msra.mxu0 %vm293_vm2, %v1240_v33  ;;  %4903 = vmatprep.mubr.msk.f32.mxu0 %vm5343_vm1, %v5342_v57 }
 0x692   :  { %4901 = vmatprep.subr.mxu0 %v5342_v57 }
 0x695   :  { %4902 = vmatpush3.xpose.msk.msra.mxu0 %vm293_vm2, %v1238_v34 }
 0x696   :  { %4913 = vmatprep.subr.mxu0 %v5342_v57 }
 0x698   :  { %4904 = vmatmul.mubr.msk.f32.vlgmr.msra.gmra.mxu0 %vm293_vm2, %v1236_v35 }
 0x699   :  { %4917 = vmatprep.mubr.msk.f32.mxu0 %vm5343_vm1, %v5342_v57 }
 0x743   :  { %v899_v36 = vpop.f32.mrf.mxu0 }
 0x744   :  { %4884 = vmatprep.mubr.msk.f32.mxu1 %vm293_vm2, %v899_v36 }
 0x745   :  { %v4874_v37 = vpop.f32.mrf.mxu0 }
 0x74c   :  { %v979_v39 = vpop.f32.mrf.mxu0 }
 0x74d   :  { %4885 = vmatmul.mubr.msk.f32.vlgmr.msra.gmra.mxu1 %vm293_vm2, %v979_v39 }
 0x74e   :  { %4893 = vmatpush3.xpose.msk.msra.mxu1 %vm293_vm2, %v1158_v38  ;;  %v4881_v41 = vpop.f32.mrf.mxu0  ;;  %4896 = vmatprep.mubr.msk.f32.mxu1 %vm5343_vm1, %v5342_v57 }
 0x74f   :  { %4894 = vmatprep.subr.mxu1 %v5342_v57 }
 0x750   :  { %v5695_v42 = vpop.f32.mrf.mxu0 }
 0x752   :  { %4895 = vmatpush3.xpose.msk.msra.mxu1 %vm293_vm2, %v1156_v40  ;;  %v5700_v44 = vpop.f32.mrf.mxu0 }
 0x753   :  { %4906 = vmatprep.subr.mxu1 %v5342_v57 }
 0x755   :  { %4897 = vmatmul.mubr.msk.f32.vlgmr.msra.gmra.mxu1 %vm293_vm2, %v1154_v43 }
 0x756   :  { %4910 = vmatprep.mubr.msk.f32.mxu1 %vm5343_vm1, %v5342_v57 }
 0x758   :  { %v1313_v45 = vpop.f32.mrf.mxu0 }
 0x759   :  { %v1314_v46 = vadd.f32 %v1313_v45, %v5580_v8 }
 0x75a   :  { %v4905_v47 = vpop.f32.mrf.mxu0 }
 0x75b   :  { %v1320_v50 = vsel %vm453_vm4, %v1314_v46, -inf }
 0x75c   :  { %1321 = vmax.xlane.f32.xlu1 %v1320_v50 }
 0x76d   :  { %1421 = vrot.lane.b32.xlu1 %v5549_v54, %s5352_s18 }
 0x771   :  { %1339 = vrot.lane.b32.xlu1 %v5541_v48, %s5352_s18 }
 0x775   :  { %1419 = vrot.lane.b32.xlu1 %v5555_v61, %s5352_s18 }
 0x779   :  { %1590 = vrot.lane.b32.xlu1 %v5543_v49, %s5353_s19 }
 0x77d   :  { %1588 = vrot.lane.b32.xlu1 %v5541_v48, %s5353_s19 }
 0x781   :  { %1586 = vrot.lane.b32.xlu1 %v5562_v0, %s5354_s2 }
 0x7e5   :  { %v1322_v51 = vpop.xlane.xlu1 %1321 }
 0x7e6   :  { %v1324_v62 = vsub.f32 %v1314_v46, %v1322_v51 }
 0x7e8   :  { %v1327_v63 = vmul.f32 1.442695, %v1324_v62 }
 0x7e9   :  { %v1422_v52 = vpop.permute.xlu1 %1421 }
 0x7ea   :  { %4914 = vmatpush3.msk.msra.mxu0 %vm484_vm5, %v1422_v52  ;;  %5256 = vpow2.f32 %v1327_v63 }
 0x7eb   :  { %4915 = vmatprep.subr.mxu0 %v5342_v57 }
 0x7ed   :  { %v1340_v53 = vpop.permute.xlu1 %1339 }
 0x7f1   :  { %v1420_v55 = vpop.permute.xlu1 %1419 }
 0x7f2   :  { %4916 = vmatpush3.msra.mxu0 %v1420_v55 }
 0x7f3   :  { %4925 = vmatprep.subr.mxu0 %v5342_v57 }
 0x7f5   :  { %v1591_v16 = vpop.permute.xlu1 %1590 }
 0x7f7   :  { %v5257_v7 = vpop.eup %5256 }
 0x7f8   :  { %v1332_v9 = vsel %vm453_vm4, %v5257_v7, 0.0 }
 0x7f9   :  { %v1589_v20 = vpop.permute.xlu1 %1588 }
 0x7fd   :  { %v1587_v21 = vpop.permute.xlu1 %1586 }
 0x80d   :  { %v5721_v1 = vpop.f32.mrf.mxu1 }
 0x80e   :  { %v1150_v39 = vadd.f32 %v5695_v42, %v5721_v1 }
 0x80f   :  { %v5723_v2 = vpop.f32.mrf.mxu1 }
 0x810   :  { %v1145_v41 = vadd.f32 %v5700_v44, %v5723_v2 }
 0x815   :  { %v1231_v4 = vpop.f32.mrf.mxu1 }
 0x816   :  { %v1232_v0 = vadd.f32 %v1231_v4, %v5580_v8 }
 0x817   :  { %v4898_v5 = vpop.f32.mrf.mxu1 }
 0x818   :  { %v1317_v6 = vsel %vm453_vm4, %v1232_v0, -inf }
 0x819   :  { %1318 = vmax.xlane.f32.xlu0 %v1317_v6 }
 0x81d   :  { %1333 = vadd.xlane.f32.xlu0 %v1332_v9 }
 0x8a2   :  { %v1319_v11 = vpop.xlane.xlu0 %1318 }
 0x8a3   :  { %v1323_v12 = vsub.f32 %v1232_v0, %v1319_v11 }
 0x8a5   :  { %v1325_v13 = vmul.f32 1.442695, %v1323_v12 }
 0x8a6   :  { %v1334_v14 = vpop.xlane.xlu0 %1333 }
 0x8a7   :  { %5258 = vpow2.f32 %v1325_v13 }
 0x8a8   :  { %5260 = vrcp.f32 %v1334_v14 }
 0x8b4   :  { %v5259_v17 = vpop.eup %5258 }
 0x8b5   :  { %v5261_v18 = vpop.eup %5260  ;;  %v1329_v19 = vsel %vm453_vm4, %v5259_v17, 0.0 }
 0x8b6   :  { %1330 = vadd.xlane.f32.xlu0 %v1329_v19  ;;  %v1338_v60 = vmul.f32 %v5261_v18, %v5257_v7  ;;  %v4509_v19 = vld [vmem:[%s6359_s6 + $0x3] ss:$0 sm:$0xff] }
 0x8b8   :  { %4918 = vmatmul.mubr.msk.f32.vlgmr.msra.gmra.mxu0 %vm453_vm4, %v1338_v60 }
 0x8b9   :  { %4926 = vmatpush3.xpose.msk.msra.mxu0 %vm293_vm2, %v1591_v16  ;;  %4929 = vmatprep.mubr.msk.f32.mxu0 %vm5343_vm1, %v5342_v57 }
 0x8ba   :  { %4927 = vmatprep.subr.mxu0 %v5342_v57 }
 0x8bd   :  { %4928 = vmatpush3.xpose.msk.msra.mxu0 %vm293_vm2, %v1589_v20 }
 0x8be   :  { %4939 = vmatprep.subr.mxu0 %v5342_v57 }
 0x8c0   :  { %4930 = vmatmul.mubr.msk.f32.vlgmr.msra.gmra.mxu0 %vm293_vm2, %v1587_v21 }
 0x8c1   :  { %4943 = vmatprep.mubr.msk.f32.mxu0 %vm5343_vm1, %v5342_v57 }
 0x8cc   :  { %1341 = vrot.lane.b32.xlu0 %v5543_v49, %s5352_s18 }
 0x8d0   :  { %1500 = vrot.lane.b32.xlu0 %v5478_v58, %s5349_s16 }
 0x8d4   :  { %1672 = vrot.lane.b32.xlu0 %v5549_v54, %s5353_s19 }
 0x8d8   :  { %1670 = vrot.lane.b32.xlu0 %v5555_v61, %s5353_s19 }
 0x8dc   :  { %1668 = vrot.lane.b32.xlu0 %v5572_v3, %s5354_s2 }
 0x93f   :  { %v1331_v22 = vpop.xlane.xlu0 %1330 }
 0x940   :  { %5262 = vrcp.f32 %v1331_v22 }
 0x943   :  { %v1342_v24 = vpop.permute.xlu0 %1341 }
 0x944   :  { %4907 = vmatpush3.msk.msra.mxu1 %vm484_vm5, %v1342_v24 }
 0x945   :  { %4908 = vmatprep.subr.mxu1 %v5342_v57 }
 0x946   :  { %4909 = vmatpush3.msra.mxu1 %v1340_v53 }
 0x947   :  { %v1501_v25 = vpop.permute.xlu0 %1500 }
 0x948   :  { %4920 = vmatprep.subr.mxu1 %v1501_v25 }
 0x94b   :  { %v1673_v33 = vpop.permute.xlu0 %1672 }
 0x94d   :  { %v5263_v58 = vpop.eup %5262 }
 0x94e   :  { %v1337_v26 = vmul.f32 %v5263_v58, %v5259_v17 }
 0x950   :  { %4911 = vmatmul.mubr.msk.f32.vlgmr.msra.gmra.mxu1 %vm453_vm4, %v1337_v26 }
 0x951   :  { %4921 = vmatpush3.msra.mxu1 %v1501_v25 }
 0x952   :  { %4932 = vmatprep.subr.mxu1 %v5342_v57 }
 0x978   :  { %v1495_v59 = vpop.f32.mrf.mxu0 }
 0x97a   :  { %v4919_v27 = vpop.f32.mrf.mxu0 }
 0x980   :  { %v1664_v3 = vpop.f32.mrf.mxu0 }
 0x981   :  { %v1665_v29 = vadd.f32 %v1664_v3, %v5580_v8 }
 0x982   :  { %v4931_v30 = vpop.f32.mrf.mxu0 }
 0x983   :  { %v1750_v31 = vsel %vm453_vm4, %v1665_v29, -inf }
 0x984   :  { %1751 = vmax.xlane.f32.xlu1 %v1750_v31 }
 0x995   :  { %1774 = vrot.lane.b32.xlu1 %v5543_v49, %s5355_s20  ;;  %v1671_v49 = vpop.permute.xlu0 %1670 }
 0x999   :  { %1772 = vrot.lane.b32.xlu1 %v5541_v48, %s5355_s20  ;;  %v1669_v48 = vpop.permute.xlu0 %1668 }
 0x99d   :  { %1852 = vrot.lane.b32.xlu1 %v5555_v61, %s5355_s20 }
 0x9a1   :  { %1933 = vrot.lane.b32.xlu1 %v5472_v56, %s5349_s16 }
 0xa0d   :  { %v1752_v34 = vpop.xlane.xlu1 %1751 }
 0xa0e   :  { %v1756_v61 = vsub.f32 %v1665_v29, %v1752_v34 }
 0xa10   :  { %v1415_v35 = vpop.f32.mrf.mxu1  ;;  %v1758_v38 = vmul.f32 1.442695, %v1756_v61  ;;  %v2169_v61 = vld [vmem:[%s6358_s5 + $0x68] sm:$0xff] }
 0xa11   :  { %v1775_v36 = vpop.permute.xlu1 %1774  ;;  %4922 = vmatprep.mubr.msk.f32.mxu1 %vm293_vm2, %v1415_v35  ;;  %v2068_v35 = vld [vmem:[%s6357_s4 + $0x38] sm:$0xff] }
 0xa12   :  { %4940 = vmatpush3.msk.msra.mxu0 %vm484_vm5, %v1775_v36  ;;  %v4912_v37 = vpop.f32.mrf.mxu1  ;;  %4923 = vmatmul.mubr.msk.f32.vlgmr.msra.gmra.mxu1 %vm293_vm2, %v1495_v59  ;;  %5264 = vpow2.f32 %v1758_v38  ;;  %v2067_v36 = vld [vmem:[%s6357_s4 + $0x28] sm:$0xff]  ;;  %v2168_v38 = vld [vmem:[%s6358_s5 + $0x60] sm:$0xff] }
 0xa13   :  { %4933 = vmatpush3.xpose.msk.msra.mxu1 %vm293_vm2, %v1673_v33  ;;  %4941 = vmatprep.subr.mxu0 %v5342_v57  ;;  %v2066_v37 = vld [vmem:[%s6357_s4 + $0x18] sm:$0xff] }
 0xa14   :  { %4934 = vmatprep.subr.mxu1 %v5342_v57  ;;  %4936 = vmatprep.mubr.msk.f32.mxu1 %vm5343_vm1, %v5342_v57 }
 0xa15   :  { %v1773_v56 = vpop.permute.xlu1 %1772 }
 0xa16   :  { %4942 = vmatpush3.msra.mxu0 %v1773_v56  ;;  %v2171_v56 = vld [vmem:[%s6358_s5 + $0x78] sm:$0xff] }
 0xa17   :  { %4935 = vmatpush3.xpose.msk.msra.mxu1 %vm293_vm2, %v1671_v49  ;;  %v2065_v49 = vld [vmem:[%s6357_s4 + $0x8] sm:$0xff] }
 0xa18   :  { %4946 = vmatprep.subr.mxu1 %v5342_v57 }
 0xa19   :  { %v1853_v5 = vpop.permute.xlu1 %1852 }
 0xa1a   :  { %4937 = vmatmul.mubr.msk.f32.vlgmr.msra.gmra.mxu1 %vm293_vm2, %v1669_v48  ;;  %v2170_v48 = vld [vmem:[%s6358_s5 + $0x70] sm:$0xff] }
 0xa1b   :  { %4950 = vmatprep.mubr.msk.f32.mxu1 %vm5343_vm1, %v5342_v57 }
 0xa1d   :  { %v1934_v6 = vpop.permute.xlu1 %1933 }
 0xa1e   :  { %4953 = vmatprep.subr.mxu0 %v1934_v6 }
 0xa1f   :  { %v5265_v53 = vpop.eup %5264 }
 0xa20   :  { %v1762_v55 = vsel %vm453_vm4, %v5265_v53, 0.0 }
 0xad2   :  { %v4924_v40 = vpop.f32.mrf.mxu1 }
 0xad3   :  { %v1585_v43 = vadd.f32 %v4924_v40, %v1150_v39  ;;  %v2167_v39 = vld [vmem:[%s6358_s5 + $0x58] sm:$0xff]  ;;  %v2166_v40 = vld [vmem:[%s6358_s5 + $0x50] sm:$0xff] }
 0xad4   :  { %v1575_v45 = vpop.f32.mrf.mxu1 }
 0xad5   :  { %v1584_v46 = vadd.f32 %v1575_v45, %v1145_v41  ;;  %v2165_v41 = vld [vmem:[%s6358_s5 + $0x48] sm:$0xff]  ;;  %v2163_v45 = vld [vmem:[%s6358_s5 + $0x38] sm:$0xff] }
 0xada   :  { %v1746_v47 = vpop.f32.mrf.mxu1 }
 0xadb   :  { %v1747_v50 = vadd.f32 %v1746_v47, %v5580_v8  ;;  %v2161_v47 = vld [vmem:[%s6358_s5 + $0x28] sm:$0xff] }
 0xadc   :  { %v4938_v51 = vpop.f32.mrf.mxu1 }
 0xadd   :  { %v1753_v52 = vsel %vm453_vm4, %v1747_v50, -inf }
 0xade   :  { %1754 = vmax.xlane.f32.xlu0 %v1753_v52 }
 0xae2   :  { %1763 = vadd.xlane.f32.xlu0 %v1762_v55 }
 0xb67   :  { %v1755_v42 = vpop.xlane.xlu0 %1754 }
 0xb68   :  { %v1757_v62 = vsub.f32 %v1747_v50, %v1755_v42  ;;  %v2160_v50 = vld [vmem:[%s6358_s5 + $0x20] sm:$0xff] }
 0xb6a   :  { %v1760_v63 = vmul.f32 1.442695, %v1757_v62 }
 0xb6b   :  { %v1764_v1 = vpop.xlane.xlu0 %1763 }
 0xb6c   :  { %5266 = vpow2.f32 %v1760_v63 }
 0xb6d   :  { %5268 = vrcp.f32 %v1764_v1  ;;  %v4510_v1 = vld [vmem:[%s6359_s6 + $0x4] ss:$0 sm:$0xff] }
 0xb79   :  { %v5267_v44 = vpop.eup %5266 }
 0xb7a   :  { %v5269_v2 = vpop.eup %5268  ;;  %v1765_v4 = vsel %vm453_vm4, %v5267_v44, 0.0 }
 0xb7b   :  { %1766 = vadd.xlane.f32.xlu0 %v1765_v4  ;;  %v1770_v0 = vmul.f32 %v5269_v2, %v5265_v53  ;;  %v4511_v2 = vld [vmem:[%s6359_s6 + $0x5] ss:$0 sm:$0xff] }
 0xb7d   :  { %4944 = vmatmul.mubr.msk.f32.vlgmr.msra.gmra.mxu0 %vm453_vm4, %v1770_v0 }
 0xb7e   :  { %4954 = vmatpush3.msra.mxu0 %v1934_v6 }
 0xb7f   :  { %4969 = vmatprep.subr.mxu0 %v2171_v56 }
 0xb91   :  { %1854 = vrot.lane.b32.xlu0 %v5549_v54, %s5355_s20 }
 0xc04   :  { %v1767_v7 = vpop.xlane.xlu0 %1766 }
 0xc05   :  { %5270 = vrcp.f32 %v1767_v7 }
 0xc08   :  { %v1855_v9 = vpop.permute.xlu0 %1854 }
 0xc09   :  { %4947 = vmatpush3.msk.msra.mxu1 %vm484_vm5, %v1855_v9 }
 0xc0a   :  { %4948 = vmatprep.subr.mxu1 %v5342_v57 }
 0xc0b   :  { %4949 = vmatpush3.msra.mxu1 %v1853_v5 }
 0xc0c   :  { %4958 = vmatprep.subr.mxu1 %v2068_v35 }
 0xc12   :  { %v5271_v11 = vpop.eup %5270 }
 0xc13   :  { %v1771_v12 = vmul.f32 %v5271_v11, %v5267_v44  ;;  %v5878_v11 = vld [vmem:[%s6357_s4 + $0x70] sm:$0xff] }
 0xc15   :  { %4951 = vmatmul.mubr.msk.f32.vlgmr.msra.gmra.mxu1 %vm453_vm4, %v1771_v12  ;;  %v5884_v12 = vld [vmem:[%s6357_s4 + $0x60] sm:$0xff] }
 0xc16   :  { %4959 = vmatpush3.msra.mxu1 %v2068_v35 }
 0xc17   :  { %4960 = vmatprep.subr.mxu1 %v2067_v36 }
 0xc18   :  { %4961 = vmatpush3.msra.mxu1 %v2067_v36 }
 0xc19   :  { %4962 = vmatprep.subr.mxu1 %v2066_v37 }
 0xc1a   :  { %4963 = vmatpush3.msra.mxu1 %v2066_v37 }
 0xc1b   :  { %4964 = vmatprep.subr.mxu1 %v2065_v49 }
 0xc1c   :  { %4965 = vmatpush3.msra.mxu1 %v2065_v49 }
 0xc1d   :  { %5205 = vmatprep.subr.mxu1 %v5342_v57 }
 0xc3d   :  { %v1848_v13 = vpop.f32.mrf.mxu0 }
 0xc3e   :  { %4955 = vmatprep.mubr.msk.f32.mxu0 %vm293_vm2, %v1848_v13  ;;  %v5889_v13 = vld [vmem:[%s6359_s6 + $0x8] ss:$0 sm:$0xff] }
 0xc3f   :  { %v4945_v54 = vpop.f32.mrf.mxu0 }
 0xc40   :  { %v2295_v54 = vmul.f32 %v5889_v13, %v5519_v28  ;;  %v5913_v28 = vld [vmem:[%s6359_s6 + $0x9] ss:$0 sm:$0xff] }
 0xcd5   :  { %v1928_v14 = vpop.f32.mrf.mxu1 }
 0xcd6   :  { %4956 = vmatmul.mubr.msk.f32.vlgmr.msra.gmra.mxu0 %vm293_vm2, %v1928_v14  ;;  %v5900_v14 = vld [vmem:[%s6357_s4 + $0x50] sm:$0xff] }
 0xcd7   :  { %v4952_v16 = vpop.f32.mrf.mxu1  ;;  %4970 = vmatpush3.msra.mxu0 %v2171_v56 }
 0xcd8   :  { %4971 = vmatprep.subr.mxu0 %v2170_v48  ;;  %v5907_v16 = vld [vmem:[%s6357_s4 + $0x40] sm:$0xff] }
 0xcd9   :  { %4972 = vmatpush3.msra.mxu0 %v2170_v48 }
 0xcda   :  { %4973 = vmatprep.subr.mxu0 %v2169_v61 }
 0xcdb   :  { %4974 = vmatpush3.msra.mxu0 %v2169_v61 }
 0xcdc   :  { %4975 = vmatprep.subr.mxu0 %v2168_v38 }
 0xcdd   :  { %4976 = vmatpush3.msra.mxu0 %v2168_v38 }
 0xcde   :  { %4977 = vmatprep.subr.mxu0 %v2167_v39 }
 0xcdf   :  { %4978 = vmatpush3.msra.mxu0 %v2167_v39 }
 0xce0   :  { %4979 = vmatprep.subr.mxu0 %v2166_v40 }
 0xce1   :  { %4980 = vmatpush3.msra.mxu0 %v2166_v40 }
 0xce2   :  { %4981 = vmatprep.subr.mxu0 %v2165_v41 }
 0xce3   :  { %4982 = vmatpush3.msra.mxu0 %v2165_v41 }
 0xd96   :  { %v4957_v17 = vpop.f32.mrf.mxu0 }
 0xd97   :  { %v2018_v18 = vadd.f32 %v4957_v17, %v1585_v43  ;;  %v2164_v43 = vld [vmem:[%s6358_s5 + $0x40] sm:$0xff]  ;;  %v2304_v17 = vadd.f32 %v5913_v28, %v2295_v54 }
 0xd98   :  { %v2008_v60 = vpop.f32.mrf.mxu0  ;;  %4983 = vmatprep.subr.mxu0 %v2164_v43 }
 0xd99   :  { %v2020_v20 = vadd.f32 %v2018_v18, %v5430_v15  ;;  %v2017_v21 = vadd.f32 %v2008_v60, %v1584_v46  ;;  %4984 = vmatpush3.msra.mxu0 %v2164_v43  ;;  %v2162_v46 = vld [vmem:[%s6358_s5 + $0x30] sm:$0xff]  ;;  %v2296_v18 = vmul.f32 %v5889_v13, %v5526_v32  ;;  %v2159_v32 = vld [vmem:[%s6358_s5 + $0x18] sm:$0xff] }
 0xd9a   :  { %4985 = vmatprep.subr.mxu0 %v2163_v45  ;;  %v2158_v60 = vld [vmem:[%s6358_s5 + $0x10] sm:$0xff] }
 0xd9b   :  { %v5796_v22 = vadd.f32 %v4509_v19, %v2020_v20  ;;  %v2019_v24 = vadd.f32 %v2017_v21, %v5425_v10  ;;  %4986 = vmatpush3.msra.mxu0 %v2163_v45  ;;  %v2157_v20 = vld [vmem:[%s6358_s5 + $0x8] sm:$0xff]  ;;  %v2156_v21 = vld [vmem:[%s6358_s5] sm:$0xff] }
 0xd9c   :  { %4987 = vmatprep.subr.mxu0 %v2162_v46 }
 0xd9d   :  { %v5799_v25 = vadd.f32 %v4509_v19, %v2019_v24  ;;  %v2030_v58 = vsel %vm78_vm0, %v5796_v22, 0.0  ;;  %4988 = vmatpush3.msra.mxu0 %v2162_v46  ;;  %v2305_v19 = vadd.f32 %v5913_v28, %v2296_v18  ;;  %v4512_v24 = vld [vmem:[%s6359_s6 + $0x6] ss:$0 sm:$0xff] }
 0xd9e   :  { %2031 = vadd.xlane.f32.xlu1 %v2030_v58  ;;  %4989 = vmatprep.subr.mxu0 %v2161_v47 }
 0xd9f   :  { %v2027_v26 = vsel %vm78_vm0, %v5799_v25, 0.0  ;;  %4990 = vmatpush3.msra.mxu0 %v2161_v47 }
 0xda0   :  { %2028 = vadd.xlane.f32.xlu0 %v2027_v26  ;;  %4991 = vmatprep.subr.mxu0 %v2160_v50 }
 0xda1   :  { %4992 = vmatpush3.msra.mxu0 %v2160_v50  ;;  %v4530_v50 = vld [vmem:[%s6359_s6 + $0xa] ss:$0 sm:$0xff] }
 0xda2   :  { %4993 = vmatprep.subr.mxu0 %v2159_v32 }
 0xda3   :  { %4994 = vmatpush3.msra.mxu0 %v2159_v32 }
 0xda4   :  { %4995 = vmatprep.subr.mxu0 %v2158_v60 }
 0xda5   :  { %4996 = vmatpush3.msra.mxu0 %v2158_v60 }
 0xda6   :  { %4997 = vmatprep.subr.mxu0 %v2157_v20 }
 0xda7   :  { %4998 = vmatpush3.msra.mxu0 %v2157_v20 }
 0xda8   :  { %4999 = vmatprep.subr.mxu0 %v2156_v21 }
 0xda9   :  { %5000 = vmatpush3.msra.mxu0 %v2156_v21 }
 0xdaa   :  { %5004 = vmatprep.subr.mxu0 %v5342_v57 }
 0xe27   :  { %v2032_v59 = vpop.xlane.xlu1 %2031 }
 0xe28   :  { %v2034_v27 = vmul.f32 0.03125, %v2032_v59 }
 0xe29   :  { %v2029_v3 = vpop.xlane.xlu0 %2028 }
 0xe2a   :  { %v2033_v29 = vmul.f32 0.03125, %v2029_v3  ;;  %v5806_v15 = vsub.f32 %v5796_v22, %v2034_v27 }
 0xe2c   :  { %v5809_v30 = vsub.f32 %v5799_v25, %v2033_v29  ;;  %v2038_v33 = vmul.f32 %v5806_v15, %v5806_v15 }
 0xe2e   :  { %v2037_v10 = vmul.f32 %v5809_v30, %v5809_v30  ;;  %v2042_v34 = vsel %vm78_vm0, %v2038_v33, 0.0  ;;  %v4515_v33 = vld [vmem:[%s6359_s6 + $0x7] ss:$0 sm:$0xff] }
 0xe30   :  { %v2039_v31 = vsel %vm78_vm0, %v2037_v10, 0.0 }
 0xe31   :  { %2040 = vadd.xlane.f32.xlu0 %v2039_v31 }
 0xe35   :  { %2043 = vadd.xlane.f32.xlu0 %v2042_v34 }
 0xeba   :  { %v2041_v51 = vpop.xlane.xlu0 %2040 }
 0xebb   :  { %v2045_v52 = vmul.f32 0.03125, %v2041_v51 }
 0xebd   :  { %v2047_v53 = vadd.f32 1e-05, %v2045_v52 }
 0xebe   :  { %v2044_v55 = vpop.xlane.xlu0 %2043 }
 0xebf   :  { %5272 = vrsqrt.f32 %v2047_v53  ;;  %v2046_v42 = vmul.f32 0.03125, %v2044_v55 }
 0xec1   :  { %v2048_v62 = vadd.f32 1e-05, %v2046_v42 }
 0xec3   :  { %5274 = vrsqrt.f32 %v2048_v62 }
 0xecc   :  { %v5273_v63 = vpop.eup %5272 }
 0xecd   :  { %v2051_v44 = vmul.f32 %v5273_v63, %v5809_v30 }
 0xecf   :  { %v2057_v4 = vmul.f32 %v4510_v1, %v2051_v44 }
 0xed0   :  { %v5275_v0 = vpop.eup %5274 }
 0xed1   :  { %v2052_v5 = vmul.f32 %v5275_v0, %v5806_v15  ;;  %v2063_v6 = vadd.f32 %v4511_v2, %v2057_v4 }
 0xed3   :  { %v2058_v7 = vmul.f32 %v4510_v1, %v2052_v5  ;;  %4966 = vmatprep.mubr.msk.f32.mxu1 %vm78_vm0, %v2063_v6 }
 0xed5   :  { %v2064_v9 = vadd.f32 %v4511_v2, %v2058_v7 }
 0xed7   :  { %4967 = vmatmul.mubr.msk.f32.vlgmr.msra.gmra.mxu1 %vm78_vm0, %v2064_v9 }
 0xed8   :  { %5209 = vmatpush3.msra.mxu1 %v5878_v11  ;;  %5021 = vmatprep.mubr.msk.f32.mxu1 %vm5343_vm1, %v5342_v57 }
 0xed9   :  { %5206 = vmatprep.subr.mxu1 %v5342_v57 }
 0xeda   :  { %5210 = vmatpush3.msra.mxu1 %v5884_v12 }
 0xedb   :  { %5207 = vmatprep.subr.mxu1 %v5342_v57 }
 0xedc   :  { %5211 = vmatpush3.msra.mxu1 %v5900_v14 }
 0xedd   :  { %5208 = vmatprep.subr.mxu1 %v5342_v57 }
 0xede   :  { %5212 = vmatpush3.msra.mxu1 %v5907_v16 }
 0xedf   :  { %5022 = vmatmul.mubr.msk.f32.vlgmr.msra.gmra.mxu1 %vm78_vm0, %v2304_v17  ;;  %5027 = vmatprep.subr.mxu1 %v5342_v57 }
 0xee0   :  { %5024 = vmatprep.mubr.msk.f32.mxu1 %vm5343_vm1, %v5342_v57 }
 0xee3   :  { %5025 = vmatmul.mubr.msk.f32.gmra.mxu1 %vm78_vm0, %v2305_v19  ;;  %v2294_v19 = vmul.f32 %v5889_v13, %v5512_v23 }
 0xee4   :  { %5031 = vmatprep.mubr.msk.f32.mxu1 %vm5343_vm1, %v5342_v57 }
 0xee5   :  { %v2303_v32 = vadd.f32 %v5913_v28, %v2294_v19 }
 0xf97   :  { %v4968_v58 = vpop.f32.mrf.mxu1 }
 0xf98   :  { %v2151_v26 = vadd.f32 %v4968_v58, %v4512_v24 }
 0xf99   :  { %v2145_v59 = vpop.f32.mrf.mxu1 }
 0xf9a   :  { %v2146_v27 = vadd.f32 %v4512_v24, %v2145_v59  ;;  %v2155_v29 = vmax.f32 %v2151_v26, 0.0 }
 0xf9c   :  { %v2154_v3 = vmax.f32 %v2146_v27, 0.0 }
 0xf9e   :  { %5001 = vmatprep.mubr.f32.mxu0 %v2154_v3 }
 0xf9f   :  { %v2411_v15 = vpop.f32.mrf.mxu1  ;;  %5002 = vmatmul.mubr.f32.vlgmr.msra.gmra.mxu0 %v2155_v29 }
 0xfa0   :  { %5005 = vmatpush3.msra.mxu0 %v5878_v11  ;;  %5012 = vmatprep.mubr.msk.f32.mxu0 %vm5343_vm1, %v5342_v57  ;;  %v5978_v53 = vadd.f32 %v4530_v50, %v2411_v15 }
 0xfa1   :  { %v5023_v30 = vpop.f32.mrf.mxu1  ;;  %5006 = vmatprep.subr.mxu0 %v5342_v57 }
 0xfa2   :  { %5007 = vmatpush3.msra.mxu0 %v5884_v12  ;;  %v2426_v27 = vcombine.high %v5978_v53, %v5978_v53 }
 0xfa3   :  { %v2416_v10 = vpop.f32.mrf.mxu1  ;;  %5008 = vmatprep.subr.mxu0 %v5342_v57 }
 0xfa4   :  { %5009 = vmatpush3.msra.mxu0 %v5900_v14  ;;  %v2417_v51 = vadd.f32 %v4530_v50, %v2416_v10 }
 0xfa5   :  { %v5026_v31 = vpop.f32.mrf.mxu1  ;;  %5010 = vmatprep.subr.mxu0 %v5342_v57 }
 0xfa6   :  { %5011 = vmatpush3.msra.mxu0 %v5907_v16  ;;  %v5974_v52 = vcombine.high %v2417_v51, %v2417_v51 }
 0xfa7   :  { %5034 = vmatprep.subr.mxu0 %v5342_v57 }
0x105f   :  { %v5003_v34 = vpop.f32.mrf.mxu0 }
0x1060   :  { %v2248_v35 = vadd.f32 %v5003_v34, %v4515_v33 }
0x1061   :  { %v2242_v36 = vpop.f32.mrf.mxu0 }
0x1062   :  { %v5958_v37 = vadd.f32 %v2248_v35, %v5796_v22  ;;  %v2243_v49 = vadd.f32 %v4515_v33, %v2242_v36 }
0x1064   :  { %v5961_v56 = vadd.f32 %v2243_v49, %v5799_v25  ;;  %v2265_v48 = vsel %vm78_vm0, %v5958_v37, 0.0 }
0x1065   :  { %2266 = vadd.xlane.f32.xlu1 %v2265_v48 }
0x1066   :  { %v2262_v61 = vsel %vm78_vm0, %v5961_v56, 0.0 }
0x1067   :  { %2263 = vadd.xlane.f32.xlu0 %v2262_v61 }
0x10ee   :  { %v2267_v38 = vpop.xlane.xlu1 %2266 }
0x10ef   :  { %v2269_v39 = vmul.f32 0.03125, %v2267_v38 }
0x10f0   :  { %v2264_v40 = vpop.xlane.xlu0 %2263 }
0x10f1   :  { %v2271_v41 = vsub.f32 %v5958_v37, %v2269_v39  ;;  %v2268_v43 = vmul.f32 0.03125, %v2264_v40 }
0x10f3   :  { %v2270_v22 = vsub.f32 %v5961_v56, %v2268_v43  ;;  %v2273_v45 = vmul.f32 %v2271_v41, %v2271_v41 }
0x10f5   :  { %v2277_v25 = vsel %vm78_vm0, %v2273_v45, 0.0  ;;  %v2272_v46 = vmul.f32 %v2270_v22, %v2270_v22 }
0x10f6   :  { %2278 = vadd.xlane.f32.xlu1 %v2277_v25 }
0x10f7   :  { %v2274_v47 = vsel %vm78_vm0, %v2272_v46, 0.0 }
0x10f8   :  { %2275 = vadd.xlane.f32.xlu0 %v2274_v47 }
0x1107   :  { %2517 = vrot.lane.b32.xlu1 %v5974_v52, %s5344_s11 }
0x110e   :  { %2435 = vrot.lane.b32.xlu0 %v5978_v53, %s5344_s11 }
0x117f   :  { %v2279_v55 = vpop.xlane.xlu1 %2278 }
0x1180   :  { %v2281_v42 = vmul.f32 0.03125, %v2279_v55 }
0x1181   :  { %v2276_v62 = vpop.xlane.xlu0 %2275 }
0x1182   :  { %v2283_v63 = vadd.f32 1e-05, %v2281_v42  ;;  %v2280_v1 = vmul.f32 0.03125, %v2276_v62 }
0x1183   :  { %v2518_v17 = vpop.permute.xlu1 %2517 }
0x1184   :  { %5276 = vrsqrt.f32 %v2283_v63  ;;  %v2282_v44 = vadd.f32 1e-05, %v2280_v1 }
0x1185   :  { %v2436_v2 = vpop.permute.xlu0 %2435 }
0x1186   :  { %5278 = vrsqrt.f32 %v2282_v44  ;;  %5028 = vmatpush3.xpose.msk.msra.mxu1 %vm293_vm2, %v2436_v2 }
0x1187   :  { %5029 = vmatprep.subr.mxu1 %v5342_v57 }
0x1191   :  { %v5277_v4 = vpop.eup %5276 }
0x1192   :  { %v2287_v6 = vmul.f32 %v5277_v4, %v2271_v41 }
0x1193   :  { %v5279_v0 = vpop.eup %5278 }
0x1194   :  { %v2286_v5 = vmul.f32 %v5279_v0, %v2270_v22  ;;  %v2293_v54 = vmul.f32 %v5889_v13, %v2287_v6 }
0x1196   :  { %v2292_v7 = vmul.f32 %v5889_v13, %v2286_v5  ;;  %v2302_v18 = vadd.f32 %v5913_v28, %v2293_v54 }
0x1198   :  { %v2301_v9 = vadd.f32 %v5913_v28, %v2292_v7  ;;  %v6008_v28 = vcombine.low %v2426_v27, %v2417_v51 }
0x119a   :  { %5013 = vmatmul.mubr.msk.f32.vlgmr.msra.gmra.mxu0 %vm78_vm0, %v2301_v9 }
0x119b   :  { %5035 = vmatpush3.xpose.msk.msra.mxu0 %vm293_vm2, %v2518_v17  ;;  %5015 = vmatprep.mubr.msk.f32.mxu0 %vm5343_vm1, %v5342_v57 }
0x119c   :  { %5036 = vmatprep.subr.mxu0 %v5342_v57 }
0x119e   :  { %5016 = vmatmul.mubr.msk.f32.gmra.mxu0 %vm78_vm0, %v2302_v18 }
0x119f   :  { %5018 = vmatprep.mubr.msk.f32.mxu0 %vm5343_vm1, %v5342_v57 }
0x11a2   :  { %5019 = vmatmul.mubr.msk.f32.gmra.mxu0 %vm78_vm0, %v2303_v32 }
0x11a3   :  { %5038 = vmatprep.mubr.msk.f32.mxu0 %vm5343_vm1, %v5342_v57 }
0x125a   :  { %v2396_v60 = vpop.f32.mrf.mxu0 }
0x125b   :  { %v2397_v3 = vadd.f32 %v4530_v50, %v2396_v60 }
0x125c   :  { %v5014_v20 = vpop.f32.mrf.mxu0 }
0x125d   :  { %v6013_v15 = vmul.f32 0.35355338, %v2397_v3 }
0x125e   :  { %v2401_v21 = vpop.f32.mrf.mxu0 }
0x125f   :  { %v2402_v30 = vadd.f32 %v4530_v50, %v2401_v21 }
0x1260   :  { %v5017_v24 = vpop.f32.mrf.mxu0 }
0x1261   :  { %v6021_v31 = vmul.f32 0.35355338, %v2402_v30 }
0x1262   :  { %v2406_v58 = vpop.f32.mrf.mxu0 }
0x1263   :  { %v2407_v23 = vadd.f32 %v4530_v50, %v2406_v58 }
0x1264   :  { %v5020_v13 = vpop.f32.mrf.mxu0 }
0x1265   :  { %v2425_v26 = vcombine.high %v2407_v23, %v2407_v23 }
0x1267   :  { %v6002_v59 = vcombine.low %v2407_v23, %v2425_v26 }
0x1269   :  { %2433 = vrot.lane.b32.xlu1 %v6002_v59, %s5344_s11 }
0x126d   :  { %2515 = vrot.lane.b32.xlu1 %v6008_v28, %s5344_s11  ;;  %s5320_s11 = scalar_lea.vmem %s4443_s26, 256 }
0x126e   :  { %p5321_p0 = scmp.ne.s32.totalorder %s4443_s26, %s5320_s11  ;;  %p5326_p2 = scmp.lt.s32.totalorder %s5320_s11, %s5320_s11 }
0x1270   :  { %p5327_p3 = por %p5326_p2, %p5325_p1 }
0x1272   :  { %p5328_p4 = pnand %p5327_p3, %p5321_p0 }
0x12db   :  { %v2434_v29 = vpop.permute.xlu1 %2433 }
0x12dc   :  { %5030 = vmatpush3.xpose.msk.msra.mxu1 %vm293_vm2, %v2434_v29 }
0x12dd   :  { %5041 = vmatprep.subr.mxu1 %v5342_v57 }
0x12df   :  { %v2516_v10 = vpop.permute.xlu1 %2515  ;;  %5032 = vmatmul.mubr.msk.f32.vlgmr.msra.gmra.mxu1 %vm293_vm2, %v6013_v15 }
0x12e0   :  { %5037 = vmatpush3.xpose.msk.msra.mxu0 %vm293_vm2, %v2516_v10  ;;  %5045 = vmatprep.mubr.msk.f32.mxu1 %vm5343_vm1, %v5342_v57 }
0x12e1   :  { %5055 = vmatprep.subr.mxu0 %v5342_v57 }
0x12e3   :  { %5039 = vmatmul.mubr.msk.f32.vlgmr.msra.gmra.mxu0 %vm293_vm2, %v6021_v31 }
0x12e4   :  { %5059 = vmatprep.mubr.msk.f32.mxu0 %vm5343_vm1, %v5342_v57 }
0x139f   :  { %v2510_v33 = vpop.f32.mrf.mxu1 }
0x13a0   :  { %v2511_v34 = vadd.f32 %v2510_v33, %v5580_v8 }
0x13a1   :  { %v5033_v35 = vpop.f32.mrf.mxu1 }
0x13a2   :  { %v2596_v36 = vsel %vm453_vm4, %v2511_v34, -inf }
0x13a3   :  { %v2592_v49 = vpop.f32.mrf.mxu0  ;;  %2597 = vmax.xlane.f32.xlu0 %v2596_v36 }
0x13a4   :  { %v2593_v48 = vadd.f32 %v2592_v49, %v5580_v8 }
0x13a5   :  { %v5040_v61 = vpop.f32.mrf.mxu0 }
0x13a6   :  { %v2599_v38 = vsel %vm453_vm4, %v2593_v48, -inf }
0x13a7   :  { %2600 = vmax.xlane.f32.xlu1 %v2599_v38 }
0x13b8   :  { %2618 = vrot.lane.b32.xlu1 %v6002_v59, %s5345_s12 }
0x13b9   :  { %2620 = vrot.lane.b32.xlu0 %v5978_v53, %s5345_s12 }
0x13bc   :  { %2700 = vrot.lane.b32.xlu1 %v5974_v52, %s5345_s12 }
0x13c0   :  { %2698 = vrot.lane.b32.xlu1 %v6008_v28, %s5345_s12 }
0x13c4   :  { %2864 = vrot.lane.b32.xlu1 %v5974_v52, %s5346_s13 }
0x13c8   :  { %2862 = vrot.lane.b32.xlu1 %v6008_v28, %s5346_s13 }
0x13cc   :  { %2860 = vrot.lane.b32.xlu1 %v6021_v31, %s5347_s14 }
0x142c   :  { %v2598_v39 = vpop.xlane.xlu0 %2597 }
0x142d   :  { %v2602_v40 = vsub.f32 %v2511_v34, %v2598_v39 }
0x142f   :  { %v2604_v45 = vmul.f32 1.442695, %v2602_v40 }
0x1430   :  { %v2601_v41 = vpop.xlane.xlu1 %2600  ;;  %v2621_v43 = vpop.permute.xlu0 %2620 }
0x1431   :  { %v2603_v22 = vsub.f32 %v2593_v48, %v2601_v41  ;;  %5042 = vmatpush3.msk.msra.mxu1 %vm484_vm5, %v2621_v43 }
0x1432   :  { %5043 = vmatprep.subr.mxu1 %v5342_v57 }
0x1433   :  { %v2606_v25 = vmul.f32 1.442695, %v2603_v22 }
0x1434   :  { %v2619_v46 = vpop.permute.xlu1 %2618 }
0x1435   :  { %5280 = vpow2.f32 %v2606_v25  ;;  %5044 = vmatpush3.msra.mxu1 %v2619_v46 }
0x1436   :  { %5048 = vmatprep.subr.mxu1 %v5342_v57  ;;  %5282 = vpow2.f32 %v2604_v45 }
0x1438   :  { %v2701_v63 = vpop.permute.xlu1 %2700 }
0x143c   :  { %v2699_v2 = vpop.permute.xlu1 %2698 }
0x1440   :  { %v2865_v7 = vpop.permute.xlu1 %2864 }
0x1442   :  { %v5281_v47 = vpop.eup %5280 }
0x1443   :  { %v2611_v50 = vsel %vm453_vm4, %v5281_v47, 0.0  ;;  %v5283_v51 = vpop.eup %5282 }
0x1444   :  { %2612 = vadd.xlane.f32.xlu0 %v2611_v50  ;;  %v2608_v55 = vsel %vm453_vm4, %v5283_v51, 0.0  ;;  %v2863_v54 = vpop.permute.xlu1 %2862 }
0x1448   :  { %2609 = vadd.xlane.f32.xlu0 %v2608_v55  ;;  %v2861_v17 = vpop.permute.xlu1 %2860 }
0x145e   :  { %2782 = vrot.lane.b32.xlu0 %v5978_v53, %s5346_s13 }
0x1462   :  { %2780 = vrot.lane.b32.xlu0 %v6002_v59, %s5346_s13 }
0x1466   :  { %2778 = vrot.lane.b32.xlu0 %v6013_v15, %s5347_s14 }
0x14cd   :  { %v2613_v42 = vpop.xlane.xlu0 %2612 }
0x14d1   :  { %v2610_v62 = vpop.xlane.xlu0 %2609 }
0x14d2   :  { %5284 = vrcp.f32 %v2610_v62 }
0x14d3   :  { %5286 = vrcp.f32 %v2613_v42 }
0x14d5   :  { %v2783_v1 = vpop.permute.xlu0 %2782 }
0x14d6   :  { %5056 = vmatpush3.xpose.msk.msra.mxu0 %vm293_vm2, %v2783_v1 }
0x14d7   :  { %5057 = vmatprep.subr.mxu0 %v5342_v57 }
0x14d9   :  { %v2781_v44 = vpop.permute.xlu0 %2780 }
0x14da   :  { %5058 = vmatpush3.xpose.msk.msra.mxu0 %vm293_vm2, %v2781_v44 }
0x14db   :  { %5069 = vmatprep.subr.mxu0 %v5342_v57 }
0x14dd   :  { %v2779_v4 = vpop.permute.xlu0 %2778 }
0x14de   :  { %5060 = vmatmul.mubr.msk.f32.vlgmr.msra.gmra.mxu0 %vm293_vm2, %v2779_v4 }
0x14df   :  { %v5285_v0 = vpop.eup %5284  ;;  %5073 = vmatprep.mubr.msk.f32.mxu0 %vm5343_vm1, %v5342_v57 }
0x14e0   :  { %v2616_v5 = vmul.f32 %v5285_v0, %v5283_v51  ;;  %v5287_v6 = vpop.eup %5286 }
0x14e1   :  { %v2617_v9 = vmul.f32 %v5287_v6, %v5281_v47 }
0x14e2   :  { %5046 = vmatmul.mubr.msk.f32.vlgmr.msra.gmra.mxu1 %vm453_vm4, %v2616_v5 }
0x14e3   :  { %5049 = vmatpush3.msk.msra.mxu1 %vm484_vm5, %v2701_v63  ;;  %5052 = vmatprep.mubr.msk.f32.mxu1 %vm5343_vm1, %v5342_v57 }
0x14e4   :  { %5050 = vmatprep.subr.mxu1 %v5342_v57 }
0x14e5   :  { %5051 = vmatpush3.msra.mxu1 %v2699_v2 }
0x14e6   :  { %5062 = vmatprep.subr.mxu1 %v5342_v57  ;;  %5053 = vmatmul.mubr.msk.f32.vlgmr.msra.gmra.mxu1 %vm453_vm4, %v2617_v9 }
0x14e7   :  { %5063 = vmatpush3.xpose.msk.msra.mxu1 %vm293_vm2, %v2865_v7  ;;  %5066 = vmatprep.mubr.msk.f32.mxu1 %vm5343_vm1, %v5342_v57 }
0x14e8   :  { %5064 = vmatprep.subr.mxu1 %v5342_v57 }
0x14eb   :  { %5065 = vmatpush3.xpose.msk.msra.mxu1 %vm293_vm2, %v2863_v54 }
0x14ec   :  { %5076 = vmatprep.subr.mxu1 %v5342_v57 }
0x14ee   :  { %5067 = vmatmul.mubr.msk.f32.vlgmr.msra.gmra.mxu1 %vm293_vm2, %v2861_v17 }
0x14ef   :  { %5080 = vmatprep.mubr.msk.f32.mxu1 %vm5343_vm1, %v5342_v57 }
0x159e   :  { %v2856_v18 = vpop.f32.mrf.mxu0 }
0x159f   :  { %v2857_v19 = vadd.f32 %v2856_v18, %v5580_v8 }
0x15a0   :  { %v5061_v32 = vpop.f32.mrf.mxu0 }
0x15a1   :  { %v2942_v60 = vsel %vm453_vm4, %v2857_v19, -inf }
0x15a2   :  { %2943 = vmax.xlane.f32.xlu0 %v2942_v60  ;;  %v2694_v20 = vpop.f32.mrf.mxu1 }
0x15a4   :  { %v5047_v21 = vpop.f32.mrf.mxu1 }
0x15a6   :  { %v6082_v24 = vpop.f32.mrf.mxu1 }
0x15a8   :  { %v5054_v58 = vpop.f32.mrf.mxu1 }
0x15ae   :  { %v2938_v23 = vpop.f32.mrf.mxu1 }
0x15af   :  { %v2939_v13 = vadd.f32 %v2938_v23, %v5580_v8 }
0x15b0   :  { %v5068_v26 = vpop.f32.mrf.mxu1 }
0x15b1   :  { %v2945_v27 = vsel %vm453_vm4, %v2939_v13, -inf }
0x15b2   :  { %2946 = vmax.xlane.f32.xlu1 %v2945_v27 }
0x15c3   :  { %3046 = vrot.lane.b32.xlu1 %v5974_v52, %s5348_s15 }
0x15c7   :  { %2964 = vrot.lane.b32.xlu1 %v6002_v59, %s5348_s15 }
0x15cb   :  { %3044 = vrot.lane.b32.xlu1 %v6008_v28, %s5348_s15 }
0x15cf   :  { %3210 = vrot.lane.b32.xlu1 %v5907_v16, %s5349_s16 }
0x15d3   :  { %3380 = vrot.lane.b32.xlu1 %v5974_v52, %s5350_s0 }
0x15d7   :  { %3378 = vrot.lane.b32.xlu1 %v6008_v28, %s5350_s0 }
0x15db   :  { %3376 = vrot.lane.b32.xlu1 %v6021_v31, %s5351_s17 }
0x162b   :  { %v2944_v3 = vpop.xlane.xlu0 %2943 }
0x162c   :  { %v2948_v29 = vsub.f32 %v2857_v19, %v2944_v3 }
0x162e   :  { %v2950_v30 = vmul.f32 1.442695, %v2948_v29 }
0x1630   :  { %5288 = vpow2.f32 %v2950_v30 }
0x163b   :  { %v2947_v10 = vpop.xlane.xlu1 %2946 }
0x163c   :  { %v2949_v33 = vsub.f32 %v2939_v13, %v2947_v10 }
0x163d   :  { %v5289_v34 = vpop.eup %5288 }
0x163e   :  { %v2952_v35 = vmul.f32 1.442695, %v2949_v33  ;;  %v2954_v36 = vsel %vm453_vm4, %v5289_v34, 0.0 }
0x163f   :  { %v3047_v16 = vpop.permute.xlu1 %3046  ;;  %2955 = vadd.xlane.f32.xlu0 %v2954_v36 }
0x1640   :  { %5290 = vpow2.f32 %v2952_v35  ;;  %5077 = vmatpush3.msk.msra.mxu1 %vm484_vm5, %v3047_v16 }
0x1641   :  { %5078 = vmatprep.subr.mxu1 %v5342_v57 }
0x1643   :  { %v2965_v49 = vpop.permute.xlu1 %2964 }
0x1647   :  { %v3045_v48 = vpop.permute.xlu1 %3044 }
0x1648   :  { %5079 = vmatpush3.msra.mxu1 %v3045_v48 }
0x164b   :  { %v3211_v61 = vpop.permute.xlu1 %3210 }
0x164c   :  { %5088 = vmatprep.subr.mxu1 %v3211_v61 }
0x164d   :  { %v5291_v38 = vpop.eup %5290 }
0x164e   :  { %v2957_v39 = vsel %vm453_vm4, %v5291_v38, 0.0 }
0x164f   :  { %2958 = vadd.xlane.f32.xlu0 %v2957_v39  ;;  %v3381_v47 = vpop.permute.xlu1 %3380 }
0x1653   :  { %v3379_v50 = vpop.permute.xlu1 %3378 }
0x1657   :  { %v3377_v51 = vpop.permute.xlu1 %3376 }
0x1665   :  { %2966 = vrot.lane.b32.xlu0 %v5978_v53, %s5348_s15 }
0x1669   :  { %3125 = vrot.lane.b32.xlu0 %v5900_v14, %s5349_s16 }
0x166d   :  { %3298 = vrot.lane.b32.xlu0 %v5978_v53, %s5350_s0 }
0x1671   :  { %3296 = vrot.lane.b32.xlu0 %v6002_v59, %s5350_s0 }
0x1675   :  { %3294 = vrot.lane.b32.xlu0 %v6013_v15, %s5351_s17 }
0x16c8   :  { %v2956_v40 = vpop.xlane.xlu0 %2955 }
0x16c9   :  { %5292 = vrcp.f32 %v2956_v40 }
0x16d6   :  { %v5293_v43 = vpop.eup %5292 }
0x16d7   :  { %v2962_v14 = vmul.f32 %v5293_v43, %v5289_v34 }
0x16d8   :  { %v2959_v41 = vpop.xlane.xlu0 %2958 }
0x16d9   :  { %5294 = vrcp.f32 %v2959_v41 }
0x16dc   :  { %v2967_v22 = vpop.permute.xlu0 %2966 }
0x16dd   :  { %5070 = vmatpush3.msk.msra.mxu0 %vm484_vm5, %v2967_v22 }
0x16de   :  { %5071 = vmatprep.subr.mxu0 %v5342_v57 }
0x16df   :  { %5072 = vmatpush3.msra.mxu0 %v2965_v49 }
0x16e0   :  { %v3126_v45 = vpop.permute.xlu0 %3125  ;;  %5074 = vmatmul.mubr.msk.f32.vlgmr.msra.gmra.mxu0 %vm453_vm4, %v2962_v14 }
0x16e1   :  { %5083 = vmatprep.subr.mxu0 %v3126_v45 }
0x16e2   :  { %5084 = vmatpush3.msra.mxu0 %v3126_v45 }
0x16e3   :  { %5093 = vmatprep.subr.mxu0 %v5342_v57 }
0x16e4   :  { %v3299_v62 = vpop.permute.xlu0 %3298 }
0x16e6   :  { %v5295_v25 = vpop.eup %5294 }
0x16e7   :  { %v2963_v46 = vmul.f32 %v5295_v25, %v5291_v38 }
0x16e8   :  { %v3297_v1 = vpop.permute.xlu0 %3296 }
0x16e9   :  { %5081 = vmatmul.mubr.msk.f32.vlgmr.msra.gmra.mxu1 %vm453_vm4, %v2963_v46 }
0x16ea   :  { %5090 = vmatprep.mubr.msk.f32.mxu1 %vm293_vm2, %v2694_v20  ;;  %5089 = vmatpush3.msra.mxu1 %v3211_v61 }
0x16eb   :  { %5100 = vmatprep.subr.mxu1 %v5342_v57 }
0x16ec   :  { %v3295_v4 = vpop.permute.xlu0 %3294 }
0x16ed   :  { %5091 = vmatmul.mubr.msk.f32.vlgmr.msra.gmra.mxu1 %vm293_vm2, %v6082_v24 }
0x16ee   :  { %5101 = vmatpush3.xpose.msk.msra.mxu1 %vm293_vm2, %v3381_v47  ;;  %5104 = vmatprep.mubr.msk.f32.mxu1 %vm5343_vm1, %v5342_v57 }
0x16ef   :  { %5102 = vmatprep.subr.mxu1 %v5342_v57 }
0x16f2   :  { %5103 = vmatpush3.xpose.msk.msra.mxu1 %vm293_vm2, %v3379_v50 }
0x16f3   :  { %5114 = vmatprep.subr.mxu1 %v5342_v57 }
0x16f5   :  { %5105 = vmatmul.mubr.msk.f32.vlgmr.msra.gmra.mxu1 %vm293_vm2, %v3377_v51 }
0x16f6   :  { %5118 = vmatprep.mubr.msk.f32.mxu1 %vm5343_vm1, %v5342_v57 }
0x17a0   :  { %v3040_v55 = vpop.f32.mrf.mxu0 }
0x17a1   :  { %5085 = vmatprep.mubr.msk.f32.mxu0 %vm293_vm2, %v3040_v55 }
0x17a2   :  { %v5075_v42 = vpop.f32.mrf.mxu0 }
0x17a9   :  { %v3120_v63 = vpop.f32.mrf.mxu1 }
0x17aa   :  { %5086 = vmatmul.mubr.msk.f32.vlgmr.msra.gmra.mxu0 %vm293_vm2, %v3120_v63 }
0x17ab   :  { %5094 = vmatpush3.xpose.msk.msra.mxu0 %vm293_vm2, %v3299_v62  ;;  %v5082_v44 = vpop.f32.mrf.mxu1  ;;  %5097 = vmatprep.mubr.msk.f32.mxu0 %vm5343_vm1, %v5342_v57 }
0x17ac   :  { %5095 = vmatprep.subr.mxu0 %v5342_v57 }
0x17ad   :  { %v6138_v2 = vpop.f32.mrf.mxu1 }
0x17af   :  { %5096 = vmatpush3.xpose.msk.msra.mxu0 %vm293_vm2, %v3297_v1  ;;  %v6143_v0 = vpop.f32.mrf.mxu1 }
0x17b0   :  { %5107 = vmatprep.subr.mxu0 %v5342_v57 }
0x17b2   :  { %5098 = vmatmul.mubr.msk.f32.vlgmr.msra.gmra.mxu0 %vm293_vm2, %v3295_v4 }
0x17b3   :  { %5111 = vmatprep.mubr.msk.f32.mxu0 %vm5343_vm1, %v5342_v57 }
0x17b5   :  { %v3454_v5 = vpop.f32.mrf.mxu1 }
0x17b6   :  { %v3455_v6 = vadd.f32 %v3454_v5, %v5580_v8 }
0x17b7   :  { %v5106_v7 = vpop.f32.mrf.mxu1 }
0x17b8   :  { %v3461_v9 = vsel %vm453_vm4, %v3455_v6, -inf }
0x17b9   :  { %3462 = vmax.xlane.f32.xlu1 %v3461_v9 }
0x17ca   :  { %3562 = vrot.lane.b32.xlu1 %v5974_v52, %s5352_s18 }
0x17ce   :  { %3480 = vrot.lane.b32.xlu1 %v6002_v59, %s5352_s18 }
0x17d2   :  { %3560 = vrot.lane.b32.xlu1 %v6008_v28, %s5352_s18 }
0x17d6   :  { %3731 = vrot.lane.b32.xlu1 %v5978_v53, %s5353_s19 }
0x17da   :  { %3729 = vrot.lane.b32.xlu1 %v6002_v59, %s5353_s19 }
0x17de   :  { %3727 = vrot.lane.b32.xlu1 %v6013_v15, %s5354_s2 }
0x1842   :  { %v3463_v54 = vpop.xlane.xlu1 %3462 }
0x1843   :  { %v3465_v32 = vsub.f32 %v3455_v6, %v3463_v54 }
0x1845   :  { %v3468_v60 = vmul.f32 1.442695, %v3465_v32 }
0x1846   :  { %v3563_v17 = vpop.permute.xlu1 %3562 }
0x1847   :  { %5115 = vmatpush3.msk.msra.mxu1 %vm484_vm5, %v3563_v17  ;;  %5296 = vpow2.f32 %v3468_v60 }
0x1848   :  { %5116 = vmatprep.subr.mxu1 %v5342_v57 }
0x184a   :  { %v3481_v18 = vpop.permute.xlu1 %3480 }
0x184e   :  { %v3561_v19 = vpop.permute.xlu1 %3560 }
0x184f   :  { %5117 = vmatpush3.msra.mxu1 %v3561_v19 }
0x1850   :  { %5126 = vmatprep.subr.mxu1 %v5342_v57 }
0x1852   :  { %v3732_v10 = vpop.permute.xlu1 %3731 }
0x1854   :  { %v5297_v13 = vpop.eup %5296 }
0x1855   :  { %v3473_v26 = vsel %vm453_vm4, %v5297_v13, 0.0 }
0x1856   :  { %v3730_v16 = vpop.permute.xlu1 %3729 }
0x185a   :  { %v3728_v49 = vpop.permute.xlu1 %3727 }
0x186a   :  { %v6164_v20 = vpop.f32.mrf.mxu0 }
0x186b   :  { %v3291_v55 = vadd.f32 %v6138_v2, %v6164_v20 }
0x186c   :  { %v6166_v21 = vpop.f32.mrf.mxu0 }
0x186d   :  { %v3286_v62 = vadd.f32 %v6143_v0, %v6166_v21 }
0x1872   :  { %v3372_v24 = vpop.f32.mrf.mxu0 }
0x1873   :  { %v3373_v15 = vadd.f32 %v3372_v24, %v5580_v8 }
0x1874   :  { %v5099_v58 = vpop.f32.mrf.mxu0 }
0x1875   :  { %v3458_v23 = vsel %vm453_vm4, %v3373_v15, -inf }
0x1876   :  { %3459 = vmax.xlane.f32.xlu0 %v3458_v23 }
0x187a   :  { %3474 = vadd.xlane.f32.xlu0 %v3473_v26 }
0x18ff   :  { %v3460_v27 = vpop.xlane.xlu0 %3459 }
0x1900   :  { %v3464_v3 = vsub.f32 %v3373_v15, %v3460_v27 }
0x1902   :  { %v3466_v29 = vmul.f32 1.442695, %v3464_v3 }
0x1903   :  { %v3475_v30 = vpop.xlane.xlu0 %3474 }
0x1904   :  { %5298 = vpow2.f32 %v3466_v29 }
0x1905   :  { %5300 = vrcp.f32 %v3475_v30  ;;  %v4588_v30 = vld [vmem:[%s6359_s6 + $0xb] ss:$0 sm:$0xff] }
0x1911   :  { %v5299_v33 = vpop.eup %5298 }
0x1912   :  { %v5301_v34 = vpop.eup %5300  ;;  %v3470_v35 = vsel %vm453_vm4, %v5299_v33, 0.0 }
0x1913   :  { %3471 = vadd.xlane.f32.xlu0 %v3470_v35  ;;  %v3479_v36 = vmul.f32 %v5301_v34, %v5297_v13 }
0x1915   :  { %5119 = vmatmul.mubr.msk.f32.vlgmr.msra.gmra.mxu1 %vm453_vm4, %v3479_v36 }
0x1916   :  { %5127 = vmatpush3.xpose.msk.msra.mxu1 %vm293_vm2, %v3732_v10  ;;  %5130 = vmatprep.mubr.msk.f32.mxu1 %vm5343_vm1, %v5342_v57 }
0x1917   :  { %5128 = vmatprep.subr.mxu1 %v5342_v57 }
0x191a   :  { %5129 = vmatpush3.xpose.msk.msra.mxu1 %vm293_vm2, %v3730_v16 }
0x191b   :  { %5140 = vmatprep.subr.mxu1 %v5342_v57 }
0x191d   :  { %5131 = vmatmul.mubr.msk.f32.vlgmr.msra.gmra.mxu1 %vm293_vm2, %v3728_v49 }
0x191e   :  { %5144 = vmatprep.mubr.msk.f32.mxu1 %vm5343_vm1, %v5342_v57 }
0x1929   :  { %3482 = vrot.lane.b32.xlu0 %v5978_v53, %s5352_s18 }
0x192d   :  { %3641 = vrot.lane.b32.xlu0 %v5884_v12, %s5349_s16 }
0x1931   :  { %3813 = vrot.lane.b32.xlu0 %v5974_v52, %s5353_s19 }
0x1935   :  { %3811 = vrot.lane.b32.xlu0 %v6008_v28, %s5353_s19 }
0x1939   :  { %3809 = vrot.lane.b32.xlu0 %v6021_v31, %s5354_s2 }
0x199c   :  { %v3472_v48 = vpop.xlane.xlu0 %3471 }
0x199d   :  { %5302 = vrcp.f32 %v3472_v48 }
0x19a0   :  { %v3483_v61 = vpop.permute.xlu0 %3482 }
0x19a1   :  { %5108 = vmatpush3.msk.msra.mxu0 %vm484_vm5, %v3483_v61 }
0x19a2   :  { %5109 = vmatprep.subr.mxu0 %v5342_v57 }
0x19a3   :  { %5110 = vmatpush3.msra.mxu0 %v3481_v18 }
0x19a4   :  { %v3642_v38 = vpop.permute.xlu0 %3641 }
0x19a5   :  { %5121 = vmatprep.subr.mxu0 %v3642_v38 }
0x19a8   :  { %v3814_v45 = vpop.permute.xlu0 %3813 }
0x19aa   :  { %v5303_v12 = vpop.eup %5302 }
0x19ab   :  { %v3478_v39 = vmul.f32 %v5303_v12, %v5299_v33 }
0x19ad   :  { %5112 = vmatmul.mubr.msk.f32.vlgmr.msra.gmra.mxu0 %vm453_vm4, %v3478_v39 }
0x19ae   :  { %5122 = vmatpush3.msra.mxu0 %v3642_v38 }
0x19af   :  { %5133 = vmatprep.subr.mxu0 %v5342_v57 }
0x19d5   :  { %v3636_v40 = vpop.f32.mrf.mxu1 }
0x19d7   :  { %v5120_v41 = vpop.f32.mrf.mxu1 }
0x19dd   :  { %v3805_v31 = vpop.f32.mrf.mxu1 }
0x19de   :  { %v3806_v43 = vadd.f32 %v3805_v31, %v5580_v8 }
0x19df   :  { %v5132_v22 = vpop.f32.mrf.mxu1 }
0x19e0   :  { %v3891_v14 = vsel %vm453_vm4, %v3806_v43, -inf  ;;  %v4593_v22 = vld [vmem:[%s6357_s4 + $0x68] sm:$0xff] }
0x19e1   :  { %3892 = vmax.xlane.f32.xlu1 %v3891_v14  ;;  %v4592_v14 = vld [vmem:[%s6357_s4 + $0x58] sm:$0xff] }
0x19f2   :  { %3915 = vrot.lane.b32.xlu1 %v5978_v53, %s5355_s20  ;;  %v3812_v53 = vpop.permute.xlu0 %3811 }
0x19f6   :  { %3913 = vrot.lane.b32.xlu1 %v6002_v59, %s5355_s20  ;;  %v3810_v59 = vpop.permute.xlu0 %3809 }
0x19fa   :  { %3993 = vrot.lane.b32.xlu1 %v6008_v28, %s5355_s20 }
0x19fe   :  { %4074 = vrot.lane.b32.xlu1 %v5878_v11, %s5349_s16 }
0x1a6a   :  { %v3893_v25 = vpop.xlane.xlu1 %3892 }
0x1a6b   :  { %v3897_v28 = vsub.f32 %v3806_v43, %v3893_v25  ;;  %v4594_v43 = vld [vmem:[%s6357_s4 + $0x78] sm:$0xff] }
0x1a6c   :  { %v4613_v25 = vld [vmem:[%s6358_s5 + $0xf8] sm:$0xff] }
0x1a6d   :  { %v3556_v46 = vpop.f32.mrf.mxu0  ;;  %v3899_v51 = vmul.f32 1.442695, %v3897_v28  ;;  %v4606_v28 = vld [vmem:[%s6358_s5 + $0xc0] sm:$0xff] }
0x1a6e   :  { %v3916_v47 = vpop.permute.xlu1 %3915  ;;  %5123 = vmatprep.mubr.msk.f32.mxu0 %vm293_vm2, %v3556_v46  ;;  %v4612_v46 = vld [vmem:[%s6358_s5 + $0xf0] sm:$0xff] }
0x1a6f   :  { %5141 = vmatpush3.msk.msra.mxu1 %vm484_vm5, %v3916_v47  ;;  %v5113_v50 = vpop.f32.mrf.mxu0  ;;  %5124 = vmatmul.mubr.msk.f32.vlgmr.msra.gmra.mxu0 %vm293_vm2, %v3636_v40  ;;  %5304 = vpow2.f32 %v3899_v51  ;;  %v4611_v47 = vld [vmem:[%s6358_s5 + $0xe8] sm:$0xff]  ;;  %v4605_v51 = vld [vmem:[%s6358_s5 + $0xb8] sm:$0xff] }
0x1a70   :  { %5134 = vmatpush3.xpose.msk.msra.mxu0 %vm293_vm2, %v3814_v45  ;;  %5142 = vmatprep.subr.mxu1 %v5342_v57  ;;  %v4591_v45 = vld [vmem:[%s6357_s4 + $0x48] sm:$0xff]  ;;  %v4610_v50 = vld [vmem:[%s6358_s5 + $0xe0] sm:$0xff] }
0x1a71   :  { %5135 = vmatprep.subr.mxu0 %v5342_v57  ;;  %5137 = vmatprep.mubr.msk.f32.mxu0 %vm5343_vm1, %v5342_v57 }
0x1a72   :  { %v3914_v11 = vpop.permute.xlu1 %3913 }
0x1a73   :  { %5143 = vmatpush3.msra.mxu1 %v3914_v11  ;;  %v4608_v11 = vld [vmem:[%s6358_s5 + $0xd0] sm:$0xff] }
0x1a74   :  { %5136 = vmatpush3.xpose.msk.msra.mxu0 %vm293_vm2, %v3812_v53  ;;  %v4609_v53 = vld [vmem:[%s6358_s5 + $0xd8] sm:$0xff] }
0x1a75   :  { %5147 = vmatprep.subr.mxu0 %v5342_v57 }
0x1a76   :  { %v3994_v20 = vpop.permute.xlu1 %3993 }
0x1a77   :  { %5138 = vmatmul.mubr.msk.f32.vlgmr.msra.gmra.mxu0 %vm293_vm2, %v3810_v59  ;;  %v4607_v59 = vld [vmem:[%s6358_s5 + $0xc8] sm:$0xff] }
0x1a78   :  { %5151 = vmatprep.mubr.msk.f32.mxu0 %vm5343_vm1, %v5342_v57 }
0x1a7a   :  { %v4075_v21 = vpop.permute.xlu1 %4074 }
0x1a7b   :  { %5154 = vmatprep.subr.mxu1 %v4075_v21 }
0x1a7c   :  { %v5305_v9 = vpop.eup %5304 }
0x1a7d   :  { %v3903_v54 = vsel %vm453_vm4, %v5305_v9, 0.0 }
0x1b2f   :  { %v5125_v42 = vpop.f32.mrf.mxu0 }
0x1b30   :  { %v3726_v63 = vadd.f32 %v5125_v42, %v3291_v55  ;;  %v4604_v55 = vld [vmem:[%s6358_s5 + $0xb0] sm:$0xff]  ;;  %v4603_v42 = vld [vmem:[%s6358_s5 + $0xa8] sm:$0xff] }
0x1b31   :  { %v3716_v1 = vpop.f32.mrf.mxu0 }
0x1b32   :  { %v3725_v44 = vadd.f32 %v3716_v1, %v3286_v62  ;;  %v4602_v62 = vld [vmem:[%s6358_s5 + $0xa0] sm:$0xff] }
0x1b37   :  { %v3887_v4 = vpop.f32.mrf.mxu0 }
0x1b38   :  { %v3888_v5 = vadd.f32 %v3887_v4, %v5580_v8 }
0x1b39   :  { %v5139_v6 = vpop.f32.mrf.mxu0 }
0x1b3a   :  { %v3894_v7 = vsel %vm453_vm4, %v3888_v5, -inf }
0x1b3b   :  { %3895 = vmax.xlane.f32.xlu0 %v3894_v7 }
0x1b3f   :  { %3904 = vadd.xlane.f32.xlu0 %v3903_v54 }
0x1bc4   :  { %v3896_v2 = vpop.xlane.xlu0 %3895 }
0x1bc5   :  { %v3898_v17 = vsub.f32 %v3888_v5, %v3896_v2  ;;  %v4590_v2 = vld [vmem:[%s6359_s6 + $0xd] ss:$0 sm:$0xff] }
0x1bc7   :  { %v3901_v18 = vmul.f32 1.442695, %v3898_v17 }
0x1bc8   :  { %v3905_v19 = vpop.xlane.xlu0 %3904 }
0x1bc9   :  { %5306 = vpow2.f32 %v3901_v18 }
0x1bca   :  { %5308 = vrcp.f32 %v3905_v19 }
0x1bd6   :  { %v5307_v0 = vpop.eup %5306 }
0x1bd7   :  { %v5309_v32 = vpop.eup %5308  ;;  %v3906_v60 = vsel %vm453_vm4, %v5307_v0, 0.0 }
0x1bd8   :  { %3907 = vadd.xlane.f32.xlu0 %v3906_v60  ;;  %v3911_v8 = vmul.f32 %v5309_v32, %v5305_v9  ;;  %v4589_v9 = vld [vmem:[%s6359_s6 + $0xc] ss:$0 sm:$0xff] }
0x1bda   :  { %5145 = vmatmul.mubr.msk.f32.vlgmr.msra.gmra.mxu1 %vm453_vm4, %v3911_v8  ;;  %v4601_v8 = vld [vmem:[%s6358_s5 + $0x98] sm:$0xff] }
0x1bdb   :  { %5155 = vmatpush3.msra.mxu1 %v4075_v21  ;;  %v4599_v21 = vld [vmem:[%s6358_s5 + $0x88] sm:$0xff] }
0x1bdc   :  { %5170 = vmatprep.subr.mxu1 %v4613_v25 }
0x1bee   :  { %3995 = vrot.lane.b32.xlu0 %v5974_v52, %s5355_s20 }
0x1c61   :  { %v3908_v24 = vpop.xlane.xlu0 %3907 }
0x1c62   :  { %5310 = vrcp.f32 %v3908_v24  ;;  %v4598_v24 = vld [vmem:[%s6358_s5 + $0x80] sm:$0xff] }
0x1c65   :  { %v3996_v15 = vpop.permute.xlu0 %3995 }
0x1c66   :  { %5148 = vmatpush3.msk.msra.mxu0 %vm484_vm5, %v3996_v15  ;;  %v4595_v15 = vld [vmem:[%s6359_s6 + $0xe] ss:$0 sm:$0xff] }
0x1c67   :  { %5149 = vmatprep.subr.mxu0 %v5342_v57 }
0x1c68   :  { %5150 = vmatpush3.msra.mxu0 %v3994_v20  ;;  %v4600_v20 = vld [vmem:[%s6358_s5 + $0x90] sm:$0xff] }
0x1c69   :  { %5159 = vmatprep.subr.mxu0 %v4594_v43 }
0x1c6f   :  { %v5311_v58 = vpop.eup %5310 }
0x1c70   :  { %v3912_v23 = vmul.f32 %v5311_v58, %v5307_v0 }
0x1c72   :  { %5152 = vmatmul.mubr.msk.f32.vlgmr.msra.gmra.mxu0 %vm453_vm4, %v3912_v23 }
0x1c73   :  { %5160 = vmatpush3.msra.mxu0 %v4594_v43 }
0x1c74   :  { %5161 = vmatprep.subr.mxu0 %v4593_v22 }
0x1c75   :  { %5162 = vmatpush3.msra.mxu0 %v4593_v22 }
0x1c76   :  { %5163 = vmatprep.subr.mxu0 %v4592_v14 }
0x1c77   :  { %5164 = vmatpush3.msra.mxu0 %v4592_v14 }
0x1c78   :  { %5165 = vmatprep.subr.mxu0 %v4591_v45 }
0x1c79   :  { %5166 = vmatpush3.msra.mxu0 %v4591_v45 }
0x1c9a   :  { %v3989_v13 = vpop.f32.mrf.mxu1 }
0x1c9b   :  { %5156 = vmatprep.mubr.msk.f32.mxu1 %vm293_vm2, %v3989_v13 }
0x1c9c   :  { %v5146_v52 = vpop.f32.mrf.mxu1 }
0x1d32   :  { %v4069_v26 = vpop.f32.mrf.mxu0 }
0x1d33   :  { %5157 = vmatmul.mubr.msk.f32.vlgmr.msra.gmra.mxu1 %vm293_vm2, %v4069_v26 }
0x1d34   :  { %v5153_v27 = vpop.f32.mrf.mxu0  ;;  %5171 = vmatpush3.msra.mxu1 %v4613_v25 }
0x1d35   :  { %5172 = vmatprep.subr.mxu1 %v4612_v46 }
0x1d36   :  { %5173 = vmatpush3.msra.mxu1 %v4612_v46  ;;  %v4615_v46 = vld [vmem:[%s6360_s7] ss:$0 sm:$0xff] }
0x1d37   :  { %5174 = vmatprep.subr.mxu1 %v4611_v47 }
0x1d38   :  { %5175 = vmatpush3.msra.mxu1 %v4611_v47 }
0x1d39   :  { %5176 = vmatprep.subr.mxu1 %v4610_v50 }
0x1d3a   :  { %5177 = vmatpush3.msra.mxu1 %v4610_v50 }
0x1d3b   :  { %5178 = vmatprep.subr.mxu1 %v4609_v53 }
0x1d3c   :  { %5179 = vmatpush3.msra.mxu1 %v4609_v53  ;;  %v4616_v53 = vld [vmem:[%s6360_s7 + $0x1] ss:$0 sm:$0xff] }
0x1d3d   :  { %5180 = vmatprep.subr.mxu1 %v4608_v11 }
0x1d3e   :  { %5181 = vmatpush3.msra.mxu1 %v4608_v11 }
0x1d3f   :  { %5182 = vmatprep.subr.mxu1 %v4607_v59 }
0x1d40   :  { %5183 = vmatpush3.msra.mxu1 %v4607_v59 }
0x1d41   :  { %5184 = vmatprep.subr.mxu1 %v4606_v28 }
0x1d42   :  { %5185 = vmatpush3.msra.mxu1 %v4606_v28 }
0x1d43   :  { %5186 = vmatprep.subr.mxu1 %v4605_v51 }
0x1d44   :  { %5187 = vmatpush3.msra.mxu1 %v4605_v51 }
0x1d45   :  { %5188 = vmatprep.subr.mxu1 %v4604_v55 }
0x1d46   :  { %5189 = vmatpush3.msra.mxu1 %v4604_v55 }
0x1d47   :  { %5190 = vmatprep.subr.mxu1 %v4603_v42 }
0x1d48   :  { %5191 = vmatpush3.msra.mxu1 %v4603_v42 }
0x1d49   :  { %5192 = vmatprep.subr.mxu1 %v4602_v62 }
0x1d4a   :  { %5193 = vmatpush3.msra.mxu1 %v4602_v62 }
0x1d4b   :  { %5194 = vmatprep.subr.mxu1 %v4601_v8 }
0x1d4c   :  { %5195 = vmatpush3.msra.mxu1 %v4601_v8 }
0x1d4d   :  { %5196 = vmatprep.subr.mxu1 %v4600_v20 }
0x1d4e   :  { %5197 = vmatpush3.msra.mxu1 %v4600_v20 }
0x1d4f   :  { %5198 = vmatprep.subr.mxu1 %v4599_v21 }
0x1d50   :  { %5199 = vmatpush3.msra.mxu1 %v4599_v21 }
0x1d51   :  { %5200 = vmatprep.subr.mxu1 %v4598_v24 }
0x1d52   :  { %5201 = vmatpush3.msra.mxu1 %v4598_v24 }
0x1df3   :  { %v5158_v3 = vpop.f32.mrf.mxu1 }
0x1df4   :  { %v4159_v29 = vadd.f32 %v5158_v3, %v3726_v63  ;;  %v4614_v3 = vld [vmem:[%s6359_s6 + $0xf] ss:$0 sm:$0xff] }
0x1df5   :  { %v4149_v57 = vpop.f32.mrf.mxu1 }
0x1df6   :  { %v4161_v10 = vadd.f32 %v4159_v29, %v5958_v37  ;;  %v4158_v33 = vadd.f32 %v4149_v57, %v3725_v44 }
0x1df8   :  { %v6239_v34 = vadd.f32 %v4588_v30, %v4161_v10  ;;  %v4160_v35 = vadd.f32 %v4158_v33, %v5961_v56 }
0x1dfa   :  { %v6242_v36 = vadd.f32 %v4588_v30, %v4160_v35  ;;  %v4171_v16 = vsel %vm78_vm0, %v6239_v34, 0.0 }
0x1dfb   :  { %4172 = vadd.xlane.f32.xlu1 %v4171_v16 }
0x1dfc   :  { %v4168_v49 = vsel %vm78_vm0, %v6242_v36, 0.0 }
0x1dfd   :  { %4169 = vadd.xlane.f32.xlu0 %v4168_v49 }
0x1e84   :  { %v4173_v48 = vpop.xlane.xlu1 %4172 }
0x1e85   :  { %v4175_v61 = vmul.f32 0.03125, %v4173_v48 }
0x1e86   :  { %v4170_v38 = vpop.xlane.xlu0 %4169 }
0x1e87   :  { %v4174_v12 = vmul.f32 0.03125, %v4170_v38  ;;  %v6249_v37 = vsub.f32 %v6239_v34, %v4175_v61 }
0x1e89   :  { %v6252_v39 = vsub.f32 %v6242_v36, %v4174_v12  ;;  %v4179_v41 = vmul.f32 %v6249_v37, %v6249_v37 }
0x1e8b   :  { %v4178_v56 = vmul.f32 %v6252_v39, %v6252_v39  ;;  %v4183_v31 = vsel %vm78_vm0, %v4179_v41, 0.0 }
0x1e8d   :  { %v4180_v40 = vsel %vm78_vm0, %v4178_v56, 0.0 }
0x1e8e   :  { %4181 = vadd.xlane.f32.xlu0 %v4180_v40 }
0x1e92   :  { %4184 = vadd.xlane.f32.xlu0 %v4183_v31 }
0x1f17   :  { %v4182_v63 = vpop.xlane.xlu0 %4181 }
0x1f18   :  { %v4186_v1 = vmul.f32 0.03125, %v4182_v63 }
0x1f1a   :  { %v4188_v44 = vadd.f32 1e-05, %v4186_v1 }
0x1f1b   :  { %v4185_v4 = vpop.xlane.xlu0 %4184 }
0x1f1c   :  { %5312 = vrsqrt.f32 %v4188_v44  ;;  %v4187_v5 = vmul.f32 0.03125, %v4185_v4 }
0x1f1e   :  { %v4189_v6 = vadd.f32 1e-05, %v4187_v5 }
0x1f20   :  { %5314 = vrsqrt.f32 %v4189_v6 }
0x1f29   :  { %v5313_v7 = vpop.eup %5312 }
0x1f2a   :  { %v4192_v54 = vmul.f32 %v5313_v7, %v6252_v39 }
0x1f2c   :  { %v4198_v17 = vmul.f32 %v4589_v9, %v4192_v54 }
0x1f2d   :  { %v5315_v18 = vpop.eup %5314 }
0x1f2e   :  { %v4193_v19 = vmul.f32 %v5315_v18, %v6249_v37  ;;  %v4204_v0 = vadd.f32 %v4590_v2, %v4198_v17 }
0x1f30   :  { %v4199_v32 = vmul.f32 %v4589_v9, %v4193_v19  ;;  %5167 = vmatprep.mubr.msk.f32.mxu0 %vm78_vm0, %v4204_v0 }
0x1f32   :  { %v4205_v60 = vadd.f32 %v4590_v2, %v4199_v32 }
0x1f34   :  { %5168 = vmatmul.mubr.msk.f32.vlgmr.msra.gmra.mxu0 %vm78_vm0, %v4205_v60 }
0x1ff4   :  { %v5169_v58 = vpop.f32.mrf.mxu0 }
0x1ff5   :  { %v4292_v23 = vadd.f32 %v5169_v58, %v4595_v15 }
0x1ff6   :  { %v4286_v13 = vpop.f32.mrf.mxu0 }
0x1ff7   :  { %v4287_v52 = vadd.f32 %v4595_v15, %v4286_v13  ;;  %v4296_v27 = vmax.f32 %v4292_v23, 0.0 }
0x1ff9   :  { %v4295_v26 = vmax.f32 %v4287_v52, 0.0 }
0x1ffb   :  { %5202 = vmatprep.mubr.f32.mxu1 %v4295_v26 }
0x1ffc   :  { %5203 = vmatmul.mubr.f32.vlgmr.msra.gmra.mxu1 %v4296_v27 }
0x20bc   :  { %v5204_v29 = vpop.f32.mrf.mxu1 }
0x20bd   :  { %v4390_v30 = vadd.f32 %v5204_v29, %v4614_v3 }
0x20be   :  { %v4384_v57 = vpop.f32.mrf.mxu1 }
0x20bf   :  { %v4394_v10 = vadd.f32 %v4390_v30, %v6239_v34  ;;  %v4385_v33 = vadd.f32 %v4614_v3, %v4384_v57 }
0x20c1   :  { %v4393_v35 = vadd.f32 %v4385_v33, %v6242_v36  ;;  %v4400_v16 = vsel %vm78_vm0, %v4394_v10, 0.0 }
0x20c2   :  { %4401 = vadd.xlane.f32.xlu1 %v4400_v16 }
0x20c3   :  { %v4397_v49 = vsel %vm78_vm0, %v4393_v35, 0.0 }
0x20c4   :  { %4398 = vadd.xlane.f32.xlu0 %v4397_v49 }
0x214b   :  { %v4402_v48 = vpop.xlane.xlu1 %4401 }
0x214c   :  { %v4404_v61 = vmul.f32 0.03125, %v4402_v48 }
0x214d   :  { %v4399_v38 = vpop.xlane.xlu0 %4398 }
0x214e   :  { %v4406_v12 = vsub.f32 %v4394_v10, %v4404_v61  ;;  %v4403_v37 = vmul.f32 0.03125, %v4399_v38 }
0x2150   :  { %v4405_v39 = vsub.f32 %v4393_v35, %v4403_v37  ;;  %v4408_v56 = vmul.f32 %v4406_v12, %v4406_v12 }
0x2152   :  { %v4412_v40 = vsel %vm78_vm0, %v4408_v56, 0.0  ;;  %v4407_v41 = vmul.f32 %v4405_v39, %v4405_v39 }
0x2153   :  { %4413 = vadd.xlane.f32.xlu1 %v4412_v40 }
0x2154   :  { %v4409_v34 = vsel %vm78_vm0, %v4407_v41, 0.0 }
0x2155   :  { %4410 = vadd.xlane.f32.xlu0 %v4409_v34 }
0x21dc   :  { %v4414_v36 = vpop.xlane.xlu1 %4413 }
0x21dd   :  { %v4416_v31 = vmul.f32 0.03125, %v4414_v36 }
0x21de   :  { %v4411_v43 = vpop.xlane.xlu0 %4410 }
0x21df   :  { %v4418_v22 = vadd.f32 1e-05, %v4416_v31  ;;  %v4415_v14 = vmul.f32 0.03125, %v4411_v43 }
0x21e1   :  { %5316 = vrsqrt.f32 %v4418_v22  ;;  %v4417_v45 = vadd.f32 1e-05, %v4415_v14 }
0x21e3   :  { %5318 = vrsqrt.f32 %v4417_v45 }
0x21ee   :  { %v5317_v25 = vpop.eup %5316 }
0x21ef   :  { %v4422_v47 = vmul.f32 %v5317_v25, %v4406_v12 }
0x21f0   :  { %v5319_v50 = vpop.eup %5318 }
0x21f1   :  { %v4421_v11 = vmul.f32 %v5319_v50, %v4405_v39  ;;  %v4428_v59 = vmul.f32 %v4615_v46, %v4422_v47 }
0x21f3   :  { %v4427_v28 = vmul.f32 %v4615_v46, %v4421_v11  ;;  %v4434_v51 = vadd.f32 %v4616_v53, %v4428_v59 }
0x21f5   :  { %v4433_v55 = vadd.f32 %v4616_v53, %v4427_v28  ;;  %4436 = vst.msk [vmem:[#allocation2 + $0x8] sm:$0xff] %vm78_vm0, %v4434_v51 }
0x21f7   :  { %4435 = vst.msk [vmem:[#allocation2] sm:$0xff] %vm78_vm0, %v4433_v55 }
0x21f8   :  { %5331 = shalt.err (!%p5328_p4)
}
0x21f9   :  { %s5357_s7 = smov 128   ;;  %s5358_s12 = smov 8  }
0x21fa   :  { %4448 = dma.vmem_to_hbm [thread:$0]  %s4443_s26, 256, %s6361_s8, [#allocation3], %s5357_s7, %s5357_s7, %s5358_s12  }
0x21fb   :  { %5340 = dma.done.wait [#allocation3], 256  }
0x21fc   :  { %5341 = vsyncadd [#allocation3], 4294967040 }
0x21fd   :  { %4452 = vsyncpa [#allocation3], 1 }

</bundles_post_ra>
